<compile_context>
chip_gen: v5e
topology: v5e:2x2
jax: 0.10.0
libtpu: 0.0.40
codegen_flags: <defaults>
</compile_context>

<pallas_src>
import numpy as np
import jax
import jax.numpy as jnp
from jax.experimental import pallas as pl
from jax.experimental.pallas import tpu as pltpu

EPS = 1e-5


# ---------------------------------------------------------------------------
# Structured constant operands (built wrapper-side from the layer weights)
# ---------------------------------------------------------------------------
def _sel(n_out, n_in, k):
    """0/1 selection matrix S (n_out, n_in): S[o, i] = 1 iff i == 2*o + k - 1."""
    s = np.zeros((n_out, n_in), np.float32)
    for o in range(n_out):
        i = 2 * o + k - 1
        if 0 <= i < n_in:
            s[o, i] = 1.0
    return s


def _channel_maps(n, c, h):
    """G (C, N*C*H): per-channel row-sum matrix for rows ordered (n, c, h); E = G^T."""
    g = np.kron(np.ones((1, n), np.float32),
                np.kron(np.eye(c, dtype=np.float32), np.ones((1, h), np.float32)))
    return jnp.asarray(g), jnp.asarray(g.T)


def _down_mats(w, n, hw_in, hw_out):
    """Conv2d(C,C,3,stride=2,pad=1) as  sum_kw L[kw] @ X @ B[kw].

    w: (Cout, Cin, 3, 3).  X rows = (n, ci, h), lanes = w_in; out rows = (n, co, u).
    """
    h_in, w_in = hw_in
    h_out, w_out = hw_out
    eye_n = jnp.eye(n, dtype=jnp.float32)
    l_stack = []
    for kw in range(3):
        l_kw = None
        for kh in range(3):
            a = jnp.asarray(_sel(h_out, h_in, kh))           # (OH, H): h = 2u + kh - 1
            term = jnp.kron(eye_n, jnp.kron(w[:, :, kh, kw], a))
            l_kw = term if l_kw is None else l_kw + term
        l_stack.append(l_kw)
    b_stack = [jnp.asarray(_sel(w_out, w_in, kw).T) for kw in range(3)]   # (W, OW)
    return jnp.stack(l_stack), jnp.stack(b_stack)


def _up_mats(w, n, hw_in, hw_out):
    """ConvTranspose2d(C,C,3,stride=2,pad=1,out_pad=1) as  sum_kw L[kw] @ X @ R[kw].

    w: (Cin, Cout, 3, 3).  X rows = (n, ci, a), lanes = b; out rows = (n, co, y) with
    y = 2a + kh - 1 (output already interleaved at full resolution).
    """
    h_in, w_in = hw_in
    h_out, w_out = hw_out
    eye_n = jnp.eye(n, dtype=jnp.float32)
    l_stack = []
    for kw in range(3):
        l_kw = None
        for kh in range(3):
            a = jnp.asarray(_sel(h_in, h_out, kh).T)         # (Ho, Hs): y = 2a + kh - 1
            term = jnp.kron(eye_n, jnp.kron(w[:, :, kh, kw].T, a))
            l_kw = term if l_kw is None else l_kw + term
        l_stack.append(l_kw)
    r_stack = [jnp.asarray(_sel(w_in, w_out, kw)) for kw in range(3)]     # (Ws, Wo)
    return jnp.stack(l_stack), jnp.stack(r_stack)


def _vmem_limit():
    # Generation-aware scoped-VMEM budget (v7x: 64 MiB physical, v5e/v6e: 128 MiB).
    try:
        cap = pltpu.get_tpu_info().vmem_capacity_bytes
    except Exception:
        cap = 64 * 1024 * 1024
    return int(min(32 * 1024 * 1024, cap // 2))


# ---------------------------------------------------------------------------
# Fused whole-forward Pallas kernel
# ---------------------------------------------------------------------------
def multi_scale_forward(x, params):
    n, c, h, w = x.shape
    n_scales = len(params["down"])
    dims = [(h >> l, w >> l) for l in range(n_scales + 1)]
    for hl, wl in dims[:-1]:
        if hl % 2 or wl % 2:
            raise NotImplementedError("spatial dims must be divisible by 2**n_scales")

    # ---- wrapper-side constant building (tiny XLA glue) -----------------------
    inputs = [x.astype(jnp.float32).reshape(n * c * h, w)]
    for l in range(n_scales):
        p = params["down"][l]
        lmat, bmat = _down_mats(p["w"].astype(jnp.float32), n, dims[l], dims[l + 1])
        inputs += [lmat, bmat,
                   p["gamma"].astype(jnp.float32).reshape(c, 1),
                   p["beta"].astype(jnp.float32).reshape(c, 1)]
    for i in range(n_scales):
        p = params["up"][i]
        lmat, rmat = _up_mats(p["w"].astype(jnp.float32), n, dims[i + 1], dims[i])
        inputs += [lmat, rmat,
                   p["gamma"].astype(jnp.float32).reshape(c, 1),
                   p["beta"].astype(jnp.float32).reshape(c, 1)]
    for l in range(n_scales + 1):
        g, e = _channel_maps(n, c, dims[l][0])
        inputs += [g, e]

    total_bytes = sum(int(np.prod(a.shape)) * 4 for a in inputs) + n * c * h * w * 4
    if total_bytes > 16 * 1024 * 1024:
        # TODO(synk): tiled multi-kernel path for inputs too large for VMEM residency.
        raise NotImplementedError("fused whole-forward kernel targets small inputs")

    def kernel(*refs):
        out_ref = refs[-1]
        in_refs = refs[:-1]
        pos = 0
        x0 = in_refs[pos][...]
        pos += 1
        down = []
        for _ in range(n_scales):
            down.append(in_refs[pos:pos + 4])
            pos += 4
        up = []
        for _ in range(n_scales):
            up.append(in_refs[pos:pos + 4])
            pos += 4
        chan = []
        for _ in range(n_scales + 1):
            chan.append(in_refs[pos:pos + 2])
            pos += 2

        def conv3(x_val, l_ref, b_ref):
            # sum_kw L[kw] @ (X @ B[kw])  -- all MXU matmuls on VMEM-resident values.
            acc = None
            for k in range(3):
                xb = jnp.dot(x_val, b_ref[k], preferred_element_type=jnp.float32)
                t = jnp.dot(l_ref[k], xb, preferred_element_type=jnp.float32)
                acc = t if acc is None else acc + t
            return acc

        def bn_relu(y, gamma_ref, beta_ref, level):
            hl, wl = dims[level]
            count = float(n * hl * wl)
            g = chan[level][0][...]                     # (C, R_level)
            e = chan[level][1][...]                     # (R_level, C)
            ones_cw = jnp.ones((c, y.shape[1]), jnp.float32)
            mean_c = jnp.sum(jnp.dot(g, y, preferred_element_type=jnp.float32),
                             axis=1, keepdims=True) * (1.0 / count)
            mean_rows = jnp.dot(e, mean_c * ones_cw,
                                preferred_element_type=jnp.float32)
            yc = y - mean_rows                          # two-pass: center, then var
            var_c = jnp.sum(jnp.dot(g, yc * yc, preferred_element_type=jnp.float32),
                            axis=1, keepdims=True) * (1.0 / count)
            scale_c = gamma_ref[...] * jax.lax.rsqrt(var_c + EPS)
            scale_rows = jnp.dot(e, scale_c * ones_cw,
                                 preferred_element_type=jnp.float32)
            beta_rows = jnp.dot(e, beta_ref[...] * ones_cw,
                                preferred_element_type=jnp.float32)
            return jnp.maximum(yc * scale_rows + beta_rows, 0.0)

        feats = [x0]
        for l in range(n_scales):                       # down path
            lmat, bmat, gamma, beta = down[l]
            y = conv3(feats[l], lmat, bmat)
            feats.append(bn_relu(y, gamma, beta, l + 1))
        for i in range(n_scales - 1, -1, -1):           # up path + residual adds
            lmat, rmat, gamma, beta = up[i]
            y = conv3(feats[i + 1], lmat, rmat)
            feats[i] = feats[i] + bn_relu(y, gamma, beta, i)
        out_ref[...] = feats[0]

    vspec = pl.BlockSpec(memory_space=pltpu.MemorySpace.VMEM)
    out = pl.pallas_call(
        kernel,
        out_shape=jax.ShapeDtypeStruct((n * c * h, w), jnp.float32),
        in_specs=[vspec] * len(inputs),
        out_specs=vspec,
        compiler_params=pltpu.CompilerParams(vmem_limit_bytes=_vmem_limit()),
    )(*inputs)
    return out.reshape(n, c, h, w)


# ---------------------------------------------------------------------------
# Pure-JAX reference (PyTorch semantics, including the conv bias) and params
# ---------------------------------------------------------------------------
def ref_forward(x_nchw, params):
    x = jnp.transpose(x_nchw, (0, 2, 3, 1)).astype(jnp.float32)

    def bn_relu_ref(y, gamma, beta):
        m = jnp.mean(y, axis=(0, 1, 2), keepdims=True)
        v = jnp.mean((y - m) ** 2, axis=(0, 1, 2), keepdims=True)
        return jnp.maximum((y - m) * jax.lax.rsqrt(v + EPS) * gamma + beta, 0.0)

    feats = [x]
    for p in params["down"]:
        w_hwio = jnp.transpose(p["w"], (2, 3, 1, 0))
        y = jax.lax.conv_general_dilated(
            feats[-1], w_hwio, (2, 2), ((1, 1), (1, 1)),
            dimension_numbers=("NHWC", "HWIO", "NHWC")) + p["b"]
        feats.append(bn_relu_ref(y, p["gamma"], p["beta"]))
    for i in range(len(params["up"]) - 1, -1, -1):
        p = params["up"][i]
        w_hwio = jnp.transpose(p["w"][:, :, ::-1, ::-1], (2, 3, 0, 1))
        y = jax.lax.conv_general_dilated(
            feats[i + 1], w_hwio, (1, 1), ((1, 2), (1, 2)),
            lhs_dilation=(2, 2),
            dimension_numbers=("NHWC", "HWIO", "NHWC")) + p["b"]
        feats[i] = feats[i] + bn_relu_ref(y, p["gamma"], p["beta"])
    return jnp.transpose(feats[0], (0, 3, 1, 2))


def init_params(key, channels, n_scales=2):
    params = {"down": [], "up": []}
    for kind in ("down", "up"):
        for _ in range(n_scales):
            key, k1, k2, k3, k4 = jax.random.split(key, 5)
            params[kind].append({
                "w": jax.random.normal(k1, (channels, channels, 3, 3), jnp.float32) * 0.1,
                "b": jax.random.normal(k2, (channels,), jnp.float32) * 0.1,
                "gamma": 1.0 + 0.1 * jax.random.normal(k3, (channels,), jnp.float32),
                "beta": 0.1 * jax.random.normal(k4, (channels,), jnp.float32),
            })
    return params


if __name__ == "__main__":
    key = jax.random.PRNGKey(0)
    key, kx = jax.random.split(key)
    B, C, H, W = 2, 4, 16, 16
    x = jax.random.normal(kx, (B, C, H, W), jnp.float32)
    params = init_params(key, C, n_scales=2)

    fwd = jax.jit(multi_scale_forward)
    out = jax.block_until_ready(fwd(x, params))
    assert out.shape == (B, C, H, W), out.shape

    ref = jax.block_until_ready(ref_forward(x, params))
    max_err = float(jnp.max(jnp.abs(out - ref)))
    assert jnp.allclose(out, ref, rtol=1e-3, atol=1e-3), max_err

    print("KERNEL_OK")
</pallas_src>

<mosaic_0001>
module attributes {stable_mosaic.version = 11 : i64} {
  func.func @kernel(%arg0: memref<128x16xf32, #tpu.memory_space<vmem>>, %arg1: memref<3x64x128xf32, #tpu.memory_space<vmem>>, %arg2: memref<3x16x8xf32, #tpu.memory_space<vmem>>, %arg3: memref<4x1xf32, #tpu.memory_space<vmem>>, %arg4: memref<4x1xf32, #tpu.memory_space<vmem>>, %arg5: memref<3x32x64xf32, #tpu.memory_space<vmem>>, %arg6: memref<3x8x4xf32, #tpu.memory_space<vmem>>, %arg7: memref<4x1xf32, #tpu.memory_space<vmem>>, %arg8: memref<4x1xf32, #tpu.memory_space<vmem>>, %arg9: memref<3x128x64xf32, #tpu.memory_space<vmem>>, %arg10: memref<3x8x16xf32, #tpu.memory_space<vmem>>, %arg11: memref<4x1xf32, #tpu.memory_space<vmem>>, %arg12: memref<4x1xf32, #tpu.memory_space<vmem>>, %arg13: memref<3x64x32xf32, #tpu.memory_space<vmem>>, %arg14: memref<3x4x8xf32, #tpu.memory_space<vmem>>, %arg15: memref<4x1xf32, #tpu.memory_space<vmem>>, %arg16: memref<4x1xf32, #tpu.memory_space<vmem>>, %arg17: memref<4x128xf32, #tpu.memory_space<vmem>>, %arg18: memref<128x4xf32, #tpu.memory_space<vmem>>, %arg19: memref<4x64xf32, #tpu.memory_space<vmem>>, %arg20: memref<64x4xf32, #tpu.memory_space<vmem>>, %arg21: memref<4x32xf32, #tpu.memory_space<vmem>>, %arg22: memref<32x4xf32, #tpu.memory_space<vmem>>, %arg23: memref<128x16xf32, #tpu.memory_space<vmem>>) attributes {dimension_semantics = [], scalar_prefetch = 0 : i64, scratch_operands = 0 : i64, tpu.core_type = #tpu.core_type<tc>} {
    %c0 = arith.constant 0 : index
    %c0_0 = arith.constant 0 : index
    %0 = vector.load %arg0[%c0, %c0_0] : memref<128x16xf32, #tpu.memory_space<vmem>>, vector<128x16xf32>
    %c0_1 = arith.constant 0 : index
    %c0_2 = arith.constant 0 : index
    %c0_3 = arith.constant 0 : index
    %1 = vector.load %arg2[%c0_1, %c0_2, %c0_3] : memref<3x16x8xf32, #tpu.memory_space<vmem>>, vector<1x16x8xf32>
    %2 = vector.shape_cast %1 : vector<1x16x8xf32> to vector<16x8xf32>
    %cst = arith.constant dense<0.000000e+00> : vector<128x8xf32>
    %3 = tpu.matmul %0, %2, %cst {dimension_numbers = #tpu.dot_dimension_numbers<[1], [0], [0], [1], [0, 0, 1, 1], [], []>} : vector<128x16xf32>, vector<16x8xf32>, vector<128x8xf32> -> vector<128x8xf32>
    %c0_4 = arith.constant 0 : index
    %c0_5 = arith.constant 0 : index
    %c0_6 = arith.constant 0 : index
    %4 = vector.load %arg1[%c0_4, %c0_5, %c0_6] : memref<3x64x128xf32, #tpu.memory_space<vmem>>, vector<1x64x128xf32>
    %5 = vector.shape_cast %4 : vector<1x64x128xf32> to vector<64x128xf32>
    %cst_7 = arith.constant dense<0.000000e+00> : vector<64x8xf32>
    %6 = tpu.matmul %5, %3, %cst_7 {dimension_numbers = #tpu.dot_dimension_numbers<[1], [0], [0], [1], [0, 0, 1, 1], [], []>} : vector<64x128xf32>, vector<128x8xf32>, vector<64x8xf32> -> vector<64x8xf32>
    %c1 = arith.constant 1 : index
    %c0_8 = arith.constant 0 : index
    %c0_9 = arith.constant 0 : index
    %7 = vector.load %arg2[%c1, %c0_8, %c0_9] : memref<3x16x8xf32, #tpu.memory_space<vmem>>, vector<1x16x8xf32>
    %8 = vector.shape_cast %7 : vector<1x16x8xf32> to vector<16x8xf32>
    %cst_10 = arith.constant dense<0.000000e+00> : vector<128x8xf32>
    %9 = tpu.matmul %0, %8, %cst_10 {dimension_numbers = #tpu.dot_dimension_numbers<[1], [0], [0], [1], [0, 0, 1, 1], [], []>} : vector<128x16xf32>, vector<16x8xf32>, vector<128x8xf32> -> vector<128x8xf32>
    %c1_11 = arith.constant 1 : index
    %c0_12 = arith.constant 0 : index
    %c0_13 = arith.constant 0 : index
    %10 = vector.load %arg1[%c1_11, %c0_12, %c0_13] : memref<3x64x128xf32, #tpu.memory_space<vmem>>, vector<1x64x128xf32>
    %11 = vector.shape_cast %10 : vector<1x64x128xf32> to vector<64x128xf32>
    %cst_14 = arith.constant dense<0.000000e+00> : vector<64x8xf32>
    %12 = tpu.matmul %11, %9, %cst_14 {dimension_numbers = #tpu.dot_dimension_numbers<[1], [0], [0], [1], [0, 0, 1, 1], [], []>} : vector<64x128xf32>, vector<128x8xf32>, vector<64x8xf32> -> vector<64x8xf32>
    %13 = arith.addf %6, %12 : vector<64x8xf32>
    %c2 = arith.constant 2 : index
    %c0_15 = arith.constant 0 : index
    %c0_16 = arith.constant 0 : index
    %14 = vector.load %arg2[%c2, %c0_15, %c0_16] : memref<3x16x8xf32, #tpu.memory_space<vmem>>, vector<1x16x8xf32>
    %15 = vector.shape_cast %14 : vector<1x16x8xf32> to vector<16x8xf32>
    %cst_17 = arith.constant dense<0.000000e+00> : vector<128x8xf32>
    %16 = tpu.matmul %0, %15, %cst_17 {dimension_numbers = #tpu.dot_dimension_numbers<[1], [0], [0], [1], [0, 0, 1, 1], [], []>} : vector<128x16xf32>, vector<16x8xf32>, vector<128x8xf32> -> vector<128x8xf32>
    %c2_18 = arith.constant 2 : index
    %c0_19 = arith.constant 0 : index
    %c0_20 = arith.constant 0 : index
    %17 = vector.load %arg1[%c2_18, %c0_19, %c0_20] : memref<3x64x128xf32, #tpu.memory_space<vmem>>, vector<1x64x128xf32>
    %18 = vector.shape_cast %17 : vector<1x64x128xf32> to vector<64x128xf32>
    %cst_21 = arith.constant dense<0.000000e+00> : vector<64x8xf32>
    %19 = tpu.matmul %18, %16, %cst_21 {dimension_numbers = #tpu.dot_dimension_numbers<[1], [0], [0], [1], [0, 0, 1, 1], [], []>} : vector<64x128xf32>, vector<128x8xf32>, vector<64x8xf32> -> vector<64x8xf32>
    %20 = arith.addf %13, %19 : vector<64x8xf32>
    %c0_22 = arith.constant 0 : index
    %c0_23 = arith.constant 0 : index
    %21 = vector.load %arg19[%c0_22, %c0_23] : memref<4x64xf32, #tpu.memory_space<vmem>>, vector<4x64xf32>
    %c0_24 = arith.constant 0 : index
    %c0_25 = arith.constant 0 : index
    %22 = vector.load %arg20[%c0_24, %c0_25] : memref<64x4xf32, #tpu.memory_space<vmem>>, vector<64x4xf32>
    %cst_26 = arith.constant 1.000000e+00 : f32
    %23 = vector.broadcast %cst_26 : f32 to vector<4x8xf32>
    %cst_27 = arith.constant dense<0.000000e+00> : vector<4x8xf32>
    %24 = tpu.matmul %21, %20, %cst_27 {dimension_numbers = #tpu.dot_dimension_numbers<[1], [0], [0], [1], [0, 0, 1, 1], [], []>} : vector<4x64xf32>, vector<64x8xf32>, vector<4x8xf32> -> vector<4x8xf32>
    %cst_28 = arith.constant dense<0.000000e+00> : vector<4xf32>
    %25 = vector.multi_reduction <add>, %24, %cst_28 [1] : vector<4x8xf32> to vector<4xf32>
    %26 = vector.shape_cast %25 : vector<4xf32> to vector<4x1xf32>
    %cst_29 = arith.constant 7.812500e-03 : f32
    %27 = vector.broadcast %cst_29 : f32 to vector<4x1xf32>
    %28 = arith.mulf %26, %27 : vector<4x1xf32>
    %29 = vector.broadcast %28 : vector<4x1xf32> to vector<4x8xf32>
    %30 = arith.mulf %29, %23 : vector<4x8xf32>
    %cst_30 = arith.constant dense<0.000000e+00> : vector<64x8xf32>
    %31 = tpu.matmul %22, %30, %cst_30 {dimension_numbers = #tpu.dot_dimension_numbers<[1], [0], [0], [1], [0, 0, 1, 1], [], []>} : vector<64x4xf32>, vector<4x8xf32>, vector<64x8xf32> -> vector<64x8xf32>
    %32 = arith.subf %20, %31 : vector<64x8xf32>
    %33 = arith.mulf %32, %32 : vector<64x8xf32>
    %cst_31 = arith.constant dense<0.000000e+00> : vector<4x8xf32>
    %34 = tpu.matmul %21, %33, %cst_31 {dimension_numbers = #tpu.dot_dimension_numbers<[1], [0], [0], [1], [0, 0, 1, 1], [], []>} : vector<4x64xf32>, vector<64x8xf32>, vector<4x8xf32> -> vector<4x8xf32>
    %cst_32 = arith.constant dense<0.000000e+00> : vector<4xf32>
    %35 = vector.multi_reduction <add>, %34, %cst_32 [1] : vector<4x8xf32> to vector<4xf32>
    %36 = vector.shape_cast %35 : vector<4xf32> to vector<4x1xf32>
    %cst_33 = arith.constant 7.812500e-03 : f32
    %37 = vector.broadcast %cst_33 : f32 to vector<4x1xf32>
    %38 = arith.mulf %36, %37 : vector<4x1xf32>
    %c0_34 = arith.constant 0 : index
    %c0_35 = arith.constant 0 : index
    %39 = vector.load %arg3[%c0_34, %c0_35] : memref<4x1xf32, #tpu.memory_space<vmem>>, vector<4x1xf32>
    %cst_36 = arith.constant 9.99999974E-6 : f32
    %40 = vector.broadcast %cst_36 : f32 to vector<4x1xf32>
    %41 = arith.addf %38, %40 : vector<4x1xf32>
    %42 = math.rsqrt %41 : vector<4x1xf32>
    %43 = arith.mulf %39, %42 : vector<4x1xf32>
    %44 = vector.broadcast %43 : vector<4x1xf32> to vector<4x8xf32>
    %45 = arith.mulf %44, %23 : vector<4x8xf32>
    %cst_37 = arith.constant dense<0.000000e+00> : vector<64x8xf32>
    %46 = tpu.matmul %22, %45, %cst_37 {dimension_numbers = #tpu.dot_dimension_numbers<[1], [0], [0], [1], [0, 0, 1, 1], [], []>} : vector<64x4xf32>, vector<4x8xf32>, vector<64x8xf32> -> vector<64x8xf32>
    %c0_38 = arith.constant 0 : index
    %c0_39 = arith.constant 0 : index
    %47 = vector.load %arg4[%c0_38, %c0_39] : memref<4x1xf32, #tpu.memory_space<vmem>>, vector<4x1xf32>
    %48 = vector.broadcast %47 : vector<4x1xf32> to vector<4x8xf32>
    %49 = arith.mulf %48, %23 : vector<4x8xf32>
    %cst_40 = arith.constant dense<0.000000e+00> : vector<64x8xf32>
    %50 = tpu.matmul %22, %49, %cst_40 {dimension_numbers = #tpu.dot_dimension_numbers<[1], [0], [0], [1], [0, 0, 1, 1], [], []>} : vector<64x4xf32>, vector<4x8xf32>, vector<64x8xf32> -> vector<64x8xf32>
    %51 = arith.mulf %32, %46 : vector<64x8xf32>
    %52 = arith.addf %51, %50 : vector<64x8xf32>
    %cst_41 = arith.constant 0.000000e+00 : f32
    %53 = vector.broadcast %cst_41 : f32 to vector<64x8xf32>
    %54 = arith.maximumf %52, %53 : vector<64x8xf32>
    %c0_42 = arith.constant 0 : index
    %c0_43 = arith.constant 0 : index
    %c0_44 = arith.constant 0 : index
    %55 = vector.load %arg6[%c0_42, %c0_43, %c0_44] : memref<3x8x4xf32, #tpu.memory_space<vmem>>, vector<1x8x4xf32>
    %56 = vector.shape_cast %55 : vector<1x8x4xf32> to vector<8x4xf32>
    %cst_45 = arith.constant dense<0.000000e+00> : vector<64x4xf32>
    %57 = tpu.matmul %54, %56, %cst_45 {dimension_numbers = #tpu.dot_dimension_numbers<[1], [0], [0], [1], [0, 0, 1, 1], [], []>} : vector<64x8xf32>, vector<8x4xf32>, vector<64x4xf32> -> vector<64x4xf32>
    %c0_46 = arith.constant 0 : index
    %c0_47 = arith.constant 0 : index
    %c0_48 = arith.constant 0 : index
    %58 = vector.load %arg5[%c0_46, %c0_47, %c0_48] : memref<3x32x64xf32, #tpu.memory_space<vmem>>, vector<1x32x64xf32>
    %59 = vector.shape_cast %58 : vector<1x32x64xf32> to vector<32x64xf32>
    %cst_49 = arith.constant dense<0.000000e+00> : vector<32x4xf32>
    %60 = tpu.matmul %59, %57, %cst_49 {dimension_numbers = #tpu.dot_dimension_numbers<[1], [0], [0], [1], [0, 0, 1, 1], [], []>} : vector<32x64xf32>, vector<64x4xf32>, vector<32x4xf32> -> vector<32x4xf32>
    %c1_50 = arith.constant 1 : index
    %c0_51 = arith.constant 0 : index
    %c0_52 = arith.constant 0 : index
    %61 = vector.load %arg6[%c1_50, %c0_51, %c0_52] : memref<3x8x4xf32, #tpu.memory_space<vmem>>, vector<1x8x4xf32>
    %62 = vector.shape_cast %61 : vector<1x8x4xf32> to vector<8x4xf32>
    %cst_53 = arith.constant dense<0.000000e+00> : vector<64x4xf32>
    %63 = tpu.matmul %54, %62, %cst_53 {dimension_numbers = #tpu.dot_dimension_numbers<[1], [0], [0], [1], [0, 0, 1, 1], [], []>} : vector<64x8xf32>, vector<8x4xf32>, vector<64x4xf32> -> vector<64x4xf32>
    %c1_54 = arith.constant 1 : index
    %c0_55 = arith.constant 0 : index
    %c0_56 = arith.constant 0 : index
    %64 = vector.load %arg5[%c1_54, %c0_55, %c0_56] : memref<3x32x64xf32, #tpu.memory_space<vmem>>, vector<1x32x64xf32>
    %65 = vector.shape_cast %64 : vector<1x32x64xf32> to vector<32x64xf32>
    %cst_57 = arith.constant dense<0.000000e+00> : vector<32x4xf32>
    %66 = tpu.matmul %65, %63, %cst_57 {dimension_numbers = #tpu.dot_dimension_numbers<[1], [0], [0], [1], [0, 0, 1, 1], [], []>} : vector<32x64xf32>, vector<64x4xf32>, vector<32x4xf32> -> vector<32x4xf32>
    %67 = arith.addf %60, %66 : vector<32x4xf32>
    %c2_58 = arith.constant 2 : index
    %c0_59 = arith.constant 0 : index
    %c0_60 = arith.constant 0 : index
    %68 = vector.load %arg6[%c2_58, %c0_59, %c0_60] : memref<3x8x4xf32, #tpu.memory_space<vmem>>, vector<1x8x4xf32>
    %69 = vector.shape_cast %68 : vector<1x8x4xf32> to vector<8x4xf32>
    %cst_61 = arith.constant dense<0.000000e+00> : vector<64x4xf32>
    %70 = tpu.matmul %54, %69, %cst_61 {dimension_numbers = #tpu.dot_dimension_numbers<[1], [0], [0], [1], [0, 0, 1, 1], [], []>} : vector<64x8xf32>, vector<8x4xf32>, vector<64x4xf32> -> vector<64x4xf32>
    %c2_62 = arith.constant 2 : index
    %c0_63 = arith.constant 0 : index
    %c0_64 = arith.constant 0 : index
    %71 = vector.load %arg5[%c2_62, %c0_63, %c0_64] : memref<3x32x64xf32, #tpu.memory_space<vmem>>, vector<1x32x64xf32>
    %72 = vector.shape_cast %71 : vector<1x32x64xf32> to vector<32x64xf32>
    %cst_65 = arith.constant dense<0.000000e+00> : vector<32x4xf32>
    %73 = tpu.matmul %72, %70, %cst_65 {dimension_numbers = #tpu.dot_dimension_numbers<[1], [0], [0], [1], [0, 0, 1, 1], [], []>} : vector<32x64xf32>, vector<64x4xf32>, vector<32x4xf32> -> vector<32x4xf32>
    %74 = arith.addf %67, %73 : vector<32x4xf32>
    %c0_66 = arith.constant 0 : index
    %c0_67 = arith.constant 0 : index
    %75 = vector.load %arg21[%c0_66, %c0_67] : memref<4x32xf32, #tpu.memory_space<vmem>>, vector<4x32xf32>
    %c0_68 = arith.constant 0 : index
    %c0_69 = arith.constant 0 : index
    %76 = vector.load %arg22[%c0_68, %c0_69] : memref<32x4xf32, #tpu.memory_space<vmem>>, vector<32x4xf32>
    %cst_70 = arith.constant 1.000000e+00 : f32
    %77 = vector.broadcast %cst_70 : f32 to vector<4x4xf32>
    %cst_71 = arith.constant dense<0.000000e+00> : vector<4x4xf32>
    %78 = tpu.matmul %75, %74, %cst_71 {dimension_numbers = #tpu.dot_dimension_numbers<[1], [0], [0], [1], [0, 0, 1, 1], [], []>} : vector<4x32xf32>, vector<32x4xf32>, vector<4x4xf32> -> vector<4x4xf32>
    %cst_72 = arith.constant dense<0.000000e+00> : vector<4xf32>
    %79 = vector.multi_reduction <add>, %78, %cst_72 [1] : vector<4x4xf32> to vector<4xf32>
    %80 = vector.shape_cast %79 : vector<4xf32> to vector<4x1xf32>
    %cst_73 = arith.constant 3.125000e-02 : f32
    %81 = vector.broadcast %cst_73 : f32 to vector<4x1xf32>
    %82 = arith.mulf %80, %81 : vector<4x1xf32>
    %83 = vector.broadcast %82 : vector<4x1xf32> to vector<4x4xf32>
    %84 = arith.mulf %83, %77 : vector<4x4xf32>
    %cst_74 = arith.constant dense<0.000000e+00> : vector<32x4xf32>
    %85 = tpu.matmul %76, %84, %cst_74 {dimension_numbers = #tpu.dot_dimension_numbers<[1], [0], [0], [1], [0, 0, 1, 1], [], []>} : vector<32x4xf32>, vector<4x4xf32>, vector<32x4xf32> -> vector<32x4xf32>
    %86 = arith.subf %74, %85 : vector<32x4xf32>
    %87 = arith.mulf %86, %86 : vector<32x4xf32>
    %cst_75 = arith.constant dense<0.000000e+00> : vector<4x4xf32>
    %88 = tpu.matmul %75, %87, %cst_75 {dimension_numbers = #tpu.dot_dimension_numbers<[1], [0], [0], [1], [0, 0, 1, 1], [], []>} : vector<4x32xf32>, vector<32x4xf32>, vector<4x4xf32> -> vector<4x4xf32>
    %cst_76 = arith.constant dense<0.000000e+00> : vector<4xf32>
    %89 = vector.multi_reduction <add>, %88, %cst_76 [1] : vector<4x4xf32> to vector<4xf32>
    %90 = vector.shape_cast %89 : vector<4xf32> to vector<4x1xf32>
    %cst_77 = arith.constant 3.125000e-02 : f32
    %91 = vector.broadcast %cst_77 : f32 to vector<4x1xf32>
    %92 = arith.mulf %90, %91 : vector<4x1xf32>
    %c0_78 = arith.constant 0 : index
    %c0_79 = arith.constant 0 : index
    %93 = vector.load %arg7[%c0_78, %c0_79] : memref<4x1xf32, #tpu.memory_space<vmem>>, vector<4x1xf32>
    %cst_80 = arith.constant 9.99999974E-6 : f32
    %94 = vector.broadcast %cst_80 : f32 to vector<4x1xf32>
    %95 = arith.addf %92, %94 : vector<4x1xf32>
    %96 = math.rsqrt %95 : vector<4x1xf32>
    %97 = arith.mulf %93, %96 : vector<4x1xf32>
    %98 = vector.broadcast %97 : vector<4x1xf32> to vector<4x4xf32>
    %99 = arith.mulf %98, %77 : vector<4x4xf32>
    %cst_81 = arith.constant dense<0.000000e+00> : vector<32x4xf32>
    %100 = tpu.matmul %76, %99, %cst_81 {dimension_numbers = #tpu.dot_dimension_numbers<[1], [0], [0], [1], [0, 0, 1, 1], [], []>} : vector<32x4xf32>, vector<4x4xf32>, vector<32x4xf32> -> vector<32x4xf32>
    %c0_82 = arith.constant 0 : index
    %c0_83 = arith.constant 0 : index
    %101 = vector.load %arg8[%c0_82, %c0_83] : memref<4x1xf32, #tpu.memory_space<vmem>>, vector<4x1xf32>
    %102 = vector.broadcast %101 : vector<4x1xf32> to vector<4x4xf32>
    %103 = arith.mulf %102, %77 : vector<4x4xf32>
    %cst_84 = arith.constant dense<0.000000e+00> : vector<32x4xf32>
    %104 = tpu.matmul %76, %103, %cst_84 {dimension_numbers = #tpu.dot_dimension_numbers<[1], [0], [0], [1], [0, 0, 1, 1], [], []>} : vector<32x4xf32>, vector<4x4xf32>, vector<32x4xf32> -> vector<32x4xf32>
    %105 = arith.mulf %86, %100 : vector<32x4xf32>
    %106 = arith.addf %105, %104 : vector<32x4xf32>
    %cst_85 = arith.constant 0.000000e+00 : f32
    %107 = vector.broadcast %cst_85 : f32 to vector<32x4xf32>
    %108 = arith.maximumf %106, %107 : vector<32x4xf32>
    %c0_86 = arith.constant 0 : index
    %c0_87 = arith.constant 0 : index
    %c0_88 = arith.constant 0 : index
    %109 = vector.load %arg14[%c0_86, %c0_87, %c0_88] : memref<3x4x8xf32, #tpu.memory_space<vmem>>, vector<1x4x8xf32>
    %110 = vector.shape_cast %109 : vector<1x4x8xf32> to vector<4x8xf32>
    %cst_89 = arith.constant dense<0.000000e+00> : vector<32x8xf32>
    %111 = tpu.matmul %108, %110, %cst_89 {dimension_numbers = #tpu.dot_dimension_numbers<[1], [0], [0], [1], [0, 0, 1, 1], [], []>} : vector<32x4xf32>, vector<4x8xf32>, vector<32x8xf32> -> vector<32x8xf32>
    %c0_90 = arith.constant 0 : index
    %c0_91 = arith.constant 0 : index
    %c0_92 = arith.constant 0 : index
    %112 = vector.load %arg13[%c0_90, %c0_91, %c0_92] : memref<3x64x32xf32, #tpu.memory_space<vmem>>, vector<1x64x32xf32>
    %113 = vector.shape_cast %112 : vector<1x64x32xf32> to vector<64x32xf32>
    %cst_93 = arith.constant dense<0.000000e+00> : vector<64x8xf32>
    %114 = tpu.matmul %113, %111, %cst_93 {dimension_numbers = #tpu.dot_dimension_numbers<[1], [0], [0], [1], [0, 0, 1, 1], [], []>} : vector<64x32xf32>, vector<32x8xf32>, vector<64x8xf32> -> vector<64x8xf32>
    %c1_94 = arith.constant 1 : index
    %c0_95 = arith.constant 0 : index
    %c0_96 = arith.constant 0 : index
    %115 = vector.load %arg14[%c1_94, %c0_95, %c0_96] : memref<3x4x8xf32, #tpu.memory_space<vmem>>, vector<1x4x8xf32>
    %116 = vector.shape_cast %115 : vector<1x4x8xf32> to vector<4x8xf32>
    %cst_97 = arith.constant dense<0.000000e+00> : vector<32x8xf32>
    %117 = tpu.matmul %108, %116, %cst_97 {dimension_numbers = #tpu.dot_dimension_numbers<[1], [0], [0], [1], [0, 0, 1, 1], [], []>} : vector<32x4xf32>, vector<4x8xf32>, vector<32x8xf32> -> vector<32x8xf32>
    %c1_98 = arith.constant 1 : index
    %c0_99 = arith.constant 0 : index
    %c0_100 = arith.constant 0 : index
    %118 = vector.load %arg13[%c1_98, %c0_99, %c0_100] : memref<3x64x32xf32, #tpu.memory_space<vmem>>, vector<1x64x32xf32>
    %119 = vector.shape_cast %118 : vector<1x64x32xf32> to vector<64x32xf32>
    %cst_101 = arith.constant dense<0.000000e+00> : vector<64x8xf32>
    %120 = tpu.matmul %119, %117, %cst_101 {dimension_numbers = #tpu.dot_dimension_numbers<[1], [0], [0], [1], [0, 0, 1, 1], [], []>} : vector<64x32xf32>, vector<32x8xf32>, vector<64x8xf32> -> vector<64x8xf32>
    %121 = arith.addf %114, %120 : vector<64x8xf32>
    %c2_102 = arith.constant 2 : index
    %c0_103 = arith.constant 0 : index
    %c0_104 = arith.constant 0 : index
    %122 = vector.load %arg14[%c2_102, %c0_103, %c0_104] : memref<3x4x8xf32, #tpu.memory_space<vmem>>, vector<1x4x8xf32>
    %123 = vector.shape_cast %122 : vector<1x4x8xf32> to vector<4x8xf32>
    %cst_105 = arith.constant dense<0.000000e+00> : vector<32x8xf32>
    %124 = tpu.matmul %108, %123, %cst_105 {dimension_numbers = #tpu.dot_dimension_numbers<[1], [0], [0], [1], [0, 0, 1, 1], [], []>} : vector<32x4xf32>, vector<4x8xf32>, vector<32x8xf32> -> vector<32x8xf32>
    %c2_106 = arith.constant 2 : index
    %c0_107 = arith.constant 0 : index
    %c0_108 = arith.constant 0 : index
    %125 = vector.load %arg13[%c2_106, %c0_107, %c0_108] : memref<3x64x32xf32, #tpu.memory_space<vmem>>, vector<1x64x32xf32>
    %126 = vector.shape_cast %125 : vector<1x64x32xf32> to vector<64x32xf32>
    %cst_109 = arith.constant dense<0.000000e+00> : vector<64x8xf32>
    %127 = tpu.matmul %126, %124, %cst_109 {dimension_numbers = #tpu.dot_dimension_numbers<[1], [0], [0], [1], [0, 0, 1, 1], [], []>} : vector<64x32xf32>, vector<32x8xf32>, vector<64x8xf32> -> vector<64x8xf32>
    %128 = arith.addf %121, %127 : vector<64x8xf32>
    %c0_110 = arith.constant 0 : index
    %c0_111 = arith.constant 0 : index
    %129 = vector.load %arg19[%c0_110, %c0_111] : memref<4x64xf32, #tpu.memory_space<vmem>>, vector<4x64xf32>
    %c0_112 = arith.constant 0 : index
    %c0_113 = arith.constant 0 : index
    %130 = vector.load %arg20[%c0_112, %c0_113] : memref<64x4xf32, #tpu.memory_space<vmem>>, vector<64x4xf32>
    %cst_114 = arith.constant 1.000000e+00 : f32
    %131 = vector.broadcast %cst_114 : f32 to vector<4x8xf32>
    %cst_115 = arith.constant dense<0.000000e+00> : vector<4x8xf32>
    %132 = tpu.matmul %129, %128, %cst_115 {dimension_numbers = #tpu.dot_dimension_numbers<[1], [0], [0], [1], [0, 0, 1, 1], [], []>} : vector<4x64xf32>, vector<64x8xf32>, vector<4x8xf32> -> vector<4x8xf32>
    %cst_116 = arith.constant dense<0.000000e+00> : vector<4xf32>
    %133 = vector.multi_reduction <add>, %132, %cst_116 [1] : vector<4x8xf32> to vector<4xf32>
    %134 = vector.shape_cast %133 : vector<4xf32> to vector<4x1xf32>
    %cst_117 = arith.constant 7.812500e-03 : f32
    %135 = vector.broadcast %cst_117 : f32 to vector<4x1xf32>
    %136 = arith.mulf %134, %135 : vector<4x1xf32>
    %137 = vector.broadcast %136 : vector<4x1xf32> to vector<4x8xf32>
    %138 = arith.mulf %137, %131 : vector<4x8xf32>
    %cst_118 = arith.constant dense<0.000000e+00> : vector<64x8xf32>
    %139 = tpu.matmul %130, %138, %cst_118 {dimension_numbers = #tpu.dot_dimension_numbers<[1], [0], [0], [1], [0, 0, 1, 1], [], []>} : vector<64x4xf32>, vector<4x8xf32>, vector<64x8xf32> -> vector<64x8xf32>
    %140 = arith.subf %128, %139 : vector<64x8xf32>
    %141 = arith.mulf %140, %140 : vector<64x8xf32>
    %cst_119 = arith.constant dense<0.000000e+00> : vector<4x8xf32>
    %142 = tpu.matmul %129, %141, %cst_119 {dimension_numbers = #tpu.dot_dimension_numbers<[1], [0], [0], [1], [0, 0, 1, 1], [], []>} : vector<4x64xf32>, vector<64x8xf32>, vector<4x8xf32> -> vector<4x8xf32>
    %cst_120 = arith.constant dense<0.000000e+00> : vector<4xf32>
    %143 = vector.multi_reduction <add>, %142, %cst_120 [1] : vector<4x8xf32> to vector<4xf32>
    %144 = vector.shape_cast %143 : vector<4xf32> to vector<4x1xf32>
    %cst_121 = arith.constant 7.812500e-03 : f32
    %145 = vector.broadcast %cst_121 : f32 to vector<4x1xf32>
    %146 = arith.mulf %144, %145 : vector<4x1xf32>
    %c0_122 = arith.constant 0 : index
    %c0_123 = arith.constant 0 : index
    %147 = vector.load %arg15[%c0_122, %c0_123] : memref<4x1xf32, #tpu.memory_space<vmem>>, vector<4x1xf32>
    %cst_124 = arith.constant 9.99999974E-6 : f32
    %148 = vector.broadcast %cst_124 : f32 to vector<4x1xf32>
    %149 = arith.addf %146, %148 : vector<4x1xf32>
    %150 = math.rsqrt %149 : vector<4x1xf32>
    %151 = arith.mulf %147, %150 : vector<4x1xf32>
    %152 = vector.broadcast %151 : vector<4x1xf32> to vector<4x8xf32>
    %153 = arith.mulf %152, %131 : vector<4x8xf32>
    %cst_125 = arith.constant dense<0.000000e+00> : vector<64x8xf32>
    %154 = tpu.matmul %130, %153, %cst_125 {dimension_numbers = #tpu.dot_dimension_numbers<[1], [0], [0], [1], [0, 0, 1, 1], [], []>} : vector<64x4xf32>, vector<4x8xf32>, vector<64x8xf32> -> vector<64x8xf32>
    %c0_126 = arith.constant 0 : index
    %c0_127 = arith.constant 0 : index
    %155 = vector.load %arg16[%c0_126, %c0_127] : memref<4x1xf32, #tpu.memory_space<vmem>>, vector<4x1xf32>
    %156 = vector.broadcast %155 : vector<4x1xf32> to vector<4x8xf32>
    %157 = arith.mulf %156, %131 : vector<4x8xf32>
    %cst_128 = arith.constant dense<0.000000e+00> : vector<64x8xf32>
    %158 = tpu.matmul %130, %157, %cst_128 {dimension_numbers = #tpu.dot_dimension_numbers<[1], [0], [0], [1], [0, 0, 1, 1], [], []>} : vector<64x4xf32>, vector<4x8xf32>, vector<64x8xf32> -> vector<64x8xf32>
    %159 = arith.mulf %140, %154 : vector<64x8xf32>
    %160 = arith.addf %159, %158 : vector<64x8xf32>
    %cst_129 = arith.constant 0.000000e+00 : f32
    %161 = vector.broadcast %cst_129 : f32 to vector<64x8xf32>
    %162 = arith.maximumf %160, %161 : vector<64x8xf32>
    %163 = arith.addf %54, %162 : vector<64x8xf32>
    %c0_130 = arith.constant 0 : index
    %c0_131 = arith.constant 0 : index
    %c0_132 = arith.constant 0 : index
    %164 = vector.load %arg10[%c0_130, %c0_131, %c0_132] : memref<3x8x16xf32, #tpu.memory_space<vmem>>, vector<1x8x16xf32>
    %165 = vector.shape_cast %164 : vector<1x8x16xf32> to vector<8x16xf32>
    %cst_133 = arith.constant dense<0.000000e+00> : vector<64x16xf32>
    %166 = tpu.matmul %163, %165, %cst_133 {dimension_numbers = #tpu.dot_dimension_numbers<[1], [0], [0], [1], [0, 0, 1, 1], [], []>} : vector<64x8xf32>, vector<8x16xf32>, vector<64x16xf32> -> vector<64x16xf32>
    %c0_134 = arith.constant 0 : index
    %c0_135 = arith.constant 0 : index
    %c0_136 = arith.constant 0 : index
    %167 = vector.load %arg9[%c0_134, %c0_135, %c0_136] : memref<3x128x64xf32, #tpu.memory_space<vmem>>, vector<1x128x64xf32>
    %168 = vector.shape_cast %167 : vector<1x128x64xf32> to vector<128x64xf32>
    %cst_137 = arith.constant dense<0.000000e+00> : vector<128x16xf32>
    %169 = tpu.matmul %168, %166, %cst_137 {dimension_numbers = #tpu.dot_dimension_numbers<[1], [0], [0], [1], [0, 0, 1, 1], [], []>} : vector<128x64xf32>, vector<64x16xf32>, vector<128x16xf32> -> vector<128x16xf32>
    %c1_138 = arith.constant 1 : index
    %c0_139 = arith.constant 0 : index
    %c0_140 = arith.constant 0 : index
    %170 = vector.load %arg10[%c1_138, %c0_139, %c0_140] : memref<3x8x16xf32, #tpu.memory_space<vmem>>, vector<1x8x16xf32>
    %171 = vector.shape_cast %170 : vector<1x8x16xf32> to vector<8x16xf32>
    %cst_141 = arith.constant dense<0.000000e+00> : vector<64x16xf32>
    %172 = tpu.matmul %163, %171, %cst_141 {dimension_numbers = #tpu.dot_dimension_numbers<[1], [0], [0], [1], [0, 0, 1, 1], [], []>} : vector<64x8xf32>, vector<8x16xf32>, vector<64x16xf32> -> vector<64x16xf32>
    %c1_142 = arith.constant 1 : index
    %c0_143 = arith.constant 0 : index
    %c0_144 = arith.constant 0 : index
    %173 = vector.load %arg9[%c1_142, %c0_143, %c0_144] : memref<3x128x64xf32, #tpu.memory_space<vmem>>, vector<1x128x64xf32>
    %174 = vector.shape_cast %173 : vector<1x128x64xf32> to vector<128x64xf32>
    %cst_145 = arith.constant dense<0.000000e+00> : vector<128x16xf32>
    %175 = tpu.matmul %174, %172, %cst_145 {dimension_numbers = #tpu.dot_dimension_numbers<[1], [0], [0], [1], [0, 0, 1, 1], [], []>} : vector<128x64xf32>, vector<64x16xf32>, vector<128x16xf32> -> vector<128x16xf32>
    %176 = arith.addf %169, %175 : vector<128x16xf32>
    %c2_146 = arith.constant 2 : index
    %c0_147 = arith.constant 0 : index
    %c0_148 = arith.constant 0 : index
    %177 = vector.load %arg10[%c2_146, %c0_147, %c0_148] : memref<3x8x16xf32, #tpu.memory_space<vmem>>, vector<1x8x16xf32>
    %178 = vector.shape_cast %177 : vector<1x8x16xf32> to vector<8x16xf32>
    %cst_149 = arith.constant dense<0.000000e+00> : vector<64x16xf32>
    %179 = tpu.matmul %163, %178, %cst_149 {dimension_numbers = #tpu.dot_dimension_numbers<[1], [0], [0], [1], [0, 0, 1, 1], [], []>} : vector<64x8xf32>, vector<8x16xf32>, vector<64x16xf32> -> vector<64x16xf32>
    %c2_150 = arith.constant 2 : index
    %c0_151 = arith.constant 0 : index
    %c0_152 = arith.constant 0 : index
    %180 = vector.load %arg9[%c2_150, %c0_151, %c0_152] : memref<3x128x64xf32, #tpu.memory_space<vmem>>, vector<1x128x64xf32>
    %181 = vector.shape_cast %180 : vector<1x128x64xf32> to vector<128x64xf32>
    %cst_153 = arith.constant dense<0.000000e+00> : vector<128x16xf32>
    %182 = tpu.matmul %181, %179, %cst_153 {dimension_numbers = #tpu.dot_dimension_numbers<[1], [0], [0], [1], [0, 0, 1, 1], [], []>} : vector<128x64xf32>, vector<64x16xf32>, vector<128x16xf32> -> vector<128x16xf32>
    %183 = arith.addf %176, %182 : vector<128x16xf32>
    %c0_154 = arith.constant 0 : index
    %c0_155 = arith.constant 0 : index
    %184 = vector.load %arg17[%c0_154, %c0_155] : memref<4x128xf32, #tpu.memory_space<vmem>>, vector<4x128xf32>
    %c0_156 = arith.constant 0 : index
    %c0_157 = arith.constant 0 : index
    %185 = vector.load %arg18[%c0_156, %c0_157] : memref<128x4xf32, #tpu.memory_space<vmem>>, vector<128x4xf32>
    %cst_158 = arith.constant 1.000000e+00 : f32
    %186 = vector.broadcast %cst_158 : f32 to vector<4x16xf32>
    %cst_159 = arith.constant dense<0.000000e+00> : vector<4x16xf32>
    %187 = tpu.matmul %184, %183, %cst_159 {dimension_numbers = #tpu.dot_dimension_numbers<[1], [0], [0], [1], [0, 0, 1, 1], [], []>} : vector<4x128xf32>, vector<128x16xf32>, vector<4x16xf32> -> vector<4x16xf32>
    %cst_160 = arith.constant dense<0.000000e+00> : vector<4xf32>
    %188 = vector.multi_reduction <add>, %187, %cst_160 [1] : vector<4x16xf32> to vector<4xf32>
    %189 = vector.shape_cast %188 : vector<4xf32> to vector<4x1xf32>
    %cst_161 = arith.constant 0.001953125 : f32
    %190 = vector.broadcast %cst_161 : f32 to vector<4x1xf32>
    %191 = arith.mulf %189, %190 : vector<4x1xf32>
    %192 = vector.broadcast %191 : vector<4x1xf32> to vector<4x16xf32>
    %193 = arith.mulf %192, %186 : vector<4x16xf32>
    %cst_162 = arith.constant dense<0.000000e+00> : vector<128x16xf32>
    %194 = tpu.matmul %185, %193, %cst_162 {dimension_numbers = #tpu.dot_dimension_numbers<[1], [0], [0], [1], [0, 0, 1, 1], [], []>} : vector<128x4xf32>, vector<4x16xf32>, vector<128x16xf32> -> vector<128x16xf32>
    %195 = arith.subf %183, %194 : vector<128x16xf32>
    %196 = arith.mulf %195, %195 : vector<128x16xf32>
    %cst_163 = arith.constant dense<0.000000e+00> : vector<4x16xf32>
    %197 = tpu.matmul %184, %196, %cst_163 {dimension_numbers = #tpu.dot_dimension_numbers<[1], [0], [0], [1], [0, 0, 1, 1], [], []>} : vector<4x128xf32>, vector<128x16xf32>, vector<4x16xf32> -> vector<4x16xf32>
    %cst_164 = arith.constant dense<0.000000e+00> : vector<4xf32>
    %198 = vector.multi_reduction <add>, %197, %cst_164 [1] : vector<4x16xf32> to vector<4xf32>
    %199 = vector.shape_cast %198 : vector<4xf32> to vector<4x1xf32>
    %cst_165 = arith.constant 0.001953125 : f32
    %200 = vector.broadcast %cst_165 : f32 to vector<4x1xf32>
    %201 = arith.mulf %199, %200 : vector<4x1xf32>
    %c0_166 = arith.constant 0 : index
    %c0_167 = arith.constant 0 : index
    %202 = vector.load %arg11[%c0_166, %c0_167] : memref<4x1xf32, #tpu.memory_space<vmem>>, vector<4x1xf32>
    %cst_168 = arith.constant 9.99999974E-6 : f32
    %203 = vector.broadcast %cst_168 : f32 to vector<4x1xf32>
    %204 = arith.addf %201, %203 : vector<4x1xf32>
    %205 = math.rsqrt %204 : vector<4x1xf32>
    %206 = arith.mulf %202, %205 : vector<4x1xf32>
    %207 = vector.broadcast %206 : vector<4x1xf32> to vector<4x16xf32>
    %208 = arith.mulf %207, %186 : vector<4x16xf32>
    %cst_169 = arith.constant dense<0.000000e+00> : vector<128x16xf32>
    %209 = tpu.matmul %185, %208, %cst_169 {dimension_numbers = #tpu.dot_dimension_numbers<[1], [0], [0], [1], [0, 0, 1, 1], [], []>} : vector<128x4xf32>, vector<4x16xf32>, vector<128x16xf32> -> vector<128x16xf32>
    %c0_170 = arith.constant 0 : index
    %c0_171 = arith.constant 0 : index
    %210 = vector.load %arg12[%c0_170, %c0_171] : memref<4x1xf32, #tpu.memory_space<vmem>>, vector<4x1xf32>
    %211 = vector.broadcast %210 : vector<4x1xf32> to vector<4x16xf32>
    %212 = arith.mulf %211, %186 : vector<4x16xf32>
    %cst_172 = arith.constant dense<0.000000e+00> : vector<128x16xf32>
    %213 = tpu.matmul %185, %212, %cst_172 {dimension_numbers = #tpu.dot_dimension_numbers<[1], [0], [0], [1], [0, 0, 1, 1], [], []>} : vector<128x4xf32>, vector<4x16xf32>, vector<128x16xf32> -> vector<128x16xf32>
    %214 = arith.mulf %195, %209 : vector<128x16xf32>
    %215 = arith.addf %214, %213 : vector<128x16xf32>
    %cst_173 = arith.constant 0.000000e+00 : f32
    %216 = vector.broadcast %cst_173 : f32 to vector<128x16xf32>
    %217 = arith.maximumf %215, %216 : vector<128x16xf32>
    %218 = arith.addf %0, %217 : vector<128x16xf32>
    %c0_174 = arith.constant 0 : index
    %c0_175 = arith.constant 0 : index
    %219 = vector.load %arg23[%c0_174, %c0_175] : memref<128x16xf32, #tpu.memory_space<vmem>>, vector<128x16xf32>
    tpu.vector_store %arg23[%c0_174, %c0_175], %218 {strides = array<i32>} : memref<128x16xf32, #tpu.memory_space<vmem>>, vector<128x16xf32>,
    return
  }
}

</mosaic_0001>

<bundles_post_ra>
// kernel: multi_scale_forward.1
= control target key start
LH: loop header
LB: loop body
LE: loop exit
PB: predicated region body
PF: predicated region fallthrough
CT: control target
= control target key end

     0   :  { %s5052_s0 = inlined_call_operand.vmem [shape: f32[128,16], index: 0, kind: input, shape index: {}]   ;;  %s5053_s1 = inlined_call_operand.vmem [shape: f32[3,64,128], index: 1, kind: input, shape index: {}]   ;;  %s5054_s2 = inlined_call_operand.vmem [shape: f32[3,16,8], index: 2, kind: input, shape index: {}]   ;;  %s5055_s3 = inlined_call_operand.vmem [shape: f32[4,1], index: 3, kind: input, shape index: {}]   ;;  %s5056_s4 = inlined_call_operand.vmem [shape: f32[4,1], index: 4, kind: input, shape index: {}]   ;;  %s5057_s5 = inlined_call_operand.vmem [shape: f32[3,32,64], index: 5, kind: input, shape index: {}]   ;;  %s5058_s6 = inlined_call_operand.vmem [shape: f32[3,8,4], index: 6, kind: input, shape index: {}]   ;;  %s5059_s7 = inlined_call_operand.vmem [shape: f32[4,1], index: 7, kind: input, shape index: {}]   ;;  %s5060_s8 = inlined_call_operand.vmem [shape: f32[4,1], index: 8, kind: input, shape index: {}]   ;;  %s5061_s9 = inlined_call_operand.vmem [shape: f32[3,128,64], index: 9, kind: input, shape index: {}]   ;;  %s5062_s10 = inlined_call_operand.vmem [shape: f32[3,8,16], index: 10, kind: input, shape index: {}]   ;;  %s5063_s11 = inlined_call_operand.vmem [shape: f32[4,1], index: 11, kind: input, shape index: {}]   ;;  %s5064_s12 = inlined_call_operand.vmem [shape: f32[4,1], index: 12, kind: input, shape index: {}]   ;;  %s5065_s13 = inlined_call_operand.vmem [shape: f32[3,64,32], index: 13, kind: input, shape index: {}]   ;;  %s5066_s14 = inlined_call_operand.vmem [shape: f32[3,4,8], index: 14, kind: input, shape index: {}]   ;;  %s5067_s15 = inlined_call_operand.vmem [shape: f32[4,1], index: 15, kind: input, shape index: {}]   ;;  %s5068_s16 = inlined_call_operand.vmem [shape: f32[4,1], index: 16, kind: input, shape index: {}]   ;;  %s5069_s17 = inlined_call_operand.vmem [shape: f32[4,128], index: 17, kind: input, shape index: {}]   ;;  %s5070_s18 = inlined_call_operand.vmem [shape: f32[128,4], index: 18, kind: input, shape index: {}]   ;;  %s5071_s19 = inlined_call_operand.vmem [shape: f32[4,64], index: 19, kind: input, shape index: {}]   ;;  %s5072_s20 = inlined_call_operand.vmem [shape: f32[64,4], index: 20, kind: input, shape index: {}]   ;;  %s5073_s21 = inlined_call_operand.vmem [shape: f32[4,32], index: 21, kind: input, shape index: {}]   ;;  %s5074_s22 = inlined_call_operand.vmem [shape: f32[32,4], index: 22, kind: input, shape index: {}]   ;;  %s5075_s23 = inlined_call_operand.hbm [shape: f32[128,16], index: 23, kind: output, shape index: {}]  }
   0x1   :  { %5081 = sst [smem:[#allocation5_spill]] %s5052_s0 }
   0x2   :  { %5082 = sst [smem:[#allocation6_spill]] %s5053_s1 }
   0x3   :  { %5083 = sst [smem:[#allocation7_spill]] %s5054_s2 }
   0x4   :  { %5084 = sst [smem:[#allocation8_spill]] %s5055_s3 }
   0x5   :  { %5085 = sst [smem:[#allocation9_spill]] %s5056_s4 }
   0x6   :  { %5086 = sst [smem:[#allocation10_spill]] %s5057_s5 }
   0x7   :  { %5087 = sst [smem:[#allocation11_spill]] %s5058_s6 }
   0x8   :  { %5088 = sst [smem:[#allocation12_spill]] %s5059_s7 }
   0x9   :  { %s5089_s24 = sld [smem:[#allocation7_spill]]  ;;  %vm93_vm0 = vcmask 130048  }
   0xa   :  { %s5090_s2 = sld [smem:[#allocation5_spill]] }
   0xf   :  { %v92_v0 = vld [vmem:[%s5089_s24 + $0x8] sm:$0xff]  ;;  %v91_v1 = vld [vmem:[%s5089_s24] sm:$0xff]  ;;  %v2912_v3 = vld [vmem:[%s5089_s24 + $0x18] sm:$0xff] }
  0x10   :  { %3298 = vmatpush.msra.mxu1 %v92_v0  ;;  %v3516_v2 = vld [vmem:[%s5090_s2 + $0x78] sm:$0xff]  ;;  %156 = vmatpush.msra.mxu0 %v92_v0  ;;  %v3524_v4 = vld [vmem:[%s5090_s2] sm:$0xff] }
  0x12   :  { %3299 = vmatpush.msra.mxu1 %v91_v1  ;;  %157 = vmatpush.msra.mxu0 %v91_v1 }
  0x13   :  { %28 = vsyncpa [#allocation3], 0  ;;  %2910 = vmatmul.msk.f32.vlgmr.msra.gmra.mxu1 %vm93_vm0, %v3516_v2  ;;  %v2911_v5 = vld [vmem:[%s5089_s24 + $0x10] sm:$0xff]  ;;  %2895 = vmatmul.msk.f32.vlgmr.msra.gmra.mxu0 %vm93_vm0, %v3524_v4  ;;  %v3536_v6 = vld [vmem:[%s5090_s2 + $0x8] sm:$0xff]  ;;  %s5091_s5 = sld [smem:[#allocation6_spill]]  ;;  %vm509_vm1 = vcmask 523264  }
  0x14   :  { %232 = vmatpush.msrb.mxu1 %v2912_v3  ;;  %v3545_v7 = vld [vmem:[%s5090_s2 + $0x10] sm:$0xff]  ;;  %v3554_v8 = vld [vmem:[%s5090_s2 + $0x18] sm:$0xff]  ;;  %v3563_v9 = vld [vmem:[%s5090_s2 + $0x20] sm:$0xff]  ;;  %vm533_vm2 = vcmask 60416   ;;  %vm563_vm3 = vcmask 1043456   ;;  %vm538_vm4 = vcmask 31744  }
  0x15   :  { %v3572_v10 = vld [vmem:[%s5090_s2 + $0x28] sm:$0xff]  ;;  %v3581_v11 = vld [vmem:[%s5090_s2 + $0x30] sm:$0xff]  ;;  %v3590_v12 = vld [vmem:[%s5090_s2 + $0x38] sm:$0xff]  ;;  %s5092_s28 = sld [smem:[#allocation9_spill]]  ;;  %vm781_vm8 = vcmask 64512   ;;  %vm1079_vm9 = vcmask 261120  }
  0x16   :  { %233 = vmatpush.msrb.mxu1 %v2911_v5  ;;  %v3599_v13 = vld [vmem:[%s5090_s2 + $0x40] sm:$0xff]  ;;  %v3608_v14 = vld [vmem:[%s5090_s2 + $0x48] sm:$0xff]  ;;  %v3617_v15 = vld [vmem:[%s5090_s2 + $0x50] sm:$0xff]  ;;  %s5093_s0 = sld [smem:[#allocation8_spill]]  ;;  %vm1103_vm10 = vcmask 27648  }
  0x17   :  { %v3626_v16 = vld [vmem:[%s5090_s2 + $0x58] sm:$0xff]  ;;  %v3635_v17 = vld [vmem:[%s5090_s2 + $0x60] sm:$0xff]  ;;  %v3644_v18 = vld [vmem:[%s5090_s2 + $0x68] sm:$0xff]  ;;  %s5094_s25 = sld [smem:[#allocation11_spill]] }
  0x18   :  { %v3653_v19 = vld [vmem:[%s5090_s2 + $0x70] sm:$0xff]  ;;  %v2938_v0 = vld [vmem:[%s5089_s24 + $0x28] sm:$0xff]  ;;  %v2937_v1 = vld [vmem:[%s5089_s24 + $0x20] sm:$0xff]  ;;  %s5095_s27 = sld [smem:[#allocation10_spill]] }
  0x19   :  { %v207_v52 = vld [vmem:[%s5091_s5] sm:$0xff]  ;;  %v208_v53 = vld [vmem:[%s5091_s5 + $0x8] sm:$0xff]  ;;  %v210_v54 = vld [vmem:[%s5091_s5 + $0x18] sm:$0xff]  ;;  %s5096_s4 = sld [smem:[#allocation12_spill]] }
  0x1a   :  { %v209_v55 = vld [vmem:[%s5091_s5 + $0x10] sm:$0xff]  ;;  %v2929_v56 = vld [vmem:[%s5091_s5 + $0x40] sm:$0xff]  ;;  %v2930_v58 = vld [vmem:[%s5091_s5 + $0x48] sm:$0xff] }
  0x1b   :  { %2913 = vmatmul.msk.f32.vlgmr.msrb.gmra.mxu1 %vm93_vm0, %v3524_v4  ;;  %2896 = vmatmul.msk.f32.gmra.mxu0 %vm93_vm0, %v3536_v6  ;;  %v211_v57 = vld [vmem:[%s5091_s5 + $0x20] sm:$0xff]  ;;  %v212_v59 = vld [vmem:[%s5091_s5 + $0x28] sm:$0xff]  ;;  %v2931_v60 = vld [vmem:[%s5091_s5 + $0x50] sm:$0xff] }
  0x1c   :  { %v213_v61 = vld [vmem:[%s5091_s5 + $0x30] sm:$0xff]  ;;  %v2932_v62 = vld [vmem:[%s5091_s5 + $0x58] sm:$0xff]  ;;  %v2933_v3 = vld [vmem:[%s5091_s5 + $0x60] sm:$0xff] }
  0x1d   :  { %v214_v63 = vld [vmem:[%s5091_s5 + $0x38] sm:$0xff]  ;;  %v2934_v5 = vld [vmem:[%s5091_s5 + $0x68] sm:$0xff] }
  0x23   :  { %2914 = vmatmul.msk.f32.gmra.mxu1 %vm93_vm0, %v3536_v6  ;;  %2897 = vmatmul.msk.f32.gmra.mxu0 %vm93_vm0, %v3545_v7 }
  0x2b   :  { %2915 = vmatmul.msk.f32.gmra.mxu1 %vm93_vm0, %v3545_v7  ;;  %2898 = vmatmul.msk.f32.gmra.mxu0 %vm93_vm0, %v3554_v8 }
  0x33   :  { %2916 = vmatmul.msk.f32.gmra.mxu1 %vm93_vm0, %v3554_v8  ;;  %2899 = vmatmul.msk.f32.gmra.mxu0 %vm93_vm0, %v3563_v9 }
  0x3b   :  { %2917 = vmatmul.msk.f32.gmra.mxu1 %vm93_vm0, %v3563_v9  ;;  %2900 = vmatmul.msk.f32.gmra.mxu0 %vm93_vm0, %v3572_v10 }
  0x43   :  { %2918 = vmatmul.msk.f32.gmra.mxu1 %vm93_vm0, %v3572_v10  ;;  %2901 = vmatmul.msk.f32.gmra.mxu0 %vm93_vm0, %v3581_v11 }
  0x4b   :  { %2919 = vmatmul.msk.f32.gmra.mxu1 %vm93_vm0, %v3581_v11  ;;  %2902 = vmatmul.msk.f32.gmra.mxu0 %vm93_vm0, %v3590_v12 }
  0x53   :  { %2920 = vmatmul.msk.f32.gmra.mxu1 %vm93_vm0, %v3590_v12  ;;  %2903 = vmatmul.msk.f32.gmra.mxu0 %vm93_vm0, %v3599_v13 }
  0x5b   :  { %2921 = vmatmul.msk.f32.gmra.mxu1 %vm93_vm0, %v3599_v13  ;;  %2904 = vmatmul.msk.f32.gmra.mxu0 %vm93_vm0, %v3608_v14 }
  0x63   :  { %2922 = vmatmul.msk.f32.gmra.mxu1 %vm93_vm0, %v3608_v14  ;;  %2905 = vmatmul.msk.f32.gmra.mxu0 %vm93_vm0, %v3617_v15 }
  0x6b   :  { %2923 = vmatmul.msk.f32.gmra.mxu1 %vm93_vm0, %v3617_v15  ;;  %2906 = vmatmul.msk.f32.gmra.mxu0 %vm93_vm0, %v3626_v16 }
  0x73   :  { %2924 = vmatmul.msk.f32.gmra.mxu1 %vm93_vm0, %v3626_v16  ;;  %2907 = vmatmul.msk.f32.gmra.mxu0 %vm93_vm0, %v3635_v17 }
  0x7b   :  { %2925 = vmatmul.msk.f32.gmra.mxu1 %vm93_vm0, %v3635_v17  ;;  %2908 = vmatmul.msk.f32.gmra.mxu0 %vm93_vm0, %v3644_v18 }
  0x83   :  { %2926 = vmatmul.msk.f32.gmra.mxu1 %vm93_vm0, %v3644_v18  ;;  %2909 = vmatmul.msk.f32.gmra.mxu0 %vm93_vm0, %v3653_v19 }
  0x8b   :  { %2927 = vmatmul.msk.f32.gmra.mxu1 %vm93_vm0, %v3653_v19 }
  0x90   :  { %v204_v20 = vpop.f32.mrf.mxu1  ;;  %v3661_v21 = vpop.f32.mrf.mxu0 }
  0x91   :  { %333 = vmatpush.msrb.mxu0 %v204_v20  ;;  %3300 = vmatpush.msra.mxu3 %v204_v20  ;;  %v2935_v20 = vld [vmem:[%s5091_s5 + $0x70] sm:$0xff] }
  0x93   :  { %2928 = vmatmul.msk.f32.gmra.mxu1 %vm93_vm0, %v3516_v2 }
  0x98   :  { %v3665_v22 = vpop.f32.mrf.mxu1  ;;  %v162_v23 = vpop.f32.mrf.mxu0 }
  0xa0   :  { %v3667_v24 = vpop.f32.mrf.mxu1  ;;  %v165_v25 = vpop.f32.mrf.mxu0 }
  0xa8   :  { %v3669_v26 = vpop.f32.mrf.mxu1  ;;  %v168_v27 = vpop.f32.mrf.mxu0 }
  0xb0   :  { %v3671_v28 = vpop.f32.mrf.mxu1  ;;  %v171_v29 = vpop.f32.mrf.mxu0 }
  0xb8   :  { %v3673_v30 = vpop.f32.mrf.mxu1  ;;  %v174_v31 = vpop.f32.mrf.mxu0 }
  0xc0   :  { %v250_v32 = vpop.f32.mrf.mxu1  ;;  %v177_v33 = vpop.f32.mrf.mxu0 }
  0xc8   :  { %v253_v34 = vpop.f32.mrf.mxu1  ;;  %v180_v35 = vpop.f32.mrf.mxu0 }
  0xd0   :  { %v256_v36 = vpop.f32.mrf.mxu1  ;;  %v183_v37 = vpop.f32.mrf.mxu0 }
  0xd8   :  { %v259_v38 = vpop.f32.mrf.mxu1  ;;  %v186_v39 = vpop.f32.mrf.mxu0 }
  0xe0   :  { %v262_v40 = vpop.f32.mrf.mxu1  ;;  %v189_v41 = vpop.f32.mrf.mxu0 }
  0xe8   :  { %v265_v42 = vpop.f32.mrf.mxu1  ;;  %v192_v43 = vpop.f32.mrf.mxu0 }
  0xf0   :  { %v268_v44 = vpop.f32.mrf.mxu1  ;;  %v195_v45 = vpop.f32.mrf.mxu0 }
  0xf8   :  { %v271_v46 = vpop.f32.mrf.mxu1  ;;  %v198_v47 = vpop.f32.mrf.mxu0 }
 0x100   :  { %v274_v48 = vpop.f32.mrf.mxu1  ;;  %v201_v49 = vpop.f32.mrf.mxu0 }
 0x101   :  { %334 = vmatpush.msrb.mxu0 %v201_v49  ;;  %3301 = vmatpush.msra.mxu3 %v201_v49 }
 0x103   :  { %335 = vmatpush.msrb.mxu0 %v198_v47  ;;  %3302 = vmatpush.msra.mxu3 %v198_v47 }
 0x105   :  { %336 = vmatpush.msrb.mxu0 %v195_v45  ;;  %3303 = vmatpush.msra.mxu3 %v195_v45 }
 0x107   :  { %337 = vmatpush.msrb.mxu0 %v192_v43  ;;  %3304 = vmatpush.msra.mxu3 %v192_v43 }
 0x108   :  { %v277_v50 = vpop.f32.mrf.mxu1 }
 0x109   :  { %338 = vmatpush.msrb.mxu0 %v189_v41  ;;  %3305 = vmatpush.msra.mxu3 %v189_v41 }
 0x10b   :  { %339 = vmatpush.msrb.mxu0 %v186_v39  ;;  %3306 = vmatpush.msra.mxu3 %v186_v39 }
 0x10d   :  { %340 = vmatpush.msrb.mxu0 %v183_v37  ;;  %3307 = vmatpush.msra.mxu3 %v183_v37  ;;  %v2962_v37 = vld [vmem:[%s5091_s5 + $0xb8] sm:$0xff] }
 0x10f   :  { %341 = vmatpush.msrb.mxu0 %v180_v35  ;;  %3308 = vmatpush.msra.mxu3 %v180_v35  ;;  %v2960_v35 = vld [vmem:[%s5091_s5 + $0xa8] sm:$0xff] }
 0x110   :  { %v280_v51 = vpop.f32.mrf.mxu1 }
 0x111   :  { %292 = vmatpush.msra.mxu2 %v280_v51  ;;  %342 = vmatpush.msrb.mxu0 %v177_v33 }
 0x112   :  { %3309 = vmatpush.msra.mxu3 %v177_v33  ;;  %v2958_v33 = vld [vmem:[%s5091_s5 + $0x98] sm:$0xff] }
 0x113   :  { %293 = vmatpush.msra.mxu2 %v277_v50  ;;  %343 = vmatpush.msrb.mxu0 %v174_v31 }
 0x114   :  { %3310 = vmatpush.msra.mxu3 %v174_v31  ;;  %v2956_v31 = vld [vmem:[%s5091_s5 + $0x88] sm:$0xff] }
 0x115   :  { %294 = vmatpush.msra.mxu2 %v274_v48  ;;  %344 = vmatpush.msrb.mxu0 %v171_v29 }
 0x116   :  { %3311 = vmatpush.msra.mxu3 %v171_v29 }
 0x117   :  { %295 = vmatpush.msra.mxu2 %v271_v46  ;;  %345 = vmatpush.msrb.mxu0 %v168_v27 }
 0x118   :  { %3312 = vmatpush.msra.mxu3 %v168_v27 }
 0x119   :  { %296 = vmatpush.msra.mxu2 %v268_v44  ;;  %346 = vmatpush.msrb.mxu0 %v165_v25 }
 0x11a   :  { %3313 = vmatpush.msra.mxu3 %v165_v25 }
 0x11b   :  { %297 = vmatpush.msra.mxu2 %v265_v42  ;;  %347 = vmatpush.msrb.mxu0 %v162_v23 }
 0x11c   :  { %3314 = vmatpush.msra.mxu3 %v162_v23 }
 0x11d   :  { %298 = vmatpush.msra.mxu2 %v262_v40  ;;  %348 = vmatpush.msrb.mxu0 %v3661_v21 }
 0x11e   :  { %349 = vmatmul.f32.vlgmr.msrb.gmra.mxu0 %v207_v52  ;;  %3315 = vmatpush.msra.mxu3 %v3661_v21  ;;  %v2936_v21 = vld [vmem:[%s5091_s5 + $0x78] sm:$0xff] }
 0x11f   :  { %299 = vmatpush.msra.mxu2 %v259_v38  ;;  %358 = vmatmul.f32.vlgmr.msra.gmra.mxu3 %v210_v54 }
 0x121   :  { %300 = vmatpush.msra.mxu2 %v256_v36  ;;  %v2961_v36 = vld [vmem:[%s5091_s5 + $0xb0] sm:$0xff] }
 0x123   :  { %301 = vmatpush.msra.mxu2 %v253_v34  ;;  %v2959_v34 = vld [vmem:[%s5091_s5 + $0xa0] sm:$0xff] }
 0x125   :  { %302 = vmatpush.msra.mxu2 %v250_v32  ;;  %v2957_v32 = vld [vmem:[%s5091_s5 + $0x90] sm:$0xff] }
 0x126   :  { %352 = vmatmul.f32.gmra.mxu0 %v208_v53 }
 0x127   :  { %303 = vmatpush.msra.mxu2 %v3673_v30  ;;  %361 = vmatmul.f32.gmra.mxu3 %v211_v57 }
 0x129   :  { %304 = vmatpush.msra.mxu2 %v3671_v28 }
 0x12b   :  { %305 = vmatpush.msra.mxu2 %v3669_v26 }
 0x12d   :  { %306 = vmatpush.msra.mxu2 %v3667_v24 }
 0x12e   :  { %355 = vmatmul.f32.gmra.mxu0 %v209_v55 }
 0x12f   :  { %307 = vmatpush.msra.mxu2 %v3665_v22  ;;  %364 = vmatmul.f32.gmra.mxu3 %v212_v59 }
 0x130   :  { %308 = vmatmul.f32.vlgmr.msra.gmra.mxu2 %v2929_v56 }
 0x131   :  { %391 = vmatpush.msrb.mxu2 %v2938_v0 }
 0x133   :  { %392 = vmatpush.msrb.mxu2 %v2937_v1 }
 0x137   :  { %367 = vmatmul.f32.gmra.mxu3 %v213_v61 }
 0x138   :  { %311 = vmatmul.f32.gmra.mxu2 %v2930_v58 }
 0x13f   :  { %370 = vmatmul.f32.gmra.mxu3 %v214_v63 }
 0x140   :  { %314 = vmatmul.f32.gmra.mxu2 %v2931_v60 }
 0x148   :  { %317 = vmatmul.f32.gmra.mxu2 %v2932_v62 }
 0x150   :  { %320 = vmatmul.f32.gmra.mxu2 %v2933_v3 }
 0x158   :  { %323 = vmatmul.f32.gmra.mxu2 %v2934_v5 }
 0x160   :  { %326 = vmatmul.f32.gmra.mxu2 %v2935_v20 }
 0x168   :  { %329 = vmatmul.f32.gmra.mxu2 %v2936_v21 }
 0x170   :  { %2939 = vmatmul.msk.f32.vlgmr.msrb.gmra.mxu2 %vm93_vm0, %v3524_v4 }
 0x178   :  { %2940 = vmatmul.msk.f32.gmra.mxu2 %vm93_vm0, %v3536_v6 }
 0x180   :  { %2941 = vmatmul.msk.f32.gmra.mxu2 %vm93_vm0, %v3545_v7 }
 0x188   :  { %2942 = vmatmul.msk.f32.gmra.mxu2 %vm93_vm0, %v3554_v8 }
 0x190   :  { %2943 = vmatmul.msk.f32.gmra.mxu2 %vm93_vm0, %v3563_v9 }
 0x198   :  { %2944 = vmatmul.msk.f32.gmra.mxu2 %vm93_vm0, %v3572_v10 }
 0x19b   :  { %v350_v49 = vpop.f32.mrf.mxu0 }
 0x1a0   :  { %2945 = vmatmul.msk.f32.gmra.mxu2 %vm93_vm0, %v3581_v11 }
 0x1a2   :  { %v359_v38 = vpop.f32.mrf.mxu3 }
 0x1a3   :  { %v353_v51 = vpop.f32.mrf.mxu0 }
 0x1a8   :  { %2946 = vmatmul.msk.f32.gmra.mxu2 %vm93_vm0, %v3590_v12 }
 0x1aa   :  { %v362_v39 = vpop.f32.mrf.mxu3 }
 0x1ab   :  { %v356_v60 = vpop.f32.mrf.mxu0 }
 0x1b0   :  { %2947 = vmatmul.msk.f32.gmra.mxu2 %vm93_vm0, %v3599_v13 }
 0x1b2   :  { %v365_v40 = vpop.f32.mrf.mxu3 }
 0x1b3   :  { %v3754_v4 = vpop.f32.mrf.mxu2 }
 0x1b4   :  { %v351_v5 = vadd.f32 %v350_v49, %v3754_v4 }
 0x1b8   :  { %2948 = vmatmul.msk.f32.gmra.mxu2 %vm93_vm0, %v3608_v14 }
 0x1ba   :  { %v368_v41 = vpop.f32.mrf.mxu3 }
 0x1bb   :  { %v3758_v6 = vpop.f32.mrf.mxu2 }
 0x1bc   :  { %v354_v1 = vadd.f32 %v353_v51, %v3758_v6 }
 0x1c0   :  { %2949 = vmatmul.msk.f32.gmra.mxu2 %vm93_vm0, %v3617_v15 }
 0x1c2   :  { %v371_v42 = vpop.f32.mrf.mxu3 }
 0x1c3   :  { %v3762_v7 = vpop.f32.mrf.mxu2 }
 0x1c4   :  { %v357_v63 = vadd.f32 %v356_v60, %v3762_v7 }
 0x1c8   :  { %2950 = vmatmul.msk.f32.gmra.mxu2 %vm93_vm0, %v3626_v16 }
 0x1cb   :  { %v3766_v8 = vpop.f32.mrf.mxu2 }
 0x1cc   :  { %v360_v61 = vadd.f32 %v359_v38, %v3766_v8  ;;  %v3819_v8 = vld [vmem:[%s5071_s19] sm:$0xf] }
 0x1d0   :  { %2951 = vmatmul.msk.f32.gmra.mxu2 %vm93_vm0, %v3635_v17 }
 0x1d3   :  { %v3770_v9 = vpop.f32.mrf.mxu2 }
 0x1d4   :  { %v363_v58 = vadd.f32 %v362_v39, %v3770_v9 }
 0x1d8   :  { %2952 = vmatmul.msk.f32.gmra.mxu2 %vm93_vm0, %v3644_v18 }
 0x1db   :  { %v3774_v10 = vpop.f32.mrf.mxu2 }
 0x1dc   :  { %v366_v56 = vadd.f32 %v365_v40, %v3774_v10  ;;  %v3827_v10 = vld [vmem:[%s5072_s20] sm:$0xff] }
 0x1e0   :  { %2953 = vmatmul.msk.f32.gmra.mxu2 %vm93_vm0, %v3653_v19 }
 0x1e3   :  { %v3778_v11 = vpop.f32.mrf.mxu2 }
 0x1e4   :  { %v369_v54 = vadd.f32 %v368_v41, %v3778_v11  ;;  %v3835_v11 = vld [vmem:[%s5072_s20 + $0x8] sm:$0xff] }
 0x1e8   :  { %2954 = vmatmul.msk.f32.gmra.mxu2 %vm93_vm0, %v3516_v2  ;;  %v2955_v2 = vld [vmem:[%s5091_s5 + $0x80] sm:$0xff] }
 0x1eb   :  { %v3782_v12 = vpop.f32.mrf.mxu2 }
 0x1ec   :  { %v372_v52 = vadd.f32 %v371_v42, %v3782_v12  ;;  %v3842_v12 = vld [vmem:[%s5072_s20 + $0x10] sm:$0xff] }
 0x1f3   :  { %v394_v13 = vpop.f32.mrf.mxu2 }
 0x1fb   :  { %v397_v14 = vpop.f32.mrf.mxu2 }
 0x203   :  { %v400_v15 = vpop.f32.mrf.mxu2 }
 0x20b   :  { %v403_v16 = vpop.f32.mrf.mxu2 }
 0x213   :  { %v406_v17 = vpop.f32.mrf.mxu2 }
 0x21b   :  { %v409_v22 = vpop.f32.mrf.mxu2 }
 0x223   :  { %v412_v23 = vpop.f32.mrf.mxu2 }
 0x22b   :  { %v415_v18 = vpop.f32.mrf.mxu2 }
 0x233   :  { %v418_v24 = vpop.f32.mrf.mxu2 }
 0x23b   :  { %v421_v25 = vpop.f32.mrf.mxu2 }
 0x243   :  { %v424_v26 = vpop.f32.mrf.mxu2 }
 0x24b   :  { %v427_v27 = vpop.f32.mrf.mxu2 }
 0x253   :  { %v430_v19 = vpop.f32.mrf.mxu2 }
 0x25b   :  { %v433_v28 = vpop.f32.mrf.mxu2 }
 0x263   :  { %v436_v29 = vpop.f32.mrf.mxu2 }
 0x26b   :  { %v439_v30 = vpop.f32.mrf.mxu2 }
 0x26c   :  { %451 = vmatpush.msrb.mxu3 %v439_v30 }
 0x26e   :  { %452 = vmatpush.msrb.mxu3 %v436_v29 }
 0x270   :  { %453 = vmatpush.msrb.mxu3 %v433_v28 }
 0x272   :  { %454 = vmatpush.msrb.mxu3 %v430_v19 }
 0x274   :  { %455 = vmatpush.msrb.mxu3 %v427_v27 }
 0x276   :  { %456 = vmatpush.msrb.mxu3 %v424_v26 }
 0x278   :  { %457 = vmatpush.msrb.mxu3 %v421_v25 }
 0x27a   :  { %458 = vmatpush.msrb.mxu3 %v418_v24 }
 0x27c   :  { %459 = vmatpush.msrb.mxu3 %v415_v18 }
 0x27e   :  { %460 = vmatpush.msrb.mxu3 %v412_v23 }
 0x280   :  { %461 = vmatpush.msrb.mxu3 %v409_v22 }
 0x282   :  { %462 = vmatpush.msrb.mxu3 %v406_v17  ;;  %v3877_v17 = vld [vmem:[%s5072_s20 + $0x38] sm:$0xff] }
 0x284   :  { %463 = vmatpush.msrb.mxu3 %v403_v16  ;;  %v3870_v16 = vld [vmem:[%s5072_s20 + $0x30] sm:$0xff] }
 0x286   :  { %464 = vmatpush.msrb.mxu3 %v400_v15  ;;  %v3863_v15 = vld [vmem:[%s5072_s20 + $0x28] sm:$0xff] }
 0x288   :  { %465 = vmatpush.msrb.mxu3 %v397_v14  ;;  %v3856_v14 = vld [vmem:[%s5072_s20 + $0x20] sm:$0xff] }
 0x28a   :  { %466 = vmatpush.msrb.mxu3 %v394_v13  ;;  %v3849_v13 = vld [vmem:[%s5072_s20 + $0x18] sm:$0xff] }
 0x28b   :  { %467 = vmatmul.f32.vlgmr.msrb.gmra.mxu3 %v2955_v2 }
 0x293   :  { %470 = vmatmul.f32.gmra.mxu3 %v2956_v31 }
 0x29b   :  { %473 = vmatmul.f32.gmra.mxu3 %v2957_v32 }
 0x2a3   :  { %476 = vmatmul.f32.gmra.mxu3 %v2958_v33 }
 0x2ab   :  { %479 = vmatmul.f32.gmra.mxu3 %v2959_v34 }
 0x2b3   :  { %482 = vmatmul.f32.gmra.mxu3 %v2960_v35 }
 0x2bb   :  { %485 = vmatmul.f32.gmra.mxu3 %v2961_v36 }
 0x2c3   :  { %488 = vmatmul.f32.gmra.mxu3 %v2962_v37 }
 0x30e   :  { %v468_v43 = vpop.f32.mrf.mxu3 }
 0x30f   :  { %v492_v21 = vadd.f32 %v468_v43, %v351_v5 }
 0x316   :  { %v471_v44 = vpop.f32.mrf.mxu3 }
 0x317   :  { %v493_v20 = vadd.f32 %v471_v44, %v354_v1 }
 0x31e   :  { %v474_v45 = vpop.f32.mrf.mxu3 }
 0x31f   :  { %v494_v3 = vadd.f32 %v474_v45, %v357_v63  ;;  %v3383_v45 = vmov 0   ;;  %v3000_v63 = vld [vmem:[%s5094_s25 + $0x8] sm:$0xff] }
 0x320   :  { %3321 = vset.pattern.permute.xlu1 %v3383_v45  ;;  %3322 = vset.pattern.permute.xlu0 %v3383_v45 }
 0x321   :  { %3323 = vset.pattern.permute.xlu2 %v3383_v45 }
 0x326   :  { %v477_v46 = vpop.f32.mrf.mxu3 }
 0x327   :  { %v495_v0 = vadd.f32 %v477_v46, %v360_v61  ;;  %v708_v46 = vld [vmem:[%s5092_s28] sm:$0xf]  ;;  %s2883_s28 = sshll.u32 %s5075_s23, 4  ;;  %s2884_s28 = int_to_ptr.hbm [resolvable:$true] %s2883_s28 }
 0x328   :  { %711 = vperm.xlu1 %3321, %v708_v46  }
 0x32e   :  { %v480_v47 = vpop.f32.mrf.mxu3 }
 0x32f   :  { %v496_v62 = vadd.f32 %v480_v47, %v363_v58 }
 0x336   :  { %v483_v48 = vpop.f32.mrf.mxu3 }
 0x337   :  { %v497_v59 = vadd.f32 %v483_v48, %v366_v56 }
 0x33e   :  { %v486_v50 = vpop.f32.mrf.mxu3 }
 0x33f   :  { %v498_v57 = vadd.f32 %v486_v50, %v369_v54 }
 0x346   :  { %v489_v53 = vpop.f32.mrf.mxu3 }
 0x347   :  { %v499_v55 = vadd.f32 %v489_v53, %v372_v52 }
 0x349   :  { %521 = vmatpush.msra.mxu0 %v499_v55 }
 0x34b   :  { %522 = vmatpush.msra.mxu0 %v498_v57 }
 0x34d   :  { %523 = vmatpush.msra.mxu0 %v497_v59 }
 0x34f   :  { %524 = vmatpush.msra.mxu0 %v496_v62 }
 0x351   :  { %525 = vmatpush.msra.mxu0 %v495_v0 }
 0x353   :  { %526 = vmatpush.msra.mxu0 %v494_v3 }
 0x355   :  { %527 = vmatpush.msra.mxu0 %v493_v20 }
 0x357   :  { %528 = vmatpush.msra.mxu0 %v492_v21 }
 0x358   :  { %2963 = vmatmul.msk.f32.vlgmr.msra.gmra.mxu0 %vm509_vm1, %v3819_v8 }
 0x39a   :  { %v712_v60 = vpop.permute.xlu1 %711 }
 0x39b   :  { %2983 = vmatpush.msk.msra.mxu3 %vm563_vm3, %v712_v60 }
 0x39c   :  { %2984 = vmatmul.msk.f32.vlgmr.msra.gmra.mxu3 %vm538_vm4, %v3827_v10 }
 0x3a4   :  { %2985 = vmatmul.msk.f32.gmra.mxu3 %vm538_vm4, %v3835_v11 }
 0x3ac   :  { %2986 = vmatmul.msk.f32.gmra.mxu3 %vm538_vm4, %v3842_v12 }
 0x3b4   :  { %2987 = vmatmul.msk.f32.gmra.mxu3 %vm538_vm4, %v3849_v13 }
 0x3bc   :  { %2988 = vmatmul.msk.f32.gmra.mxu3 %vm538_vm4, %v3856_v14 }
 0x3c4   :  { %2989 = vmatmul.msk.f32.gmra.mxu3 %vm538_vm4, %v3863_v15 }
 0x3cc   :  { %2990 = vmatmul.msk.f32.gmra.mxu3 %vm538_vm4, %v3870_v16 }
 0x3d4   :  { %2991 = vmatmul.msk.f32.gmra.mxu3 %vm538_vm4, %v3877_v17 }
 0x3d5   :  { %v530_v6 = vpop.f32.mrf.mxu0 }
 0x3d6   :  { %v534_v7 = vsel %vm533_vm2, %v530_v6, 0.0 }
 0x3d7   :  { %535 = vadd.xlane.f32.xlu0 %v534_v7 }
 0x44a   :  { %v536_v4 = vpop.xlane.xlu0 %535 }
 0x44b   :  { %v537_v9 = vmul.f32 0.0078125, %v536_v4 }
 0x44d   :  { %2964 = vmatpush.msk.msra.mxu1 %vm563_vm3, %v537_v9 }
 0x44e   :  { %2965 = vmatmul.msk.f32.vlgmr.msra.gmra.mxu1 %vm538_vm4, %v3827_v10 }
 0x456   :  { %2966 = vmatmul.msk.f32.gmra.mxu1 %vm538_vm4, %v3835_v11 }
 0x45e   :  { %2967 = vmatmul.msk.f32.gmra.mxu1 %vm538_vm4, %v3842_v12 }
 0x466   :  { %2968 = vmatmul.msk.f32.gmra.mxu1 %vm538_vm4, %v3849_v13 }
 0x46e   :  { %2969 = vmatmul.msk.f32.gmra.mxu1 %vm538_vm4, %v3856_v14 }
 0x476   :  { %2970 = vmatmul.msk.f32.gmra.mxu1 %vm538_vm4, %v3863_v15 }
 0x47e   :  { %2971 = vmatmul.msk.f32.gmra.mxu1 %vm538_vm4, %v3870_v16 }
 0x486   :  { %2972 = vmatmul.msk.f32.gmra.mxu1 %vm538_vm4, %v3877_v17 }
 0x4cb   :  { %v584_v22 = vpop.f32.mrf.mxu1 }
 0x4cc   :  { %v3905_v39 = vsub.f32 %v492_v21, %v584_v22 }
 0x4ce   :  { %v616_v42 = vmul.f32 %v3905_v39, %v3905_v39 }
 0x4d3   :  { %v587_v23 = vpop.f32.mrf.mxu1 }
 0x4d4   :  { %v3901_v37 = vsub.f32 %v493_v20, %v587_v23 }
 0x4d6   :  { %v617_v41 = vmul.f32 %v3901_v37, %v3901_v37 }
 0x4db   :  { %v590_v18 = vpop.f32.mrf.mxu1 }
 0x4dc   :  { %v3897_v35 = vsub.f32 %v494_v3, %v590_v18 }
 0x4de   :  { %v618_v40 = vmul.f32 %v3897_v35, %v3897_v35 }
 0x4e3   :  { %v593_v24 = vpop.f32.mrf.mxu1 }
 0x4e4   :  { %v3893_v33 = vsub.f32 %v495_v0, %v593_v24  ;;  %v732_v0 = vpop.f32.mrf.mxu3 }
 0x4e6   :  { %v619_v38 = vmul.f32 %v3893_v33, %v3893_v33 }
 0x4eb   :  { %v596_v25 = vpop.f32.mrf.mxu1 }
 0x4ec   :  { %v3889_v31 = vsub.f32 %v496_v62, %v596_v25  ;;  %v780_v62 = vld [vmem:[%s5094_s25] sm:$0xff]  ;;  %v735_v1 = vpop.f32.mrf.mxu3 }
 0x4ed   :  { %821 = vmatpush.msrb.mxu1 %v780_v62 }
 0x4ee   :  { %v620_v36 = vmul.f32 %v3889_v31, %v3889_v31 }
 0x4f3   :  { %v599_v26 = vpop.f32.mrf.mxu1 }
 0x4f4   :  { %v3885_v30 = vsub.f32 %v497_v59, %v599_v26  ;;  %v1232_v59 = vld [vmem:[%s5060_s8] sm:$0xf]  ;;  %v738_v6 = vpop.f32.mrf.mxu3 }
 0x4f6   :  { %v621_v34 = vmul.f32 %v3885_v30, %v3885_v30 }
 0x4fb   :  { %v602_v27 = vpop.f32.mrf.mxu1 }
 0x4fc   :  { %v3881_v28 = vsub.f32 %v498_v57, %v602_v27  ;;  %v741_v18 = vpop.f32.mrf.mxu3 }
 0x4fe   :  { %v622_v32 = vmul.f32 %v3881_v28, %v3881_v28 }
 0x503   :  { %v605_v19 = vpop.f32.mrf.mxu1 }
 0x504   :  { %v3883_v29 = vsub.f32 %v499_v55, %v605_v19  ;;  %v648_v55 = vld [vmem:[%s5093_s0] sm:$0xf]  ;;  %s3386_s0 = smov 8  }
 0x506   :  { %v623_v2 = vmul.f32 %v3883_v29, %v3883_v29 }
 0x508   :  { %632 = vmatpush.msrb.mxu0 %v623_v2  ;;  %v744_v2 = vpop.f32.mrf.mxu3 }
 0x50a   :  { %633 = vmatpush.msrb.mxu0 %v622_v32 }
 0x50c   :  { %634 = vmatpush.msrb.mxu0 %v621_v34 }
 0x50e   :  { %635 = vmatpush.msrb.mxu0 %v620_v36 }
 0x510   :  { %636 = vmatpush.msrb.mxu0 %v619_v38  ;;  %v747_v38 = vpop.f32.mrf.mxu3 }
 0x512   :  { %637 = vmatpush.msrb.mxu0 %v618_v40 }
 0x514   :  { %638 = vmatpush.msrb.mxu0 %v617_v41 }
 0x516   :  { %639 = vmatpush.msrb.mxu0 %v616_v42 }
 0x517   :  { %2973 = vmatmul.msk.f32.vlgmr.msrb.gmra.mxu0 %vm509_vm1, %v3819_v8 }
 0x594   :  { %v641_v43 = vpop.f32.mrf.mxu0 }
 0x595   :  { %v644_v44 = vsel %vm533_vm2, %v641_v43, 0.0  ;;  %v750_v43 = vpop.f32.mrf.mxu3 }
 0x596   :  { %645 = vadd.xlane.f32.xlu0 %v644_v44 }
 0x609   :  { %v646_v47 = vpop.xlane.xlu0 %645 }
 0x60a   :  { %v647_v48 = vmul.f32 0.0078125, %v646_v47  ;;  %v753_v47 = vpop.f32.mrf.mxu3 }
 0x60c   :  { %v649_v49 = vadd.f32 1e-05, %v647_v48 }
 0x60e   :  { %3324 = vrsqrt.f32 %v649_v49  ;;  %vm656_vm6 = vweird.f32 %v649_v49 }
 0x614   :  { %v3325_v50 = vpop.eup %3324 }
 0x615   :  { %v651_v51 = vmul.f32 %v3325_v50, %v649_v49  ;;  %vm657_vm5 = vweird.f32 %v3325_v50 }
 0x616   :  { %vm658_vm7 = vmor %vm656_vm6, %vm657_vm5 }
 0x617   :  { %v652_v52 = vmul.f32 %v3325_v50, %v651_v51 }
 0x619   :  { %v653_v53 = vmul.f32 0.5, %v652_v52 }
 0x61b   :  { %v654_v54 = vsub.f32 1.5, %v653_v53 }
 0x61d   :  { %v655_v56 = vmul.f32 %v3325_v50, %v654_v54 }
 0x61f   :  { %v659_v57 = vsel %vm658_vm7, %v3325_v50, %v655_v56 }
 0x620   :  { %v660_v58 = vmul.f32 %v659_v57, %v648_v55 }
 0x622   :  { %663 = vperm.xlu1 %3321, %v660_v58  }
 0x62a   :  { %1235 = vperm.xlu1 %3321, %v1232_v59  }
 0x694   :  { %v664_v61 = vpop.permute.xlu1 %663 }
 0x695   :  { %2974 = vmatpush.msk.msra.mxu0 %vm563_vm3, %v664_v61 }
 0x696   :  { %2975 = vmatmul.msk.f32.vlgmr.msra.gmra.mxu0 %vm538_vm4, %v3827_v10 }
 0x697   :  { %868 = vmatpush.msrb.mxu0 %v3000_v63 }
 0x69e   :  { %2976 = vmatmul.msk.f32.gmra.mxu0 %vm538_vm4, %v3835_v11 }
 0x6a6   :  { %2977 = vmatmul.msk.f32.gmra.mxu0 %vm538_vm4, %v3842_v12 }
 0x6ae   :  { %2978 = vmatmul.msk.f32.gmra.mxu0 %vm538_vm4, %v3849_v13 }
 0x6b6   :  { %2979 = vmatmul.msk.f32.gmra.mxu0 %vm538_vm4, %v3856_v14 }
 0x6be   :  { %2980 = vmatmul.msk.f32.gmra.mxu0 %vm538_vm4, %v3863_v15 }
 0x6c6   :  { %2981 = vmatmul.msk.f32.gmra.mxu0 %vm538_vm4, %v3870_v16 }
 0x6ce   :  { %2982 = vmatmul.msk.f32.gmra.mxu0 %vm538_vm4, %v3877_v17 }
 0x713   :  { %v684_v3 = vpop.f32.mrf.mxu0 }
 0x714   :  { %v756_v5 = vmul.f32 %v684_v3, %v3905_v39  ;;  %v847_v3 = vld [vmem:[%s5095_s27] sm:$0xff] }
 0x716   :  { %v764_v20 = vadd.f32 %v756_v5, %v732_v0  ;;  %v3021_v5 = vld [vmem:[%s5094_s25 + $0x10] sm:$0xff] }
 0x718   :  { %v3966_v21 = vmax.f32 %v764_v20, 0.0  ;;  %v3010_v20 = vld [vmem:[%s5095_s27 + $0x28] sm:$0xff] }
 0x71a   :  { %2992 = vmatmul.msk.f32.vlgmr.msrb.gmra.mxu1 %vm781_vm8, %v3966_v21  ;;  %3001 = vmatmul.msk.f32.vlgmr.msrb.gmra.mxu0 %vm781_vm8, %v3966_v21 }
 0x71b   :  { %v687_v7 = vpop.f32.mrf.mxu0 }
 0x71c   :  { %v757_v4 = vmul.f32 %v687_v7, %v3901_v37  ;;  %v3011_v7 = vld [vmem:[%s5095_s27 + $0x30] sm:$0xff] }
 0x71e   :  { %v765_v9 = vadd.f32 %v757_v4, %v735_v1  ;;  %v3009_v1 = vld [vmem:[%s5095_s27 + $0x20] sm:$0xff]  ;;  %v849_v4 = vld [vmem:[%s5095_s27 + $0x10] sm:$0xff] }
 0x720   :  { %v3973_v22 = vmax.f32 %v765_v9, 0.0  ;;  %v3012_v9 = vld [vmem:[%s5095_s27 + $0x38] sm:$0xff] }
 0x722   :  { %2993 = vmatmul.msk.f32.gmra.mxu1 %vm781_vm8, %v3973_v22  ;;  %3002 = vmatmul.msk.f32.gmra.mxu0 %vm781_vm8, %v3973_v22 }
 0x723   :  { %v690_v23 = vpop.f32.mrf.mxu0 }
 0x724   :  { %v758_v24 = vmul.f32 %v690_v23, %v3897_v35  ;;  %v850_v23 = vld [vmem:[%s5095_s27 + $0x18] sm:$0xff] }
 0x726   :  { %v766_v25 = vadd.f32 %v758_v24, %v738_v6  ;;  %v848_v6 = vld [vmem:[%s5095_s27 + $0x8] sm:$0xff] }
 0x728   :  { %v3980_v26 = vmax.f32 %v766_v25, 0.0 }
 0x72a   :  { %2994 = vmatmul.msk.f32.gmra.mxu1 %vm781_vm8, %v3980_v26  ;;  %3003 = vmatmul.msk.f32.gmra.mxu0 %vm781_vm8, %v3980_v26 }
 0x72b   :  { %v693_v27 = vpop.f32.mrf.mxu0 }
 0x72c   :  { %v759_v19 = vmul.f32 %v693_v27, %v3893_v33 }
 0x72e   :  { %v767_v32 = vadd.f32 %v759_v19, %v741_v18 }
 0x730   :  { %v3987_v34 = vmax.f32 %v767_v32, 0.0 }
 0x732   :  { %2995 = vmatmul.msk.f32.gmra.mxu1 %vm781_vm8, %v3987_v34  ;;  %3004 = vmatmul.msk.f32.gmra.mxu0 %vm781_vm8, %v3987_v34 }
 0x733   :  { %v696_v35 = vpop.f32.mrf.mxu0 }
 0x734   :  { %v760_v36 = vmul.f32 %v696_v35, %v3889_v31 }
 0x736   :  { %v768_v37 = vadd.f32 %v760_v36, %v744_v2 }
 0x738   :  { %v3994_v39 = vmax.f32 %v768_v37, 0.0 }
 0x73a   :  { %2996 = vmatmul.msk.f32.gmra.mxu1 %vm781_vm8, %v3994_v39  ;;  %3005 = vmatmul.msk.f32.gmra.mxu0 %vm781_vm8, %v3994_v39 }
 0x73b   :  { %v699_v33 = vpop.f32.mrf.mxu0 }
 0x73c   :  { %v761_v40 = vmul.f32 %v699_v33, %v3885_v30 }
 0x73e   :  { %v769_v41 = vadd.f32 %v761_v40, %v747_v38  ;;  %v3030_v40 = vld [vmem:[%s5095_s27 + $0x40] sm:$0xff] }
 0x740   :  { %v4001_v42 = vmax.f32 %v769_v41, 0.0  ;;  %v3031_v41 = vld [vmem:[%s5095_s27 + $0x48] sm:$0xff] }
 0x742   :  { %2997 = vmatmul.msk.f32.gmra.mxu1 %vm781_vm8, %v4001_v42  ;;  %3006 = vmatmul.msk.f32.gmra.mxu0 %vm781_vm8, %v4001_v42 }
 0x743   :  { %v702_v31 = vpop.f32.mrf.mxu0 }
 0x744   :  { %v762_v44 = vmul.f32 %v702_v31, %v3881_v28  ;;  %v3033_v31 = vld [vmem:[%s5095_s27 + $0x58] sm:$0xff] }
 0x746   :  { %v770_v45 = vadd.f32 %v762_v44, %v750_v43  ;;  %v3032_v43 = vld [vmem:[%s5095_s27 + $0x50] sm:$0xff] }
 0x748   :  { %v4008_v46 = vmax.f32 %v770_v45, 0.0 }
 0x74a   :  { %2998 = vmatmul.msk.f32.gmra.mxu1 %vm781_vm8, %v4008_v46  ;;  %3007 = vmatmul.msk.f32.gmra.mxu0 %vm781_vm8, %v4008_v46 }
 0x74b   :  { %v705_v30 = vpop.f32.mrf.mxu0 }
 0x74c   :  { %v763_v48 = vmul.f32 %v705_v30, %v3883_v29 }
 0x74e   :  { %v771_v49 = vadd.f32 %v763_v48, %v753_v47 }
 0x750   :  { %v4015_v50 = vmax.f32 %v771_v49, 0.0 }
 0x752   :  { %2999 = vmatmul.msk.f32.gmra.mxu1 %vm781_vm8, %v4015_v50  ;;  %3008 = vmatmul.msk.f32.gmra.mxu0 %vm781_vm8, %v4015_v50 }
 0x797   :  { %v823_v28 = vpop.f32.mrf.mxu1  ;;  %v870_v51 = vpop.f32.mrf.mxu0 }
 0x79f   :  { %v826_v52 = vpop.f32.mrf.mxu1  ;;  %v873_v53 = vpop.f32.mrf.mxu0 }
 0x7a7   :  { %v829_v54 = vpop.f32.mrf.mxu1  ;;  %v876_v55 = vpop.f32.mrf.mxu0 }
 0x7af   :  { %v832_v56 = vpop.f32.mrf.mxu1  ;;  %v879_v57 = vpop.f32.mrf.mxu0 }
 0x7b7   :  { %v835_v58 = vpop.f32.mrf.mxu1  ;;  %v882_v59 = vpop.f32.mrf.mxu0 }
 0x7bf   :  { %v838_v29 = vpop.f32.mrf.mxu1  ;;  %v885_v60 = vpop.f32.mrf.mxu0 }
 0x7c7   :  { %v841_v61 = vpop.f32.mrf.mxu1  ;;  %v888_v62 = vpop.f32.mrf.mxu0 }
 0x7cf   :  { %v844_v63 = vpop.f32.mrf.mxu1  ;;  %v891_v0 = vpop.f32.mrf.mxu0 }
 0x7d0   :  { %919 = vmatpush.msra.mxu2 %v891_v0  ;;  %960 = vmatpush.msrb.mxu3 %v844_v63  ;;  %v1075_v0 = vld [vmem:[%s5074_s22] sm:$0xff] }
 0x7d2   :  { %920 = vmatpush.msra.mxu2 %v888_v62  ;;  %961 = vmatpush.msrb.mxu3 %v841_v61 }
 0x7d4   :  { %921 = vmatpush.msra.mxu2 %v885_v60  ;;  %962 = vmatpush.msrb.mxu3 %v838_v29  ;;  %v1074_v29 = vld [vmem:[%s5073_s21] sm:$0xf] }
 0x7d6   :  { %922 = vmatpush.msra.mxu2 %v882_v59  ;;  %963 = vmatpush.msrb.mxu3 %v835_v58 }
 0x7d8   :  { %923 = vmatpush.msra.mxu2 %v879_v57  ;;  %964 = vmatpush.msrb.mxu3 %v832_v56 }
 0x7da   :  { %924 = vmatpush.msra.mxu2 %v876_v55  ;;  %965 = vmatpush.msrb.mxu3 %v829_v54 }
 0x7dc   :  { %925 = vmatpush.msra.mxu2 %v873_v53  ;;  %966 = vmatpush.msrb.mxu3 %v826_v52 }
 0x7de   :  { %926 = vmatpush.msra.mxu2 %v870_v51  ;;  %967 = vmatpush.msrb.mxu3 %v823_v28 }
 0x7df   :  { %3013 = vmatmul.msk.f32.vlgmr.msra.gmra.mxu2 %vm509_vm1, %v3009_v1  ;;  %3017 = vmatmul.msk.f32.vlgmr.msrb.gmra.mxu3 %vm509_vm1, %v847_v3  ;;  %v1076_v1 = vld [vmem:[%s5074_s22 + $0x8] sm:$0xff]  ;;  %v1077_v3 = vld [vmem:[%s5074_s22 + $0x10] sm:$0xff] }
 0x7e0   :  { %998 = vmatpush.msrb.mxu2 %v3021_v5  ;;  %v1078_v5 = vld [vmem:[%s5074_s22 + $0x18] sm:$0xff]  ;;  %s3385_s22 = smov 128  }
 0x7e7   :  { %3014 = vmatmul.msk.f32.gmra.mxu2 %vm509_vm1, %v3010_v20  ;;  %3018 = vmatmul.msk.f32.gmra.mxu3 %vm509_vm1, %v848_v6 }
 0x7ef   :  { %3015 = vmatmul.msk.f32.gmra.mxu2 %vm509_vm1, %v3011_v7  ;;  %3019 = vmatmul.msk.f32.gmra.mxu3 %vm509_vm1, %v849_v4 }
 0x7f7   :  { %3016 = vmatmul.msk.f32.gmra.mxu2 %vm509_vm1, %v3012_v9  ;;  %3020 = vmatmul.msk.f32.gmra.mxu3 %vm509_vm1, %v850_v23 }
 0x7ff   :  { %3022 = vmatmul.msk.f32.vlgmr.msrb.gmra.mxu2 %vm781_vm8, %v3966_v21 }
 0x807   :  { %3023 = vmatmul.msk.f32.gmra.mxu2 %vm781_vm8, %v3973_v22 }
 0x80f   :  { %3024 = vmatmul.msk.f32.gmra.mxu2 %vm781_vm8, %v3980_v26 }
 0x817   :  { %3025 = vmatmul.msk.f32.gmra.mxu2 %vm781_vm8, %v3987_v34 }
 0x81f   :  { %3026 = vmatmul.msk.f32.gmra.mxu2 %vm781_vm8, %v3994_v39 }
 0x827   :  { %3027 = vmatmul.msk.f32.gmra.mxu2 %vm781_vm8, %v4001_v42 }
 0x82f   :  { %3028 = vmatmul.msk.f32.gmra.mxu2 %vm781_vm8, %v4008_v46 }
 0x837   :  { %3029 = vmatmul.msk.f32.gmra.mxu2 %vm781_vm8, %v4015_v50 }
 0x862   :  { %v928_v18 = vpop.f32.mrf.mxu2  ;;  %v969_v44 = vpop.f32.mrf.mxu3 }
 0x863   :  { %v970_v57 = vadd.f32 %v969_v44, %v928_v18 }
 0x86a   :  { %v931_v24 = vpop.f32.mrf.mxu2  ;;  %v972_v45 = vpop.f32.mrf.mxu3 }
 0x86b   :  { %v973_v55 = vadd.f32 %v972_v45, %v931_v24  ;;  %v1184_v45 = vld [vmem:[%s5096_s4] sm:$0xf] }
 0x872   :  { %v934_v25 = vpop.f32.mrf.mxu2  ;;  %v975_v30 = vpop.f32.mrf.mxu3 }
 0x873   :  { %v976_v53 = vadd.f32 %v975_v30, %v934_v25 }
 0x87a   :  { %v937_v27 = vpop.f32.mrf.mxu2  ;;  %v978_v47 = vpop.f32.mrf.mxu3 }
 0x87b   :  { %v979_v51 = vadd.f32 %v978_v47, %v937_v27 }
 0x882   :  { %v1000_v19 = vpop.f32.mrf.mxu2 }
 0x88a   :  { %v1003_v2 = vpop.f32.mrf.mxu2 }
 0x892   :  { %v1006_v32 = vpop.f32.mrf.mxu2 }
 0x89a   :  { %v1009_v35 = vpop.f32.mrf.mxu2 }
 0x8a2   :  { %v1012_v36 = vpop.f32.mrf.mxu2 }
 0x8aa   :  { %v1015_v37 = vpop.f32.mrf.mxu2 }
 0x8b2   :  { %v1018_v38 = vpop.f32.mrf.mxu2 }
 0x8ba   :  { %v1021_v33 = vpop.f32.mrf.mxu2 }
 0x8bb   :  { %1049 = vmatpush.msra.mxu3 %v1021_v33 }
 0x8bd   :  { %1050 = vmatpush.msra.mxu3 %v1018_v38 }
 0x8bf   :  { %1051 = vmatpush.msra.mxu3 %v1015_v37 }
 0x8c1   :  { %1052 = vmatpush.msra.mxu3 %v1012_v36 }
 0x8c3   :  { %1053 = vmatpush.msra.mxu3 %v1009_v35 }
 0x8c5   :  { %1054 = vmatpush.msra.mxu3 %v1006_v32  ;;  %v1236_v32 = vpop.permute.xlu1 %1235 }
 0x8c7   :  { %1055 = vmatpush.msra.mxu3 %v1003_v2 }
 0x8c9   :  { %1056 = vmatpush.msra.mxu3 %v1000_v19 }
 0x8ca   :  { %3034 = vmatmul.msk.f32.vlgmr.msra.gmra.mxu3 %vm509_vm1, %v3030_v40 }
 0x8d2   :  { %3035 = vmatmul.msk.f32.gmra.mxu3 %vm509_vm1, %v3031_v41 }
 0x8da   :  { %3036 = vmatmul.msk.f32.gmra.mxu3 %vm509_vm1, %v3032_v43 }
 0x8e2   :  { %3037 = vmatmul.msk.f32.gmra.mxu3 %vm509_vm1, %v3033_v31 }
 0x94d   :  { %v1058_v48 = vpop.f32.mrf.mxu3 }
 0x94e   :  { %v1070_v59 = vadd.f32 %v1058_v48, %v970_v57 }
 0x955   :  { %v1061_v49 = vpop.f32.mrf.mxu3 }
 0x956   :  { %v1071_v58 = vadd.f32 %v1061_v49, %v973_v55 }
 0x95d   :  { %v1064_v28 = vpop.f32.mrf.mxu3 }
 0x95e   :  { %v1072_v56 = vadd.f32 %v1064_v28, %v976_v53  ;;  %v1280_v28 = vld [vmem:[%s5066_s14] sm:$0xf]  ;;  %v3090_v53 = vld [vmem:[%s5066_s14 + $0x8] sm:$0xf] }
 0x965   :  { %v1067_v52 = vpop.f32.mrf.mxu3 }
 0x966   :  { %v1073_v54 = vadd.f32 %v1067_v52, %v979_v51  ;;  %v3060_v51 = vld [vmem:[%s5066_s14 + $0x4] sm:$0xf] }
 0x967   :  { %3061 = vmatpush.msk.msra.mxu2 %vm563_vm3, %v3060_v51  ;;  %v3071_v51 = vld [vmem:[%s5065_s13 + $0x68] sm:$0xff] }
 0x968   :  { %1095 = vmatpush.msra.mxu1 %v1073_v54 }
 0x96a   :  { %1096 = vmatpush.msra.mxu1 %v1072_v56 }
 0x96c   :  { %1097 = vmatpush.msra.mxu1 %v1071_v58 }
 0x96e   :  { %1098 = vmatpush.msra.mxu1 %v1070_v59 }
 0x96f   :  { %3038 = vmatmul.msk.f32.vlgmr.msra.gmra.mxu1 %vm1079_vm9, %v1074_v29 }
 0x9ec   :  { %v1100_v60 = vpop.f32.mrf.mxu1 }
 0x9ed   :  { %v1104_v61 = vsel %vm1103_vm10, %v1100_v60, 0.0 }
 0x9ee   :  { %1105 = vadd.xlane.f32.xlu2 %v1104_v61 }
 0xa61   :  { %v1106_v62 = vpop.xlane.xlu2 %1105 }
 0xa62   :  { %v1107_v63 = vmul.f32 0.03125, %v1106_v62 }
 0xa64   :  { %3039 = vmatpush.msk.msrb.mxu1 %vm563_vm3, %v1107_v63 }
 0xa65   :  { %3040 = vmatmul.msk.f32.vlgmr.msrb.gmra.mxu1 %vm538_vm4, %v1075_v0 }
 0xa66   :  { %3055 = vmatpush.msk.msra.mxu1 %vm563_vm3, %v1280_v28  ;;  %v1330_v28 = vld [vmem:[%s5065_s13 + $0x28] sm:$0xff] }
 0xa68   :  { %3091 = vmatpush.msk.msrb.mxu1 %vm563_vm3, %v3090_v53  ;;  %v1331_v53 = vld [vmem:[%s5065_s13 + $0x30] sm:$0xff] }
 0xa6d   :  { %3041 = vmatmul.msk.f32.gmra.mxu1 %vm538_vm4, %v1076_v1 }
 0xa75   :  { %3042 = vmatmul.msk.f32.gmra.mxu1 %vm538_vm4, %v1077_v3 }
 0xa7d   :  { %3043 = vmatmul.msk.f32.gmra.mxu1 %vm538_vm4, %v1078_v5 }
 0xae2   :  { %v1140_v20 = vpop.f32.mrf.mxu1 }
 0xae3   :  { %v1152_v25 = vsub.f32 %v1070_v59, %v1140_v20 }
 0xae5   :  { %v1156_v2 = vmul.f32 %v1152_v25, %v1152_v25 }
 0xaea   :  { %v1143_v6 = vpop.f32.mrf.mxu1 }
 0xaeb   :  { %v1153_v18 = vsub.f32 %v1071_v58, %v1143_v6 }
 0xaed   :  { %v1157_v19 = vmul.f32 %v1153_v18, %v1153_v18 }
 0xaf2   :  { %v1146_v7 = vpop.f32.mrf.mxu1 }
 0xaf3   :  { %v4110_v9 = vsub.f32 %v1072_v56, %v1146_v7 }
 0xaf5   :  { %v1158_v27 = vmul.f32 %v4110_v9, %v4110_v9 }
 0xafa   :  { %v1149_v4 = vpop.f32.mrf.mxu1 }
 0xafb   :  { %v4112_v23 = vsub.f32 %v1073_v54, %v1149_v4 }
 0xafd   :  { %v1159_v24 = vmul.f32 %v4112_v23, %v4112_v23 }
 0xaff   :  { %1172 = vmatpush.msra.mxu0 %v1159_v24 }
 0xb01   :  { %1173 = vmatpush.msra.mxu0 %v1158_v27 }
 0xb03   :  { %1174 = vmatpush.msra.mxu0 %v1157_v19 }
 0xb05   :  { %1175 = vmatpush.msra.mxu0 %v1156_v2 }
 0xb06   :  { %3044 = vmatmul.msk.f32.vlgmr.msra.gmra.mxu0 %vm1079_vm9, %v1074_v29 }
 0xb07   :  { %3050 = vmatpush.msk.msrb.mxu0 %vm563_vm3, %v1236_v32 }
 0xb0e   :  { %3051 = vmatmul.msk.f32.vlgmr.msrb.gmra.mxu0 %vm538_vm4, %v1075_v0 }
 0xb16   :  { %3052 = vmatmul.msk.f32.gmra.mxu0 %vm538_vm4, %v1076_v1 }
 0xb1e   :  { %3053 = vmatmul.msk.f32.gmra.mxu0 %vm538_vm4, %v1077_v3 }
 0xb26   :  { %3054 = vmatmul.msk.f32.gmra.mxu0 %vm538_vm4, %v1078_v5 }
 0xb83   :  { %v1177_v35 = vpop.f32.mrf.mxu0 }
 0xb84   :  { %v1180_v36 = vsel %vm1103_vm10, %v1177_v35, 0.0  ;;  %v1325_v35 = vld [vmem:[%s5065_s13] sm:$0xff] }
 0xb85   :  { %1181 = vadd.xlane.f32.xlu2 %v1180_v36  ;;  %v3066_v36 = vld [vmem:[%s5065_s13 + $0x40] sm:$0xff] }
 0xb8b   :  { %v1256_v52 = vpop.f32.mrf.mxu0 }
 0xb93   :  { %v1259_v57 = vpop.f32.mrf.mxu0 }
 0xb9b   :  { %v1262_v62 = vpop.f32.mrf.mxu0 }
 0xba3   :  { %v1265_v20 = vpop.f32.mrf.mxu0 }
 0xbf8   :  { %v1182_v37 = vpop.xlane.xlu2 %1181 }
 0xbf9   :  { %v1183_v38 = vmul.f32 0.03125, %v1182_v37 }
 0xbfb   :  { %v1185_v33 = vadd.f32 1e-05, %v1183_v38  ;;  %v1326_v38 = vld [vmem:[%s5065_s13 + $0x8] sm:$0xff] }
 0xbfd   :  { %3326 = vrsqrt.f32 %v1185_v33  ;;  %vm1192_vm12 = vweird.f32 %v1185_v33 }
 0xc03   :  { %v3327_v40 = vpop.eup %3326 }
 0xc04   :  { %v1187_v41 = vmul.f32 %v3327_v40, %v1185_v33  ;;  %vm1193_vm11 = vweird.f32 %v3327_v40  ;;  %v3067_v33 = vld [vmem:[%s5065_s13 + $0x48] sm:$0xff] }
 0xc05   :  { %vm1194_vm13 = vmor %vm1192_vm12, %vm1193_vm11 }
 0xc06   :  { %v1188_v43 = vmul.f32 %v3327_v40, %v1187_v41  ;;  %v1327_v41 = vld [vmem:[%s5065_s13 + $0x10] sm:$0xff] }
 0xc08   :  { %v1189_v31 = vmul.f32 0.5, %v1188_v43  ;;  %v3068_v43 = vld [vmem:[%s5065_s13 + $0x50] sm:$0xff] }
 0xc0a   :  { %v1190_v44 = vsub.f32 1.5, %v1189_v31 }
 0xc0c   :  { %v1191_v30 = vmul.f32 %v3327_v40, %v1190_v44  ;;  %v1328_v44 = vld [vmem:[%s5065_s13 + $0x18] sm:$0xff] }
 0xc0e   :  { %v1195_v47 = vsel %vm1194_vm13, %v3327_v40, %v1191_v30  ;;  %v3096_v30 = vld [vmem:[%s5065_s13 + $0x80] sm:$0xff] }
 0xc0f   :  { %v1196_v48 = vmul.f32 %v1195_v47, %v1184_v45  ;;  %v3069_v45 = vld [vmem:[%s5065_s13 + $0x58] sm:$0xff]  ;;  %v1329_v47 = vld [vmem:[%s5065_s13 + $0x20] sm:$0xff] }
 0xc11   :  { %1199 = vperm.xlu0 %3322, %v1196_v48   ;;  %v3070_v48 = vld [vmem:[%s5065_s13 + $0x60] sm:$0xff] }
 0xc83   :  { %v1200_v49 = vpop.permute.xlu0 %1199 }
 0xc84   :  { %3045 = vmatpush.msk.msrb.mxu3 %vm563_vm3, %v1200_v49  ;;  %v3097_v49 = vld [vmem:[%s5065_s13 + $0x88] sm:$0xff] }
 0xc85   :  { %3046 = vmatmul.msk.f32.vlgmr.msrb.gmra.mxu3 %vm538_vm4, %v1075_v0 }
 0xc8d   :  { %3047 = vmatmul.msk.f32.gmra.mxu3 %vm538_vm4, %v1076_v1 }
 0xc95   :  { %3048 = vmatmul.msk.f32.gmra.mxu3 %vm538_vm4, %v1077_v3 }
 0xc9d   :  { %3049 = vmatmul.msk.f32.gmra.mxu3 %vm538_vm4, %v1078_v5 }
 0xd08   :  { %v1220_v54 = vpop.f32.mrf.mxu3 }
 0xd09   :  { %v1268_v55 = vmul.f32 %v1220_v54, %v1152_v25  ;;  %v3072_v54 = vld [vmem:[%s5065_s13 + $0x70] sm:$0xff] }
 0xd0b   :  { %v1272_v56 = vadd.f32 %v1268_v55, %v1256_v52  ;;  %v3098_v52 = vld [vmem:[%s5065_s13 + $0x90] sm:$0xff]  ;;  %v3099_v55 = vld [vmem:[%s5065_s13 + $0x98] sm:$0xff] }
 0xd0d   :  { %v1276_v58 = vmax.f32 %v1272_v56, 0.0  ;;  %v1332_v56 = vld [vmem:[%s5065_s13 + $0x38] sm:$0xff] }
 0xd0f   :  { %3056 = vmatmul.msk.f32.vlgmr.msra.gmra.mxu1 %vm538_vm4, %v1276_v58  ;;  %3062 = vmatmul.msk.f32.vlgmr.msra.gmra.mxu2 %vm538_vm4, %v1276_v58 }
 0xd10   :  { %v1223_v59 = vpop.f32.mrf.mxu3 }
 0xd11   :  { %v1269_v29 = vmul.f32 %v1223_v59, %v1153_v18  ;;  %v3101_v59 = vld [vmem:[%s5065_s13 + $0xa8] sm:$0xff] }
 0xd13   :  { %v1273_v60 = vadd.f32 %v1269_v29, %v1259_v57  ;;  %v3073_v57 = vld [vmem:[%s5065_s13 + $0x78] sm:$0xff]  ;;  %v3102_v29 = vld [vmem:[%s5065_s13 + $0xb0] sm:$0xff] }
 0xd15   :  { %v1277_v61 = vmax.f32 %v1273_v60, 0.0  ;;  %v3103_v60 = vld [vmem:[%s5065_s13 + $0xb8] sm:$0xff] }
 0xd17   :  { %3057 = vmatmul.msk.f32.gmra.mxu1 %vm538_vm4, %v1277_v61  ;;  %3063 = vmatmul.msk.f32.gmra.mxu2 %vm538_vm4, %v1277_v61 }
 0xd18   :  { %v1226_v63 = vpop.f32.mrf.mxu3 }
 0xd19   :  { %v1270_v0 = vmul.f32 %v1226_v63, %v4110_v9 }
 0xd1b   :  { %v1274_v1 = vadd.f32 %v1270_v0, %v1262_v62 }
 0xd1d   :  { %v1278_v3 = vmax.f32 %v1274_v1, 0.0 }
 0xd1f   :  { %3058 = vmatmul.msk.f32.gmra.mxu1 %vm538_vm4, %v1278_v3  ;;  %3064 = vmatmul.msk.f32.gmra.mxu2 %vm538_vm4, %v1278_v3 }
 0xd20   :  { %v1229_v5 = vpop.f32.mrf.mxu3 }
 0xd21   :  { %v1271_v6 = vmul.f32 %v1229_v5, %v4112_v23 }
 0xd23   :  { %v1275_v7 = vadd.f32 %v1271_v6, %v1265_v20 }
 0xd25   :  { %v1279_v4 = vmax.f32 %v1275_v7, 0.0 }
 0xd27   :  { %3059 = vmatmul.msk.f32.gmra.mxu1 %vm538_vm4, %v1279_v4  ;;  %3065 = vmatmul.msk.f32.gmra.mxu2 %vm538_vm4, %v1279_v4 }
 0xd2f   :  { %3092 = vmatmul.msk.f32.vlgmr.msrb.gmra.mxu1 %vm538_vm4, %v1276_v58  ;;  %v3100_v58 = vld [vmem:[%s5065_s13 + $0xa0] sm:$0xff] }
 0xd37   :  { %3093 = vmatmul.msk.f32.gmra.mxu1 %vm538_vm4, %v1277_v61 }
 0xd3f   :  { %3094 = vmatmul.msk.f32.gmra.mxu1 %vm538_vm4, %v1278_v3 }
 0xd47   :  { %3095 = vmatmul.msk.f32.gmra.mxu1 %vm538_vm4, %v1279_v4 }
 0xd8c   :  { %v1313_v9 = vpop.f32.mrf.mxu1 }
 0xd92   :  { %v1355_v18 = vpop.f32.mrf.mxu2 }
 0xd94   :  { %v1316_v24 = vpop.f32.mrf.mxu1 }
 0xd9a   :  { %v1358_v25 = vpop.f32.mrf.mxu2 }
 0xd9c   :  { %v1319_v27 = vpop.f32.mrf.mxu1 }
 0xda2   :  { %v1361_v23 = vpop.f32.mrf.mxu2 }
 0xda4   :  { %v1322_v19 = vpop.f32.mrf.mxu1 }
 0xda5   :  { %1477 = vmatpush.msra.mxu0 %v1322_v19 }
 0xda7   :  { %1478 = vmatpush.msra.mxu0 %v1319_v27 }
 0xda9   :  { %1479 = vmatpush.msra.mxu0 %v1316_v24 }
 0xdaa   :  { %v1364_v2 = vpop.f32.mrf.mxu2 }
 0xdab   :  { %1412 = vmatpush.msra.mxu3 %v1364_v2  ;;  %1480 = vmatpush.msra.mxu0 %v1313_v9 }
 0xdac   :  { %v1528_v32 = vpop.f32.mrf.mxu1  ;;  %3082 = vmatmul.msk.f32.vlgmr.msra.gmra.mxu0 %vm1079_vm9, %v1325_v35 }
 0xdad   :  { %1413 = vmatpush.msra.mxu3 %v1361_v23 }
 0xdaf   :  { %1414 = vmatpush.msra.mxu3 %v1358_v25 }
 0xdb1   :  { %1415 = vmatpush.msra.mxu3 %v1355_v18 }
 0xdb2   :  { %3074 = vmatmul.msk.f32.vlgmr.msra.gmra.mxu3 %vm1079_vm9, %v3066_v36 }
 0xdb4   :  { %v1531_v37 = vpop.f32.mrf.mxu1  ;;  %3083 = vmatmul.msk.f32.gmra.mxu0 %vm1079_vm9, %v1326_v38 }
 0xdba   :  { %3075 = vmatmul.msk.f32.gmra.mxu3 %vm1079_vm9, %v3067_v33 }
 0xdbc   :  { %v1534_v40 = vpop.f32.mrf.mxu1  ;;  %3084 = vmatmul.msk.f32.gmra.mxu0 %vm1079_vm9, %v1327_v41 }
 0xdc2   :  { %3076 = vmatmul.msk.f32.gmra.mxu3 %vm1079_vm9, %v3068_v43 }
 0xdc4   :  { %v1537_v31 = vpop.f32.mrf.mxu1  ;;  %3085 = vmatmul.msk.f32.gmra.mxu0 %vm1079_vm9, %v1328_v44 }
 0xdc5   :  { %1585 = vmatpush.msrb.mxu2 %v1537_v31 }
 0xdc7   :  { %1586 = vmatpush.msrb.mxu2 %v1534_v40 }
 0xdc9   :  { %1587 = vmatpush.msrb.mxu2 %v1531_v37 }
 0xdca   :  { %3077 = vmatmul.msk.f32.gmra.mxu3 %vm1079_vm9, %v3069_v45 }
 0xdcb   :  { %1588 = vmatpush.msrb.mxu2 %v1528_v32 }
 0xdcc   :  { %3104 = vmatmul.msk.f32.vlgmr.msrb.gmra.mxu2 %vm1079_vm9, %v3096_v30  ;;  %3086 = vmatmul.msk.f32.gmra.mxu0 %vm1079_vm9, %v1329_v47 }
 0xdd2   :  { %3078 = vmatmul.msk.f32.gmra.mxu3 %vm1079_vm9, %v3070_v48 }
 0xdd4   :  { %3105 = vmatmul.msk.f32.gmra.mxu2 %vm1079_vm9, %v3097_v49  ;;  %3087 = vmatmul.msk.f32.gmra.mxu0 %vm1079_vm9, %v1330_v28 }
 0xdda   :  { %3079 = vmatmul.msk.f32.gmra.mxu3 %vm1079_vm9, %v3071_v51 }
 0xddc   :  { %3106 = vmatmul.msk.f32.gmra.mxu2 %vm1079_vm9, %v3098_v52  ;;  %3088 = vmatmul.msk.f32.gmra.mxu0 %vm1079_vm9, %v1331_v53 }
 0xde2   :  { %3080 = vmatmul.msk.f32.gmra.mxu3 %vm1079_vm9, %v3072_v54 }
 0xde4   :  { %3107 = vmatmul.msk.f32.gmra.mxu2 %vm1079_vm9, %v3099_v55  ;;  %3089 = vmatmul.msk.f32.gmra.mxu0 %vm1079_vm9, %v1332_v56 }
 0xdea   :  { %3081 = vmatmul.msk.f32.gmra.mxu3 %vm1079_vm9, %v3073_v57 }
 0xdec   :  { %3108 = vmatmul.msk.f32.gmra.mxu2 %vm1079_vm9, %v3100_v58 }
 0xdf4   :  { %3109 = vmatmul.msk.f32.gmra.mxu2 %vm1079_vm9, %v3101_v59 }
 0xdfc   :  { %3110 = vmatmul.msk.f32.gmra.mxu2 %vm1079_vm9, %v3102_v29 }
 0xe04   :  { %3111 = vmatmul.msk.f32.gmra.mxu2 %vm1079_vm9, %v3103_v60 }
 0xe29   :  { %v1482_v61 = vpop.f32.mrf.mxu0 }
 0xe31   :  { %v1485_v63 = vpop.f32.mrf.mxu0 }
 0xe35   :  { %v1417_v62 = vpop.f32.mrf.mxu3 }
 0xe36   :  { %v1483_v51 = vadd.f32 %v1482_v61, %v1417_v62 }
 0xe39   :  { %v1488_v1 = vpop.f32.mrf.mxu0 }
 0xe3d   :  { %v1420_v0 = vpop.f32.mrf.mxu3 }
 0xe3e   :  { %v1486_v49 = vadd.f32 %v1485_v63, %v1420_v0 }
 0xe41   :  { %v1491_v6 = vpop.f32.mrf.mxu0 }
 0xe45   :  { %v1423_v5 = vpop.f32.mrf.mxu3 }
 0xe46   :  { %v1489_v47 = vadd.f32 %v1488_v1, %v1423_v5 }
 0xe49   :  { %v1494_v9 = vpop.f32.mrf.mxu0 }
 0xe4d   :  { %v1426_v7 = vpop.f32.mrf.mxu3 }
 0xe4e   :  { %v1492_v45 = vadd.f32 %v1491_v6, %v1426_v7 }
 0xe4f   :  { %v1590_v3 = vpop.f32.mrf.mxu2 }
 0xe50   :  { %v1614_v54 = vadd.f32 %v1590_v3, %v1483_v51 }
 0xe51   :  { %v1497_v25 = vpop.f32.mrf.mxu0 }
 0xe55   :  { %v1429_v18 = vpop.f32.mrf.mxu3 }
 0xe56   :  { %v1495_v31 = vadd.f32 %v1494_v9, %v1429_v18  ;;  %v3332_v18 = vld [vmem:[%s5071_s19] sm:$0xf] }
 0xe57   :  { %v1593_v20 = vpop.f32.mrf.mxu2 }
 0xe58   :  { %v1615_v53 = vadd.f32 %v1593_v20, %v1486_v49  ;;  %v3338_v49 = vld [vmem:[%s5072_s20 + $0x28] sm:$0xff] }
 0xe59   :  { %v1500_v19 = vpop.f32.mrf.mxu0 }
 0xe5d   :  { %v1432_v27 = vpop.f32.mrf.mxu3 }
 0xe5e   :  { %v1498_v41 = vadd.f32 %v1497_v25, %v1432_v27  ;;  %v1790_v27 = vld [vmem:[%s5068_s16] sm:$0xf] }
 0xe5f   :  { %v1596_v4 = vpop.f32.mrf.mxu2 }
 0xe60   :  { %v1616_v52 = vadd.f32 %v1596_v4, %v1489_v47  ;;  %v3336_v47 = vld [vmem:[%s5072_s20 + $0x18] sm:$0xff] }
 0xe61   :  { %v1503_v37 = vpop.f32.mrf.mxu0 }
 0xe65   :  { %v1435_v32 = vpop.f32.mrf.mxu3 }
 0xe66   :  { %v1501_v33 = vadd.f32 %v1500_v19, %v1435_v32 }
 0xe67   :  { %v1599_v24 = vpop.f32.mrf.mxu2 }
 0xe68   :  { %v1617_v28 = vadd.f32 %v1599_v24, %v1492_v45  ;;  %v3334_v45 = vld [vmem:[%s5072_s20 + $0x8] sm:$0xff] }
 0xe6d   :  { %v1438_v36 = vpop.f32.mrf.mxu3 }
 0xe6e   :  { %v1504_v38 = vadd.f32 %v1503_v37, %v1438_v36 }
 0xe6f   :  { %v1602_v23 = vpop.f32.mrf.mxu2 }
 0xe70   :  { %v1618_v48 = vadd.f32 %v1602_v23, %v1495_v31 }
 0xe77   :  { %v1605_v2 = vpop.f32.mrf.mxu2 }
 0xe78   :  { %v1619_v30 = vadd.f32 %v1605_v2, %v1498_v41 }
 0xe7f   :  { %v1608_v35 = vpop.f32.mrf.mxu2 }
 0xe80   :  { %v1620_v44 = vadd.f32 %v1608_v35, %v1501_v33  ;;  %v1730_v33 = vld [vmem:[%s5067_s15] sm:$0xf] }
 0xe87   :  { %v1611_v40 = vpop.f32.mrf.mxu2 }
 0xe88   :  { %v1621_v43 = vadd.f32 %v1611_v40, %v1504_v38 }
 0xe8a   :  { %1630 = vmatpush.msra.mxu1 %v1621_v43 }
 0xe8c   :  { %1631 = vmatpush.msra.mxu1 %v1620_v44 }
 0xe8e   :  { %1632 = vmatpush.msra.mxu1 %v1619_v30 }
 0xe90   :  { %1633 = vmatpush.msra.mxu1 %v1618_v48 }
 0xe92   :  { %1634 = vmatpush.msra.mxu1 %v1617_v28 }
 0xe94   :  { %1635 = vmatpush.msra.mxu1 %v1616_v52 }
 0xe96   :  { %1636 = vmatpush.msra.mxu1 %v1615_v53 }
 0xe98   :  { %1637 = vmatpush.msra.mxu1 %v1614_v54 }
 0xe99   :  { %3112 = vmatmul.msk.f32.vlgmr.msra.gmra.mxu1 %vm509_vm1, %v3819_v8 }
 0xf16   :  { %v1639_v55 = vpop.f32.mrf.mxu1 }
 0xf17   :  { %v1642_v56 = vsel %vm533_vm2, %v1639_v55, 0.0 }
 0xf18   :  { %1643 = vadd.xlane.f32.xlu2 %v1642_v56 }
 0xf30   :  { %1793 = vperm.xlu2 %3323, %v1790_v27  }
 0xf8b   :  { %v1644_v57 = vpop.xlane.xlu2 %1643 }
 0xf8c   :  { %v1645_v58 = vmul.f32 0.0078125, %v1644_v57 }
 0xf8e   :  { %3113 = vmatpush.msk.msrb.mxu1 %vm563_vm3, %v1645_v58 }
 0xf8f   :  { %3114 = vmatmul.msk.f32.vlgmr.msrb.gmra.mxu1 %vm538_vm4, %v3827_v10 }
 0xf93   :  { %v1794_v31 = vpop.permute.xlu2 %1793 }
 0xf97   :  { %3115 = vmatmul.msk.f32.gmra.mxu1 %vm538_vm4, %v3835_v11 }
 0xf9f   :  { %3116 = vmatmul.msk.f32.gmra.mxu1 %vm538_vm4, %v3842_v12 }
 0xfa7   :  { %3117 = vmatmul.msk.f32.gmra.mxu1 %vm538_vm4, %v3849_v13 }
 0xfaf   :  { %3118 = vmatmul.msk.f32.gmra.mxu1 %vm538_vm4, %v3856_v14 }
 0xfb7   :  { %3119 = vmatmul.msk.f32.gmra.mxu1 %vm538_vm4, %v3863_v15 }
 0xfbf   :  { %3120 = vmatmul.msk.f32.gmra.mxu1 %vm538_vm4, %v3870_v16 }
 0xfc7   :  { %3121 = vmatmul.msk.f32.gmra.mxu1 %vm538_vm4, %v3877_v17 }
0x100c   :  { %v1666_v8 = vpop.f32.mrf.mxu1 }
0x100d   :  { %v4299_v6 = vsub.f32 %v1614_v54, %v1666_v8  ;;  %v3149_v54 = vld [vmem:[%s5062_s10 + $0x8] sm:$0xff] }
0x100f   :  { %v1698_v9 = vmul.f32 %v4299_v6, %v4299_v6 }
0x1014   :  { %v1669_v10 = vpop.f32.mrf.mxu1 }
0x1015   :  { %v4295_v5 = vsub.f32 %v1615_v53, %v1669_v10  ;;  %v1870_v53 = vld [vmem:[%s5062_s10] sm:$0xff] }
0x1016   :  { %1910 = vmatpush.msra.mxu2 %v1870_v53 }
0x1017   :  { %v1699_v4 = vmul.f32 %v4295_v5, %v4295_v5 }
0x101c   :  { %v1672_v11 = vpop.f32.mrf.mxu1 }
0x101d   :  { %v4291_v1 = vsub.f32 %v1616_v52, %v1672_v11  ;;  %v3340_v52 = vld [vmem:[%s5072_s20 + $0x38] sm:$0xff] }
0x101f   :  { %v1700_v7 = vmul.f32 %v4291_v1, %v4291_v1 }
0x1024   :  { %v1675_v59 = vpop.f32.mrf.mxu1 }
0x1025   :  { %v4287_v63 = vsub.f32 %v1617_v28, %v1675_v59  ;;  %v3339_v28 = vld [vmem:[%s5072_s20 + $0x30] sm:$0xff] }
0x1027   :  { %v1701_v20 = vmul.f32 %v4287_v63, %v4287_v63 }
0x102c   :  { %v1678_v12 = vpop.f32.mrf.mxu1 }
0x102d   :  { %v4283_v16 = vsub.f32 %v1618_v48, %v1678_v12  ;;  %v3337_v48 = vld [vmem:[%s5072_s20 + $0x20] sm:$0xff] }
0x102f   :  { %v1702_v3 = vmul.f32 %v4283_v16, %v4283_v16 }
0x1034   :  { %v1681_v29 = vpop.f32.mrf.mxu1 }
0x1035   :  { %v4279_v62 = vsub.f32 %v1619_v30, %v1681_v29  ;;  %v3335_v30 = vld [vmem:[%s5072_s20 + $0x10] sm:$0xff] }
0x1037   :  { %v1703_v0 = vmul.f32 %v4279_v62, %v4279_v62 }
0x103c   :  { %v1684_v60 = vpop.f32.mrf.mxu1 }
0x103d   :  { %v4275_v61 = vsub.f32 %v1620_v44, %v1684_v60  ;;  %v3333_v44 = vld [vmem:[%s5072_s20] sm:$0xff] }
0x103f   :  { %v1704_v17 = vmul.f32 %v4275_v61, %v4275_v61 }
0x1044   :  { %v1687_v13 = vpop.f32.mrf.mxu1 }
0x1045   :  { %v4277_v14 = vsub.f32 %v1621_v43, %v1687_v13 }
0x1047   :  { %v1705_v15 = vmul.f32 %v4277_v14, %v4277_v14 }
0x1049   :  { %1714 = vmatpush.msrb.mxu3 %v1705_v15 }
0x104b   :  { %1715 = vmatpush.msrb.mxu3 %v1704_v17 }
0x104d   :  { %1716 = vmatpush.msrb.mxu3 %v1703_v0 }
0x104f   :  { %1717 = vmatpush.msrb.mxu3 %v1702_v3 }
0x1051   :  { %1718 = vmatpush.msrb.mxu3 %v1701_v20 }
0x1053   :  { %1719 = vmatpush.msrb.mxu3 %v1700_v7 }
0x1055   :  { %1720 = vmatpush.msrb.mxu3 %v1699_v4 }
0x1057   :  { %1721 = vmatpush.msrb.mxu3 %v1698_v9 }
0x1058   :  { %3122 = vmatmul.msk.f32.vlgmr.msrb.gmra.mxu3 %vm509_vm1, %v3332_v18 }
0x1059   :  { %3132 = vmatpush.msk.msra.mxu3 %vm563_vm3, %v1794_v31 }
0x1060   :  { %3133 = vmatmul.msk.f32.vlgmr.msra.gmra.mxu3 %vm538_vm4, %v3333_v44 }
0x1068   :  { %3134 = vmatmul.msk.f32.gmra.mxu3 %vm538_vm4, %v3334_v45 }
0x1070   :  { %3135 = vmatmul.msk.f32.gmra.mxu3 %vm538_vm4, %v3335_v30 }
0x1078   :  { %3136 = vmatmul.msk.f32.gmra.mxu3 %vm538_vm4, %v3336_v47 }
0x1080   :  { %3137 = vmatmul.msk.f32.gmra.mxu3 %vm538_vm4, %v3337_v48 }
0x1088   :  { %3138 = vmatmul.msk.f32.gmra.mxu3 %vm538_vm4, %v3338_v49 }
0x1090   :  { %3139 = vmatmul.msk.f32.gmra.mxu3 %vm538_vm4, %v3339_v28 }
0x1098   :  { %3140 = vmatmul.msk.f32.gmra.mxu3 %vm538_vm4, %v3340_v52 }
0x10db   :  { %v1723_v24 = vpop.f32.mrf.mxu3 }
0x10dc   :  { %v1726_v25 = vsel %vm533_vm2, %v1723_v24, 0.0 }
0x10dd   :  { %1727 = vadd.xlane.f32.xlu1 %v1726_v25 }
0x10e3   :  { %v1814_v55 = vpop.f32.mrf.mxu3 }
0x10eb   :  { %v1817_v56 = vpop.f32.mrf.mxu3 }
0x10f3   :  { %v1820_v10 = vpop.f32.mrf.mxu3 }
0x10fb   :  { %v1823_v0 = vpop.f32.mrf.mxu3 }
0x1103   :  { %v1826_v4 = vpop.f32.mrf.mxu3 }
0x1150   :  { %v1728_v23 = vpop.xlane.xlu1 %1727 }
0x1151   :  { %v1729_v19 = vmul.f32 0.0078125, %v1728_v23  ;;  %v1829_v23 = vpop.f32.mrf.mxu3 }
0x1153   :  { %v1731_v2 = vadd.f32 1e-05, %v1729_v19 }
0x1155   :  { %3328 = vrsqrt.f32 %v1731_v2  ;;  %vm1738_vm15 = vweird.f32 %v1731_v2 }
0x115b   :  { %v3329_v32 = vpop.eup %3328 }
0x115c   :  { %v1733_v35 = vmul.f32 %v3329_v32, %v1731_v2  ;;  %vm1739_vm14 = vweird.f32 %v3329_v32 }
0x115d   :  { %vm1740_vm2 = vmor %vm1738_vm15, %vm1739_vm14 }
0x115e   :  { %v1734_v36 = vmul.f32 %v3329_v32, %v1733_v35 }
0x1160   :  { %v1735_v37 = vmul.f32 0.5, %v1734_v36 }
0x1162   :  { %v1736_v38 = vsub.f32 1.5, %v1735_v37 }
0x1164   :  { %v1737_v40 = vmul.f32 %v3329_v32, %v1736_v38 }
0x1166   :  { %v1741_v41 = vsel %vm1740_vm2, %v3329_v32, %v1737_v40 }
0x1167   :  { %v1742_v43 = vmul.f32 %v1741_v41, %v1730_v33 }
0x1169   :  { %1745 = vperm.xlu2 %3323, %v1742_v43  }
0x11c3   :  { %v1746_v51 = vpop.permute.xlu2 %1745 }
0x11c4   :  { %3123 = vmatpush.msk.msrb.mxu0 %vm563_vm3, %v1746_v51  ;;  %3316 = vmatpush.msk.msra.mxu1 %vm563_vm3, %v1746_v51 }
0x11c5   :  { %3124 = vmatmul.msk.f32.vlgmr.msrb.gmra.mxu0 %vm538_vm4, %v3333_v44  ;;  %3126 = vmatmul.msk.f32.vlgmr.msra.gmra.mxu1 %vm538_vm4, %v3335_v30 }
0x11c6   :  { %1969 = vmatpush.msrb.mxu1 %v3149_v54 }
0x11cd   :  { %3125 = vmatmul.msk.f32.gmra.mxu0 %vm538_vm4, %v3334_v45  ;;  %3127 = vmatmul.msk.f32.gmra.mxu1 %vm538_vm4, %v3336_v47 }
0x11d5   :  { %3128 = vmatmul.msk.f32.gmra.mxu1 %vm538_vm4, %v3337_v48 }
0x11dd   :  { %3129 = vmatmul.msk.f32.gmra.mxu1 %vm538_vm4, %v3338_v49 }
0x11e5   :  { %3130 = vmatmul.msk.f32.gmra.mxu1 %vm538_vm4, %v3339_v28 }
0x11ed   :  { %3131 = vmatmul.msk.f32.gmra.mxu1 %vm538_vm4, %v3340_v52 }
0x1242   :  { %v1766_v57 = vpop.f32.mrf.mxu0  ;;  %v1772_v58 = vpop.f32.mrf.mxu1 }
0x1243   :  { %v1838_v8 = vmul.f32 %v1766_v57, %v4299_v6  ;;  %v1840_v15 = vmul.f32 %v1772_v58, %v4291_v1 }
0x1245   :  { %v1846_v11 = vadd.f32 %v1838_v8, %v1814_v55  ;;  %v1848_v20 = vadd.f32 %v1840_v15, %v1820_v10  ;;  %v1936_v10 = vld [vmem:[%s5061_s9] sm:$0xff] }
0x1247   :  { %v1854_v59 = vmax.f32 %v1846_v11, 0.0  ;;  %v1856_v7 = vmax.f32 %v1848_v20, 0.0  ;;  %v3161_v20 = vld [vmem:[%s5061_s9 + $0x98] sm:$0xff] }
0x1249   :  { %v1862_v12 = vadd.f32 %v1854_v59, %v3966_v21  ;;  %v1864_v9 = vadd.f32 %v1856_v7, %v3980_v26  ;;  %v3206_v26 = vld [vmem:[%s5062_s10 + $0x10] sm:$0xff]  ;;  %v3158_v59 = vld [vmem:[%s5061_s9 + $0x80] sm:$0xff] }
0x124a   :  { %v1769_v29 = vpop.f32.mrf.mxu0  ;;  %v1775_v60 = vpop.f32.mrf.mxu1  ;;  %2255 = vmatpush.msrb.mxu2 %v3206_v26  ;;  %v3215_v7 = vld [vmem:[%s5061_s9 + $0x100] sm:$0xff] }
0x124b   :  { %v1839_v13 = vmul.f32 %v1769_v29, %v4295_v5  ;;  %3141 = vmatmul.msk.f32.vlgmr.msra.gmra.mxu2 %vm781_vm8, %v1862_v12  ;;  %3150 = vmatmul.msk.f32.vlgmr.msrb.gmra.mxu1 %vm781_vm8, %v1862_v12  ;;  %v1841_v5 = vmul.f32 %v1775_v60, %v4287_v63  ;;  %v3159_v60 = vld [vmem:[%s5061_s9 + $0x88] sm:$0xff]  ;;  %v3166_v26 = vld [vmem:[%s5061_s9 + $0xc0] sm:$0xff] }
0x124d   :  { %v1847_v17 = vadd.f32 %v1839_v13, %v1817_v56  ;;  %v1849_v18 = vadd.f32 %v1841_v5, %v1823_v0  ;;  %v1938_v13 = vld [vmem:[%s5061_s9 + $0x10] sm:$0xff]  ;;  %v1939_v0 = vld [vmem:[%s5061_s9 + $0x18] sm:$0xff]  ;;  %v1941_v5 = vld [vmem:[%s5061_s9 + $0x28] sm:$0xff] }
0x124f   :  { %v1855_v3 = vmax.f32 %v1847_v17, 0.0  ;;  %v1857_v1 = vmax.f32 %v1849_v18, 0.0  ;;  %v3160_v17 = vld [vmem:[%s5061_s9 + $0x90] sm:$0xff] }
0x1250   :  { %v1942_v18 = vld [vmem:[%s5061_s9 + $0x30] sm:$0xff] }
0x1251   :  { %v1863_v6 = vadd.f32 %v1855_v3, %v3973_v22  ;;  %v1865_v25 = vadd.f32 %v1857_v1, %v3987_v34  ;;  %v1832_v34 = vpop.f32.mrf.mxu3  ;;  %v3164_v1 = vld [vmem:[%s5061_s9 + $0xb0] sm:$0xff] }
0x1252   :  { %v1778_v21 = vpop.f32.mrf.mxu1 }
0x1253   :  { %3142 = vmatmul.msk.f32.gmra.mxu2 %vm781_vm8, %v1863_v6  ;;  %3151 = vmatmul.msk.f32.gmra.mxu1 %vm781_vm8, %v1863_v6  ;;  %v1842_v24 = vmul.f32 %v1778_v21, %v4283_v16  ;;  %v3162_v21 = vld [vmem:[%s5061_s9 + $0xa0] sm:$0xff] }
0x1255   :  { %v1850_v27 = vadd.f32 %v1842_v24, %v1826_v4  ;;  %v3163_v4 = vld [vmem:[%s5061_s9 + $0xa8] sm:$0xff]  ;;  %v3217_v24 = vld [vmem:[%s5061_s9 + $0x110] sm:$0xff] }
0x1257   :  { %v1858_v63 = vmax.f32 %v1850_v27, 0.0  ;;  %v3218_v27 = vld [vmem:[%s5061_s9 + $0x118] sm:$0xff] }
0x1259   :  { %v1866_v16 = vadd.f32 %v1858_v63, %v3994_v39  ;;  %v1835_v40 = vpop.f32.mrf.mxu3  ;;  %v3219_v63 = vld [vmem:[%s5061_s9 + $0x120] sm:$0xff] }
0x125a   :  { %v1781_v22 = vpop.f32.mrf.mxu1 }
0x125b   :  { %3143 = vmatmul.msk.f32.gmra.mxu2 %vm781_vm8, %v1864_v9  ;;  %3152 = vmatmul.msk.f32.gmra.mxu1 %vm781_vm8, %v1864_v9  ;;  %v1843_v19 = vmul.f32 %v1781_v22, %v4279_v62  ;;  %v1943_v22 = vld [vmem:[%s5061_s9 + $0x38] sm:$0xff] }
0x125d   :  { %v1851_v32 = vadd.f32 %v1843_v19, %v1829_v23  ;;  %v1944_v23 = vld [vmem:[%s5061_s9 + $0x40] sm:$0xff]  ;;  %v1945_v19 = vld [vmem:[%s5061_s9 + $0x48] sm:$0xff] }
0x125f   :  { %v1859_v35 = vmax.f32 %v1851_v32, 0.0  ;;  %v1946_v32 = vld [vmem:[%s5061_s9 + $0x50] sm:$0xff] }
0x1261   :  { %v1867_v37 = vadd.f32 %v1859_v35, %v4001_v42  ;;  %v3221_v35 = vld [vmem:[%s5061_s9 + $0x130] sm:$0xff] }
0x1262   :  { %v1784_v2 = vpop.f32.mrf.mxu1 }
0x1263   :  { %3144 = vmatmul.msk.f32.gmra.mxu2 %vm781_vm8, %v1865_v25  ;;  %3153 = vmatmul.msk.f32.gmra.mxu1 %vm781_vm8, %v1865_v25  ;;  %v1844_v36 = vmul.f32 %v1784_v2, %v4275_v61  ;;  %v3167_v2 = vld [vmem:[%s5061_s9 + $0xc8] sm:$0xff] }
0x1265   :  { %v1852_v38 = vadd.f32 %v1844_v36, %v1832_v34  ;;  %v3168_v34 = vld [vmem:[%s5061_s9 + $0xd0] sm:$0xff]  ;;  %v1947_v36 = vld [vmem:[%s5061_s9 + $0x58] sm:$0xff] }
0x1267   :  { %v1860_v62 = vmax.f32 %v1852_v38, 0.0  ;;  %v3222_v38 = vld [vmem:[%s5061_s9 + $0x138] sm:$0xff] }
0x1269   :  { %v1868_v41 = vadd.f32 %v1860_v62, %v4008_v46  ;;  %v3170_v62 = vld [vmem:[%s5061_s9 + $0xe0] sm:$0xff] }
0x126a   :  { %v1787_v33 = vpop.f32.mrf.mxu1 }
0x126b   :  { %3145 = vmatmul.msk.f32.gmra.mxu2 %vm781_vm8, %v1866_v16  ;;  %3154 = vmatmul.msk.f32.gmra.mxu1 %vm781_vm8, %v1866_v16  ;;  %v1845_v39 = vmul.f32 %v1787_v33, %v4277_v14  ;;  %v1948_v33 = vld [vmem:[%s5061_s9 + $0x60] sm:$0xff] }
0x126d   :  { %v1853_v43 = vadd.f32 %v1845_v39, %v1835_v40  ;;  %v3223_v39 = vld [vmem:[%s5061_s9 + $0x140] sm:$0xff]  ;;  %v1949_v40 = vld [vmem:[%s5061_s9 + $0x68] sm:$0xff] }
0x126f   :  { %v1861_v61 = vmax.f32 %v1853_v43, 0.0  ;;  %v3224_v43 = vld [vmem:[%s5061_s9 + $0x148] sm:$0xff] }
0x1271   :  { %v1869_v42 = vadd.f32 %v1861_v61, %v4015_v50  ;;  %v1950_v61 = vld [vmem:[%s5061_s9 + $0x70] sm:$0xff] }
0x1273   :  { %3146 = vmatmul.msk.f32.gmra.mxu2 %vm781_vm8, %v1867_v37  ;;  %3155 = vmatmul.msk.f32.gmra.mxu1 %vm781_vm8, %v1867_v37 }
0x127b   :  { %3147 = vmatmul.msk.f32.gmra.mxu2 %vm781_vm8, %v1868_v41  ;;  %3156 = vmatmul.msk.f32.gmra.mxu1 %vm781_vm8, %v1868_v41 }
0x1283   :  { %3148 = vmatmul.msk.f32.gmra.mxu2 %vm781_vm8, %v1869_v42  ;;  %3157 = vmatmul.msk.f32.gmra.mxu1 %vm781_vm8, %v1869_v42 }
0x128b   :  { %3207 = vmatmul.msk.f32.vlgmr.msrb.gmra.mxu2 %vm781_vm8, %v1862_v12  ;;  %v1937_v12 = vld [vmem:[%s5061_s9 + $0x8] sm:$0xff] }
0x1293   :  { %3208 = vmatmul.msk.f32.gmra.mxu2 %vm781_vm8, %v1863_v6  ;;  %v1940_v6 = vld [vmem:[%s5061_s9 + $0x20] sm:$0xff] }
0x129b   :  { %3209 = vmatmul.msk.f32.gmra.mxu2 %vm781_vm8, %v1864_v9  ;;  %v3216_v9 = vld [vmem:[%s5061_s9 + $0x108] sm:$0xff] }
0x12a3   :  { %3210 = vmatmul.msk.f32.gmra.mxu2 %vm781_vm8, %v1865_v25  ;;  %v3165_v25 = vld [vmem:[%s5061_s9 + $0xb8] sm:$0xff] }
0x12ab   :  { %3211 = vmatmul.msk.f32.gmra.mxu2 %vm781_vm8, %v1866_v16  ;;  %v3220_v16 = vld [vmem:[%s5061_s9 + $0x128] sm:$0xff] }
0x12b3   :  { %3212 = vmatmul.msk.f32.gmra.mxu2 %vm781_vm8, %v1867_v37  ;;  %v3169_v37 = vld [vmem:[%s5061_s9 + $0xd8] sm:$0xff] }
0x12bb   :  { %3213 = vmatmul.msk.f32.gmra.mxu2 %vm781_vm8, %v1868_v41  ;;  %v3171_v41 = vld [vmem:[%s5061_s9 + $0xe8] sm:$0xff] }
0x12c3   :  { %3214 = vmatmul.msk.f32.gmra.mxu2 %vm781_vm8, %v1869_v42  ;;  %v3172_v42 = vld [vmem:[%s5061_s9 + $0xf0] sm:$0xff] }
0x12c8   :  { %v1971_v46 = vpop.f32.mrf.mxu1 }
0x12ce   :  { %v1912_v50 = vpop.f32.mrf.mxu2 }
0x12d0   :  { %v1974_v14 = vpop.f32.mrf.mxu1 }
0x12d6   :  { %v1915_v31 = vpop.f32.mrf.mxu2 }
0x12d8   :  { %v1977_v44 = vpop.f32.mrf.mxu1 }
0x12de   :  { %v1918_v45 = vpop.f32.mrf.mxu2 }
0x12e0   :  { %v1980_v30 = vpop.f32.mrf.mxu1 }
0x12e6   :  { %v1921_v47 = vpop.f32.mrf.mxu2 }
0x12e8   :  { %v1983_v48 = vpop.f32.mrf.mxu1 }
0x12ee   :  { %v1924_v49 = vpop.f32.mrf.mxu2 }
0x12f0   :  { %v1986_v28 = vpop.f32.mrf.mxu1 }
0x12f6   :  { %v1927_v51 = vpop.f32.mrf.mxu2 }
0x12f8   :  { %v1989_v52 = vpop.f32.mrf.mxu1 }
0x12fe   :  { %v1930_v53 = vpop.f32.mrf.mxu2 }
0x1300   :  { %v1992_v54 = vpop.f32.mrf.mxu1 }
0x1301   :  { %2068 = vmatpush.msra.mxu0 %v1992_v54 }
0x1303   :  { %2069 = vmatpush.msra.mxu0 %v1989_v52 }
0x1305   :  { %2070 = vmatpush.msra.mxu0 %v1986_v28 }
0x1306   :  { %v1933_v55 = vpop.f32.mrf.mxu2 }
0x1307   :  { %2071 = vmatpush.msra.mxu0 %v1983_v48  ;;  %2181 = vmatpush.msrb.mxu3 %v1933_v55 }
0x1309   :  { %2072 = vmatpush.msra.mxu0 %v1980_v30  ;;  %2182 = vmatpush.msrb.mxu3 %v1930_v53  ;;  %v3227_v30 = vld [vmem:[%s5061_s9 + $0x160] sm:$0xff]  ;;  %v3230_v53 = vld [vmem:[%s5061_s9 + $0x178] sm:$0xff] }
0x130b   :  { %2073 = vmatpush.msra.mxu0 %v1977_v44  ;;  %2183 = vmatpush.msrb.mxu3 %v1927_v51  ;;  %v3229_v51 = vld [vmem:[%s5061_s9 + $0x170] sm:$0xff] }
0x130d   :  { %2074 = vmatpush.msra.mxu0 %v1974_v14  ;;  %2184 = vmatpush.msrb.mxu3 %v1924_v49  ;;  %v3173_v14 = vld [vmem:[%s5061_s9 + $0xf8] sm:$0xff]  ;;  %v3228_v49 = vld [vmem:[%s5061_s9 + $0x168] sm:$0xff] }
0x130e   :  { %v2257_v56 = vpop.f32.mrf.mxu2 }
0x130f   :  { %2075 = vmatpush.msra.mxu0 %v1971_v46  ;;  %2185 = vmatpush.msrb.mxu3 %v1921_v47  ;;  %v3225_v46 = vld [vmem:[%s5061_s9 + $0x150] sm:$0xff] }
0x1310   :  { %3174 = vmatmul.msk.f32.vlgmr.msra.gmra.mxu0 %vm509_vm1, %v3158_v59 }
0x1311   :  { %2186 = vmatpush.msrb.mxu3 %v1918_v45 }
0x1313   :  { %2187 = vmatpush.msrb.mxu3 %v1915_v31  ;;  %v3226_v31 = vld [vmem:[%s5061_s9 + $0x158] sm:$0xff] }
0x1315   :  { %2188 = vmatpush.msrb.mxu3 %v1912_v50  ;;  %v1951_v50 = vld [vmem:[%s5061_s9 + $0x78] sm:$0xff] }
0x1316   :  { %v2260_v57 = vpop.f32.mrf.mxu2  ;;  %3190 = vmatmul.msk.f32.vlgmr.msrb.gmra.mxu3 %vm509_vm1, %v1936_v10 }
0x1318   :  { %3175 = vmatmul.msk.f32.gmra.mxu0 %vm509_vm1, %v3159_v60 }
0x131e   :  { %v2263_v58 = vpop.f32.mrf.mxu2  ;;  %3191 = vmatmul.msk.f32.gmra.mxu3 %vm509_vm1, %v1937_v12 }
0x1320   :  { %3176 = vmatmul.msk.f32.gmra.mxu0 %vm509_vm1, %v3160_v17 }
0x1326   :  { %v2266_v8 = vpop.f32.mrf.mxu2  ;;  %3192 = vmatmul.msk.f32.gmra.mxu3 %vm509_vm1, %v1938_v13 }
0x1328   :  { %3177 = vmatmul.msk.f32.gmra.mxu0 %vm509_vm1, %v3161_v20 }
0x132e   :  { %v2269_v11 = vpop.f32.mrf.mxu2  ;;  %3193 = vmatmul.msk.f32.gmra.mxu3 %vm509_vm1, %v1939_v0 }
0x1330   :  { %3178 = vmatmul.msk.f32.gmra.mxu0 %vm509_vm1, %v3162_v21 }
0x1336   :  { %v2272_v29 = vpop.f32.mrf.mxu2  ;;  %3194 = vmatmul.msk.f32.gmra.mxu3 %vm509_vm1, %v1940_v6 }
0x1338   :  { %3179 = vmatmul.msk.f32.gmra.mxu0 %vm509_vm1, %v3163_v4 }
0x133e   :  { %v2275_v15 = vpop.f32.mrf.mxu2  ;;  %3195 = vmatmul.msk.f32.gmra.mxu3 %vm509_vm1, %v1941_v5 }
0x1340   :  { %3180 = vmatmul.msk.f32.gmra.mxu0 %vm509_vm1, %v3164_v1 }
0x1346   :  { %v2278_v3 = vpop.f32.mrf.mxu2  ;;  %3196 = vmatmul.msk.f32.gmra.mxu3 %vm509_vm1, %v1942_v18 }
0x1347   :  { %2354 = vmatpush.msra.mxu1 %v2278_v3 }
0x1348   :  { %3181 = vmatmul.msk.f32.gmra.mxu0 %vm509_vm1, %v3165_v25 }
0x1349   :  { %2355 = vmatpush.msra.mxu1 %v2275_v15 }
0x134b   :  { %2356 = vmatpush.msra.mxu1 %v2272_v29 }
0x134d   :  { %2357 = vmatpush.msra.mxu1 %v2269_v11 }
0x134e   :  { %3197 = vmatmul.msk.f32.gmra.mxu3 %vm509_vm1, %v1943_v22 }
0x134f   :  { %2358 = vmatpush.msra.mxu1 %v2266_v8 }
0x1350   :  { %3182 = vmatmul.msk.f32.gmra.mxu0 %vm509_vm1, %v3166_v26 }
0x1351   :  { %2359 = vmatpush.msra.mxu1 %v2263_v58 }
0x1353   :  { %2360 = vmatpush.msra.mxu1 %v2260_v57 }
0x1355   :  { %2361 = vmatpush.msra.mxu1 %v2257_v56 }
0x1356   :  { %3231 = vmatmul.msk.f32.vlgmr.msra.gmra.mxu1 %vm509_vm1, %v3215_v7  ;;  %3198 = vmatmul.msk.f32.gmra.mxu3 %vm509_vm1, %v1944_v23 }
0x1358   :  { %3183 = vmatmul.msk.f32.gmra.mxu0 %vm509_vm1, %v3167_v2 }
0x135e   :  { %3232 = vmatmul.msk.f32.gmra.mxu1 %vm509_vm1, %v3216_v9  ;;  %3199 = vmatmul.msk.f32.gmra.mxu3 %vm509_vm1, %v1945_v19 }
0x1360   :  { %3184 = vmatmul.msk.f32.gmra.mxu0 %vm509_vm1, %v3168_v34 }
0x1366   :  { %3233 = vmatmul.msk.f32.gmra.mxu1 %vm509_vm1, %v3217_v24  ;;  %3200 = vmatmul.msk.f32.gmra.mxu3 %vm509_vm1, %v1946_v32 }
0x1368   :  { %3185 = vmatmul.msk.f32.gmra.mxu0 %vm509_vm1, %v3169_v37 }
0x136e   :  { %3234 = vmatmul.msk.f32.gmra.mxu1 %vm509_vm1, %v3218_v27  ;;  %3201 = vmatmul.msk.f32.gmra.mxu3 %vm509_vm1, %v1947_v36 }
0x1370   :  { %3186 = vmatmul.msk.f32.gmra.mxu0 %vm509_vm1, %v3170_v62 }
0x1376   :  { %3235 = vmatmul.msk.f32.gmra.mxu1 %vm509_vm1, %v3219_v63  ;;  %3202 = vmatmul.msk.f32.gmra.mxu3 %vm509_vm1, %v1948_v33 }
0x1378   :  { %3187 = vmatmul.msk.f32.gmra.mxu0 %vm509_vm1, %v3171_v41 }
0x137e   :  { %3236 = vmatmul.msk.f32.gmra.mxu1 %vm509_vm1, %v3220_v16  ;;  %3203 = vmatmul.msk.f32.gmra.mxu3 %vm509_vm1, %v1949_v40 }
0x1380   :  { %3188 = vmatmul.msk.f32.gmra.mxu0 %vm509_vm1, %v3172_v42 }
0x1386   :  { %3237 = vmatmul.msk.f32.gmra.mxu1 %vm509_vm1, %v3221_v35  ;;  %3204 = vmatmul.msk.f32.gmra.mxu3 %vm509_vm1, %v1950_v61 }
0x1388   :  { %3189 = vmatmul.msk.f32.gmra.mxu0 %vm509_vm1, %v3173_v14 }
0x138d   :  { %v4586_v44 = vpop.f32.mrf.mxu0 }
0x138e   :  { %3238 = vmatmul.msk.f32.gmra.mxu1 %vm509_vm1, %v3222_v38  ;;  %3205 = vmatmul.msk.f32.gmra.mxu3 %vm509_vm1, %v1951_v50 }
0x1395   :  { %v4594_v47 = vpop.f32.mrf.mxu0 }
0x1396   :  { %3239 = vmatmul.msk.f32.gmra.mxu1 %vm509_vm1, %v3223_v39 }
0x1399   :  { %v4588_v45 = vpop.f32.mrf.mxu3 }
0x139d   :  { %v4602_v28 = vpop.f32.mrf.mxu0 }
0x139e   :  { %3240 = vmatmul.msk.f32.gmra.mxu1 %vm509_vm1, %v3224_v43 }
0x13a1   :  { %v4596_v48 = vpop.f32.mrf.mxu3 }
0x13a5   :  { %v4613_v54 = vpop.f32.mrf.mxu0 }
0x13a6   :  { %3241 = vmatmul.msk.f32.gmra.mxu1 %vm509_vm1, %v3225_v46 }
0x13a9   :  { %v4607_v52 = vpop.f32.mrf.mxu3 }
0x13ad   :  { %v4620_v57 = vpop.f32.mrf.mxu0 }
0x13ae   :  { %3242 = vmatmul.msk.f32.gmra.mxu1 %vm509_vm1, %v3226_v31 }
0x13b1   :  { %v4615_v55 = vpop.f32.mrf.mxu3 }
0x13b5   :  { %v2092_v10 = vpop.f32.mrf.mxu0 }
0x13b6   :  { %3243 = vmatmul.msk.f32.gmra.mxu1 %vm509_vm1, %v3227_v30 }
0x13b9   :  { %v4622_v58 = vpop.f32.mrf.mxu3 }
0x13bd   :  { %v2095_v12 = vpop.f32.mrf.mxu0 }
0x13be   :  { %3244 = vmatmul.msk.f32.gmra.mxu1 %vm509_vm1, %v3228_v49 }
0x13c1   :  { %v2205_v11 = vpop.f32.mrf.mxu3 }
0x13c5   :  { %v2098_v15 = vpop.f32.mrf.mxu0 }
0x13c6   :  { %3245 = vmatmul.msk.f32.gmra.mxu1 %vm509_vm1, %v3229_v51 }
0x13c9   :  { %v2208_v60 = vpop.f32.mrf.mxu3 }
0x13cd   :  { %v2101_v3 = vpop.f32.mrf.mxu0 }
0x13ce   :  { %3246 = vmatmul.msk.f32.gmra.mxu1 %vm509_vm1, %v3230_v53  ;;  %vm2464_vm1 = vcmask 125952  }
0x13d1   :  { %v2211_v17 = vpop.f32.mrf.mxu3 }
0x13d2   :  { %v2212_v53 = vadd.f32 %v2211_v17, %v2098_v15  ;;  %v2200_v15 = vadd.f32 %v4615_v55, %v4613_v54  ;;  %v2191_v54 = vadd.f32 %v4588_v45, %v4586_v44 }
0x13d3   :  { %v4618_v56 = vpop.f32.mrf.mxu1 }
0x13d5   :  { %v2104_v21 = vpop.f32.mrf.mxu0 }
0x13d9   :  { %v2214_v20 = vpop.f32.mrf.mxu3 }
0x13da   :  { %v2215_v4 = vadd.f32 %v2214_v20, %v2101_v3  ;;  %v2209_v20 = vadd.f32 %v2208_v60, %v2095_v12  ;;  %v4720_v12 = vld [vmem:[%s5070_s18 + $0x10] sm:$0xff]  ;;  %v4734_v60 = vld [vmem:[%s5070_s18 + $0x20] sm:$0xff] }
0x13db   :  { %v4624_v8 = vpop.f32.mrf.mxu1 }
0x13dd   :  { %v2107_v9 = vpop.f32.mrf.mxu0 }
0x13e1   :  { %v2217_v7 = vpop.f32.mrf.mxu3 }
0x13e2   :  { %v2218_v30 = vadd.f32 %v2217_v7, %v2104_v21  ;;  %v2203_v21 = vadd.f32 %v4622_v58, %v4620_v57  ;;  %v2194_v57 = vadd.f32 %v4596_v48, %v4594_v47  ;;  %v4691_v47 = vadd.f32 %v4618_v56, %v2191_v54  ;;  %v4697_v48 = vld [vmem:[%s5069_s17] sm:$0xf] }
0x13e3   :  { %v4626_v59 = vpop.f32.mrf.mxu1  ;;  %v4705_v56 = vld [vmem:[%s5070_s18] sm:$0xff] }
0x13e5   :  { %v2110_v25 = vpop.f32.mrf.mxu0 }
0x13e9   :  { %v2220_v1 = vpop.f32.mrf.mxu3 }
0x13ea   :  { %v2221_v14 = vadd.f32 %v2220_v1, %v2107_v9  ;;  %v4776_v1 = vld [vmem:[%s5070_s18 + $0x50] sm:$0xff] }
0x13eb   :  { %v4628_v29 = vpop.f32.mrf.mxu1 }
0x13ec   :  { %v4677_v58 = vadd.f32 %v4628_v29, %v2200_v15  ;;  %v4727_v29 = vld [vmem:[%s5070_s18 + $0x18] sm:$0xff] }
0x13ed   :  { %v2113_v26 = vpop.f32.mrf.mxu0 }
0x13f1   :  { %v2223_v27 = vpop.f32.mrf.mxu3 }
0x13f2   :  { %v2224_v46 = vadd.f32 %v2223_v27, %v2110_v25  ;;  %v4790_v25 = vld [vmem:[%s5070_s18 + $0x60] sm:$0xff]  ;;  %v4797_v27 = vld [vmem:[%s5070_s18 + $0x68] sm:$0xff] }
0x13f3   :  { %v4630_v13 = vpop.f32.mrf.mxu1 }
0x13f5   :  { %v2116_v2 = vpop.f32.mrf.mxu0 }
0x13f9   :  { %v2226_v63 = vpop.f32.mrf.mxu3 }
0x13fa   :  { %v2227_v61 = vadd.f32 %v2226_v63, %v2113_v26  ;;  %v4811_v26 = vld [vmem:[%s5070_s18 + $0x78] sm:$0xff] }
0x13fb   :  { %v2378_v0 = vpop.f32.mrf.mxu1 }
0x13fd   :  { %v2119_v34 = vpop.f32.mrf.mxu0 }
0x1401   :  { %v2229_v16 = vpop.f32.mrf.mxu3 }
0x1402   :  { %v2230_v41 = vadd.f32 %v2229_v16, %v2116_v2 }
0x1403   :  { %v2381_v6 = vpop.f32.mrf.mxu1 }
0x1404   :  { %v4660_v7 = vadd.f32 %v2381_v6, %v2209_v20  ;;  %v4755_v6 = vld [vmem:[%s5070_s18 + $0x38] sm:$0xff] }
0x1405   :  { %v2122_v38 = vpop.f32.mrf.mxu0 }
0x1409   :  { %v2232_v36 = vpop.f32.mrf.mxu3 }
0x140a   :  { %v2233_v39 = vadd.f32 %v2232_v36, %v2119_v34 }
0x140b   :  { %v2384_v5 = vpop.f32.mrf.mxu1 }
0x140c   :  { %v4655_v9 = vadd.f32 %v2384_v5, %v2212_v53  ;;  %v4762_v5 = vld [vmem:[%s5070_s18 + $0x40] sm:$0xff] }
0x1411   :  { %v2235_v33 = vpop.f32.mrf.mxu3 }
0x1412   :  { %v2236_v62 = vadd.f32 %v2235_v33, %v2122_v38 }
0x1413   :  { %v2387_v18 = vpop.f32.mrf.mxu1 }
0x1414   :  { %v4632_v24 = vadd.f32 %v2387_v18, %v2215_v4  ;;  %v2206_v4 = vadd.f32 %v2205_v11, %v2092_v10  ;;  %v2197_v10 = vadd.f32 %v4607_v52, %v4602_v28  ;;  %v4671_v11 = vadd.f32 %v4630_v13, %v2203_v21  ;;  %v4741_v13 = vld [vmem:[%s5070_s18 + $0x28] sm:$0xff] }
0x1415   :  { %v4687_v28 = vadd.f32 %v4624_v8, %v2194_v57  ;;  %v4769_v18 = vld [vmem:[%s5070_s18 + $0x48] sm:$0xff] }
0x1416   :  { %v4665_v17 = vadd.f32 %v2378_v0, %v2206_v4  ;;  %v4683_v55 = vadd.f32 %v4626_v59, %v2197_v10  ;;  %v4713_v59 = vld [vmem:[%s5070_s18 + $0x8] sm:$0xff]  ;;  %v4748_v0 = vld [vmem:[%s5070_s18 + $0x30] sm:$0xff] }
0x141b   :  { %v2390_v22 = vpop.f32.mrf.mxu1 }
0x141c   :  { %v4651_v3 = vadd.f32 %v2390_v22, %v2218_v30  ;;  %v4783_v22 = vld [vmem:[%s5070_s18 + $0x58] sm:$0xff] }
0x1423   :  { %v2393_v23 = vpop.f32.mrf.mxu1 }
0x1424   :  { %v4648_v51 = vadd.f32 %v2393_v23, %v2221_v14  ;;  %v4804_v23 = vld [vmem:[%s5070_s18 + $0x70] sm:$0xff] }
0x142b   :  { %v2396_v19 = vpop.f32.mrf.mxu1 }
0x142c   :  { %v4645_v49 = vadd.f32 %v2396_v19, %v2224_v46 }
0x1433   :  { %v2399_v32 = vpop.f32.mrf.mxu1 }
0x1434   :  { %v4642_v31 = vadd.f32 %v2399_v32, %v2227_v61 }
0x143b   :  { %v2402_v35 = vpop.f32.mrf.mxu1 }
0x143c   :  { %v4639_v50 = vadd.f32 %v2402_v35, %v2230_v41 }
0x1443   :  { %v2405_v37 = vpop.f32.mrf.mxu1 }
0x1444   :  { %v4636_v42 = vadd.f32 %v2405_v37, %v2233_v39 }
0x144b   :  { %v2408_v40 = vpop.f32.mrf.mxu1 }
0x144c   :  { %v4634_v43 = vadd.f32 %v2408_v40, %v2236_v62 }
0x144e   :  { %2444 = vmatpush.msra.mxu2 %v4634_v43 }
0x1450   :  { %2445 = vmatpush.msra.mxu2 %v4636_v42 }
0x1452   :  { %2446 = vmatpush.msra.mxu2 %v4639_v50 }
0x1454   :  { %2447 = vmatpush.msra.mxu2 %v4642_v31 }
0x1456   :  { %2448 = vmatpush.msra.mxu2 %v4645_v49 }
0x1458   :  { %2449 = vmatpush.msra.mxu2 %v4648_v51 }
0x145a   :  { %2450 = vmatpush.msra.mxu2 %v4651_v3 }
0x145c   :  { %2451 = vmatpush.msra.mxu2 %v4632_v24 }
0x145e   :  { %2452 = vmatpush.msra.mxu2 %v4655_v9 }
0x1460   :  { %2453 = vmatpush.msra.mxu2 %v4660_v7 }
0x1462   :  { %2454 = vmatpush.msra.mxu2 %v4665_v17 }
0x1464   :  { %2455 = vmatpush.msra.mxu2 %v4671_v11 }
0x1466   :  { %2456 = vmatpush.msra.mxu2 %v4677_v58 }
0x1468   :  { %2457 = vmatpush.msra.mxu2 %v4683_v55 }
0x146a   :  { %2458 = vmatpush.msra.mxu2 %v4687_v28 }
0x146c   :  { %2459 = vmatpush.msra.mxu2 %v4691_v47 }
0x146d   :  { %2460 = vmatmul.f32.vlgmr.msra.gmra.mxu2 %v4697_v48 }
0x14f0   :  { %v2461_v44 = vpop.f32.mrf.mxu2 }
0x14f1   :  { %v2465_v45 = vsel %vm2464_vm1, %v2461_v44, 0.0 }
0x14f2   :  { %2466 = vadd.xlane.f32.xlu0 %v2465_v45 }
0x1565   :  { %v2467_v52 = vpop.xlane.xlu0 %2466 }
0x1566   :  { %v2468_v8 = vmul.f32 0.001953125, %v2467_v52 }
0x1568   :  { %3247 = vmatpush.msk.msrb.mxu2 %vm563_vm3, %v2468_v8 }
0x1569   :  { %3248 = vmatmul.msk.f32.vlgmr.msrb.gmra.mxu2 %vm538_vm4, %v4705_v56 }
0x1571   :  { %3249 = vmatmul.msk.f32.gmra.mxu2 %vm538_vm4, %v4713_v59 }
0x1579   :  { %3250 = vmatmul.msk.f32.gmra.mxu2 %vm538_vm4, %v4720_v12 }
0x1581   :  { %3251 = vmatmul.msk.f32.gmra.mxu2 %vm538_vm4, %v4727_v29 }
0x1589   :  { %3252 = vmatmul.msk.f32.gmra.mxu2 %vm538_vm4, %v4734_v60 }
0x1591   :  { %3253 = vmatmul.msk.f32.gmra.mxu2 %vm538_vm4, %v4741_v13 }
0x1599   :  { %3254 = vmatmul.msk.f32.gmra.mxu2 %vm538_vm4, %v4748_v0 }
0x15a1   :  { %3255 = vmatmul.msk.f32.gmra.mxu2 %vm538_vm4, %v4755_v6 }
0x15a9   :  { %3256 = vmatmul.msk.f32.gmra.mxu2 %vm538_vm4, %v4762_v5 }
0x15b1   :  { %3257 = vmatmul.msk.f32.gmra.mxu2 %vm538_vm4, %v4769_v18 }
0x15b9   :  { %3258 = vmatmul.msk.f32.gmra.mxu2 %vm538_vm4, %v4776_v1 }
0x15c1   :  { %3259 = vmatmul.msk.f32.gmra.mxu2 %vm538_vm4, %v4783_v22 }
0x15c9   :  { %3260 = vmatmul.msk.f32.gmra.mxu2 %vm538_vm4, %v4790_v25 }
0x15d1   :  { %3261 = vmatmul.msk.f32.gmra.mxu2 %vm538_vm4, %v4797_v27 }
0x15d9   :  { %3262 = vmatmul.msk.f32.gmra.mxu2 %vm538_vm4, %v4804_v23 }
0x15e1   :  { %3263 = vmatmul.msk.f32.gmra.mxu2 %vm538_vm4, %v4811_v26 }
0x15ec   :  { %v2537_v63 = vpop.f32.mrf.mxu2 }
0x15f4   :  { %v2540_v19 = vpop.f32.mrf.mxu2 }
0x15fc   :  { %v2543_v2 = vpop.f32.mrf.mxu2 }
0x1604   :  { %v2546_v16 = vpop.f32.mrf.mxu2 }
0x160c   :  { %v2549_v32 = vpop.f32.mrf.mxu2 }
0x1614   :  { %v2552_v34 = vpop.f32.mrf.mxu2 }
0x161c   :  { %v2555_v35 = vpop.f32.mrf.mxu2 }
0x1624   :  { %v2558_v36 = vpop.f32.mrf.mxu2 }
0x162c   :  { %v2561_v37 = vpop.f32.mrf.mxu2 }
0x1634   :  { %v2564_v38 = vpop.f32.mrf.mxu2 }
0x163c   :  { %v2567_v33 = vpop.f32.mrf.mxu2 }
0x1644   :  { %v2570_v62 = vpop.f32.mrf.mxu2 }
0x1645   :  { %v4832_v21 = vsub.f32 %v4645_v49, %v2570_v62  ;;  %v4847_v49 = vsub.f32 %v4632_v24, %v2561_v37  ;;  %v4862_v24 = vsub.f32 %v4665_v17, %v2552_v34  ;;  %v4877_v17 = vsub.f32 %v4683_v55, %v2543_v2  ;;  %v2641_v62 = vld [vmem:[%s5063_s11] sm:$0xf] }
0x1647   :  { %v2612_v15 = vmul.f32 %v4832_v21, %v4832_v21  ;;  %v2609_v54 = vmul.f32 %v4847_v49, %v4847_v49  ;;  %v2606_v52 = vmul.f32 %v4862_v24, %v4862_v24 }
0x164c   :  { %v2573_v39 = vpop.f32.mrf.mxu2 }
0x164d   :  { %v4827_v20 = vsub.f32 %v4642_v31, %v2573_v39  ;;  %v4842_v31 = vsub.f32 %v4651_v3, %v2564_v38  ;;  %v4857_v3 = vsub.f32 %v4660_v7, %v2555_v35  ;;  %v4872_v7 = vsub.f32 %v4677_v58, %v2546_v16 }
0x164e   :  { %v4887_v58 = vsub.f32 %v4691_v47, %v2537_v63  ;;  %v2603_v16 = vmul.f32 %v4877_v17, %v4877_v17 }
0x164f   :  { %v2610_v57 = vmul.f32 %v4842_v31, %v4842_v31  ;;  %v2607_v45 = vmul.f32 %v4857_v3, %v4857_v3 }
0x1650   :  { %v2601_v2 = vmul.f32 %v4887_v58, %v4887_v58 }
0x1654   :  { %v2576_v40 = vpop.f32.mrf.mxu2 }
0x1655   :  { %v4822_v30 = vsub.f32 %v4639_v50, %v2576_v40  ;;  %v2613_v50 = vmul.f32 %v4827_v20, %v4827_v20 }
0x165c   :  { %v2579_v41 = vpop.f32.mrf.mxu2 }
0x165d   :  { %v4816_v46 = vsub.f32 %v4636_v42, %v2579_v41  ;;  %v4837_v42 = vsub.f32 %v4648_v51, %v2567_v33  ;;  %v4852_v51 = vsub.f32 %v4655_v9, %v2558_v36  ;;  %v4867_v9 = vsub.f32 %v4671_v11, %v2549_v32  ;;  %v2725_v41 = vld [vmem:[%s5064_s12] sm:$0xf]  ;;  %s3384_s12 = smov [#allocation2]  }
0x165e   :  { %v4882_v11 = vsub.f32 %v4687_v28, %v2540_v19  ;;  %v2604_v32 = vmul.f32 %v4872_v7, %v4872_v7  ;;  %s2881_s21 = sshll.u32 %s3384_s12, 4  ;;  %s2882_s21 = int_to_ptr.vmem [resolvable:$true] %s2881_s21 }
0x165f   :  { %v2615_v4 = vmul.f32 %v4816_v46, %v4816_v46  ;;  %v2611_v10 = vmul.f32 %v4837_v42, %v4837_v42  ;;  %v2608_v44 = vmul.f32 %v4852_v51, %v4852_v51  ;;  %v2605_v8 = vmul.f32 %v4867_v9, %v4867_v9 }
0x1660   :  { %v2602_v55 = vmul.f32 %v4882_v11, %v4882_v11 }
0x1664   :  { %v2582_v61 = vpop.f32.mrf.mxu2 }
0x1665   :  { %v4819_v14 = vsub.f32 %v4634_v43, %v2582_v61  ;;  %v2614_v43 = vmul.f32 %v4822_v30, %v4822_v30 }
0x1667   :  { %v2616_v53 = vmul.f32 %v4819_v14, %v4819_v14 }
0x1669   :  { %2617 = vmatpush.msrb.mxu0 %v2616_v53 }
0x166b   :  { %2618 = vmatpush.msrb.mxu0 %v2615_v4 }
0x166d   :  { %2619 = vmatpush.msrb.mxu0 %v2614_v43 }
0x166f   :  { %2620 = vmatpush.msrb.mxu0 %v2613_v50 }
0x1671   :  { %2621 = vmatpush.msrb.mxu0 %v2612_v15  ;;  %v3343_v15 = vld [vmem:[%s5090_s2 + $0x10] sm:$0xff] }
0x1673   :  { %2622 = vmatpush.msrb.mxu0 %v2611_v10 }
0x1675   :  { %2623 = vmatpush.msrb.mxu0 %v2610_v57 }
0x1677   :  { %2624 = vmatpush.msrb.mxu0 %v2609_v54 }
0x1679   :  { %2625 = vmatpush.msrb.mxu0 %v2608_v44 }
0x167b   :  { %2626 = vmatpush.msrb.mxu0 %v2607_v45 }
0x167d   :  { %2627 = vmatpush.msrb.mxu0 %v2606_v52 }
0x167f   :  { %2628 = vmatpush.msrb.mxu0 %v2605_v8 }
0x1681   :  { %2629 = vmatpush.msrb.mxu0 %v2604_v32 }
0x1683   :  { %2630 = vmatpush.msrb.mxu0 %v2603_v16 }
0x1685   :  { %2631 = vmatpush.msrb.mxu0 %v2602_v55 }
0x1687   :  { %2632 = vmatpush.msrb.mxu0 %v2601_v2 }
0x1688   :  { %2633 = vmatmul.f32.vlgmr.msrb.gmra.mxu0 %v4697_v48 }
0x1705   :  { %v2634_v28 = vpop.f32.mrf.mxu0 }
0x1706   :  { %v2637_v19 = vsel %vm2464_vm1, %v2634_v28, 0.0 }
0x1707   :  { %2638 = vadd.xlane.f32.xlu2 %v2637_v19 }
0x177a   :  { %v2639_v47 = vpop.xlane.xlu2 %2638 }
0x177b   :  { %v2640_v63 = vmul.f32 0.001953125, %v2639_v47 }
0x177d   :  { %v2642_v34 = vadd.f32 1e-05, %v2640_v63 }
0x177f   :  { %3330 = vrsqrt.f32 %v2642_v34  ;;  %vm2649_vm6 = vweird.f32 %v2642_v34 }
0x1785   :  { %v3331_v35 = vpop.eup %3330 }
0x1786   :  { %v2644_v36 = vmul.f32 %v3331_v35, %v2642_v34  ;;  %vm2650_vm5 = vweird.f32 %v3331_v35 }
0x1787   :  { %vm2651_vm7 = vmor %vm2649_vm6, %vm2650_vm5 }
0x1788   :  { %v2645_v37 = vmul.f32 %v3331_v35, %v2644_v36 }
0x178a   :  { %v2646_v38 = vmul.f32 0.5, %v2645_v37 }
0x178c   :  { %v2647_v33 = vsub.f32 1.5, %v2646_v38 }
0x178e   :  { %v2648_v48 = vmul.f32 %v3331_v35, %v2647_v33 }
0x1790   :  { %v2652_v39 = vsel %vm2651_vm7, %v3331_v35, %v2648_v48 }
0x1791   :  { %v2653_v40 = vmul.f32 %v2652_v39, %v2641_v62 }
0x1793   :  { %2656 = vperm.xlu1 %3321, %v2653_v40  }
0x179b   :  { %2728 = vperm.xlu1 %3321, %v2725_v41  }
0x1805   :  { %v2657_v61 = vpop.permute.xlu1 %2656 }
0x1806   :  { %3264 = vmatpush.msk.msra.mxu3 %vm563_vm3, %v2657_v61 }
0x1807   :  { %3265 = vmatmul.msk.f32.vlgmr.msra.gmra.mxu3 %vm538_vm4, %v4705_v56 }
0x180d   :  { %v2729_v53 = vpop.permute.xlu1 %2728 }
0x180e   :  { %3281 = vmatpush.msk.msra.mxu0 %vm563_vm3, %v2729_v53 }
0x180f   :  { %3266 = vmatmul.msk.f32.gmra.mxu3 %vm538_vm4, %v4713_v59  ;;  %3282 = vmatmul.msk.f32.vlgmr.msra.gmra.mxu0 %vm538_vm4, %v4705_v56 }
0x1817   :  { %3267 = vmatmul.msk.f32.gmra.mxu3 %vm538_vm4, %v4720_v12  ;;  %3283 = vmatmul.msk.f32.gmra.mxu0 %vm538_vm4, %v4713_v59 }
0x181f   :  { %3268 = vmatmul.msk.f32.gmra.mxu3 %vm538_vm4, %v4727_v29  ;;  %3284 = vmatmul.msk.f32.gmra.mxu0 %vm538_vm4, %v4720_v12 }
0x1827   :  { %3269 = vmatmul.msk.f32.gmra.mxu3 %vm538_vm4, %v4734_v60  ;;  %3285 = vmatmul.msk.f32.gmra.mxu0 %vm538_vm4, %v4727_v29 }
0x182f   :  { %3270 = vmatmul.msk.f32.gmra.mxu3 %vm538_vm4, %v4741_v13  ;;  %3286 = vmatmul.msk.f32.gmra.mxu0 %vm538_vm4, %v4734_v60 }
0x1837   :  { %3271 = vmatmul.msk.f32.gmra.mxu3 %vm538_vm4, %v4748_v0  ;;  %3287 = vmatmul.msk.f32.gmra.mxu0 %vm538_vm4, %v4741_v13  ;;  %v3341_v13 = vld [vmem:[%s5090_s2] sm:$0xff] }
0x183f   :  { %3272 = vmatmul.msk.f32.gmra.mxu3 %vm538_vm4, %v4755_v6  ;;  %3288 = vmatmul.msk.f32.gmra.mxu0 %vm538_vm4, %v4748_v0 }
0x1847   :  { %3273 = vmatmul.msk.f32.gmra.mxu3 %vm538_vm4, %v4762_v5  ;;  %3289 = vmatmul.msk.f32.gmra.mxu0 %vm538_vm4, %v4755_v6 }
0x184f   :  { %3274 = vmatmul.msk.f32.gmra.mxu3 %vm538_vm4, %v4769_v18  ;;  %3290 = vmatmul.msk.f32.gmra.mxu0 %vm538_vm4, %v4762_v5 }
0x1857   :  { %3275 = vmatmul.msk.f32.gmra.mxu3 %vm538_vm4, %v4776_v1  ;;  %3291 = vmatmul.msk.f32.gmra.mxu0 %vm538_vm4, %v4769_v18 }
0x185f   :  { %3276 = vmatmul.msk.f32.gmra.mxu3 %vm538_vm4, %v4783_v22  ;;  %3292 = vmatmul.msk.f32.gmra.mxu0 %vm538_vm4, %v4776_v1 }
0x1867   :  { %3277 = vmatmul.msk.f32.gmra.mxu3 %vm538_vm4, %v4790_v25  ;;  %3293 = vmatmul.msk.f32.gmra.mxu0 %vm538_vm4, %v4783_v22 }
0x186f   :  { %3278 = vmatmul.msk.f32.gmra.mxu3 %vm538_vm4, %v4797_v27  ;;  %3294 = vmatmul.msk.f32.gmra.mxu0 %vm538_vm4, %v4790_v25  ;;  %v3342_v25 = vld [vmem:[%s5090_s2 + $0x8] sm:$0xff] }
0x1877   :  { %3279 = vmatmul.msk.f32.gmra.mxu3 %vm538_vm4, %v4804_v23  ;;  %3295 = vmatmul.msk.f32.gmra.mxu0 %vm538_vm4, %v4797_v27 }
0x187f   :  { %3280 = vmatmul.msk.f32.gmra.mxu3 %vm538_vm4, %v4811_v26  ;;  %3296 = vmatmul.msk.f32.gmra.mxu0 %vm538_vm4, %v4804_v23 }
0x1887   :  { %3297 = vmatmul.msk.f32.gmra.mxu0 %vm538_vm4, %v4811_v26 }
0x188a   :  { %v2677_v56 = vpop.f32.mrf.mxu3 }
0x188b   :  { %v2797_v59 = vmul.f32 %v2677_v56, %v4887_v58 }
0x188c   :  { %v2749_v12 = vpop.f32.mrf.mxu0 }
0x188d   :  { %v2813_v29 = vadd.f32 %v2797_v59, %v2749_v12 }
0x188f   :  { %v2829_v60 = vmax.f32 %v2813_v29, 0.0 }
0x1891   :  { %v2845_v0 = vadd.f32 %v3341_v13, %v2829_v60 }
0x1892   :  { %v2680_v6 = vpop.f32.mrf.mxu3 }
0x1893   :  { %2861 = vst.msk [vmem:[#allocation2] sm:$0xff] %vm93_vm0, %v2845_v0  ;;  %v2798_v5 = vmul.f32 %v2680_v6, %v4882_v11 }
0x1894   :  { %v2752_v18 = vpop.f32.mrf.mxu0 }
0x1895   :  { %v2814_v1 = vadd.f32 %v2798_v5, %v2752_v18 }
0x1897   :  { %v2830_v22 = vmax.f32 %v2814_v1, 0.0 }
0x1899   :  { %v2846_v27 = vadd.f32 %v3342_v25, %v2830_v22 }
0x189a   :  { %v2683_v23 = vpop.f32.mrf.mxu3 }
0x189b   :  { %2862 = vst.msk [vmem:[#allocation2 + $0x8] sm:$0xff] %vm93_vm0, %v2846_v27  ;;  %v2799_v26 = vmul.f32 %v2683_v23, %v4877_v17  ;;  %v3344_v17 = vld [vmem:[%s5090_s2 + $0x18] sm:$0xff] }
0x189c   :  { %v2755_v4 = vpop.f32.mrf.mxu0 }
0x189d   :  { %v2815_v43 = vadd.f32 %v2799_v26, %v2755_v4 }
0x189f   :  { %v2831_v50 = vmax.f32 %v2815_v43, 0.0 }
0x18a1   :  { %v2847_v10 = vadd.f32 %v3343_v15, %v2831_v50 }
0x18a2   :  { %v2686_v57 = vpop.f32.mrf.mxu3 }
0x18a3   :  { %2863 = vst.msk [vmem:[#allocation2 + $0x10] sm:$0xff] %vm93_vm0, %v2847_v10  ;;  %v2800_v54 = vmul.f32 %v2686_v57, %v4872_v7  ;;  %v3345_v7 = vld [vmem:[%s5090_s2 + $0x20] sm:$0xff] }
0x18a4   :  { %v2758_v44 = vpop.f32.mrf.mxu0 }
0x18a5   :  { %v2816_v45 = vadd.f32 %v2800_v54, %v2758_v44 }
0x18a7   :  { %v2832_v52 = vmax.f32 %v2816_v45, 0.0 }
0x18a9   :  { %v2848_v8 = vadd.f32 %v3344_v17, %v2832_v52 }
0x18aa   :  { %v2689_v11 = vpop.f32.mrf.mxu3 }
0x18ab   :  { %2864 = vst.msk [vmem:[#allocation2 + $0x18] sm:$0xff] %vm93_vm0, %v2848_v8  ;;  %v2801_v32 = vmul.f32 %v2689_v11, %v4867_v9  ;;  %v3346_v9 = vld [vmem:[%s5090_s2 + $0x28] sm:$0xff] }
0x18ac   :  { %v2761_v58 = vpop.f32.mrf.mxu0 }
0x18ad   :  { %v2817_v16 = vadd.f32 %v2801_v32, %v2761_v58 }
0x18af   :  { %v2833_v55 = vmax.f32 %v2817_v16, 0.0 }
0x18b1   :  { %v2849_v2 = vadd.f32 %v3345_v7, %v2833_v55 }
0x18b2   :  { %v2692_v28 = vpop.f32.mrf.mxu3 }
0x18b3   :  { %2865 = vst.msk [vmem:[#allocation2 + $0x20] sm:$0xff] %vm93_vm0, %v2849_v2  ;;  %v2802_v19 = vmul.f32 %v2692_v28, %v4862_v24  ;;  %v3347_v24 = vld [vmem:[%s5090_s2 + $0x30] sm:$0xff] }
0x18b4   :  { %v2764_v47 = vpop.f32.mrf.mxu0 }
0x18b5   :  { %v2818_v63 = vadd.f32 %v2802_v19, %v2764_v47 }
0x18b7   :  { %v2834_v34 = vmax.f32 %v2818_v63, 0.0 }
0x18b9   :  { %v2850_v35 = vadd.f32 %v3346_v9, %v2834_v34 }
0x18ba   :  { %v2695_v36 = vpop.f32.mrf.mxu3 }
0x18bb   :  { %2866 = vst.msk [vmem:[#allocation2 + $0x28] sm:$0xff] %vm93_vm0, %v2850_v35  ;;  %v2803_v37 = vmul.f32 %v2695_v36, %v4857_v3  ;;  %v3348_v3 = vld [vmem:[%s5090_s2 + $0x38] sm:$0xff] }
0x18bc   :  { %v2767_v38 = vpop.f32.mrf.mxu0 }
0x18bd   :  { %v2819_v33 = vadd.f32 %v2803_v37, %v2767_v38 }
0x18bf   :  { %v2835_v62 = vmax.f32 %v2819_v33, 0.0 }
0x18c1   :  { %v2851_v48 = vadd.f32 %v3347_v24, %v2835_v62  ;;  %v3356_v24 = vld [vmem:[%s5090_s2 + $0x78] sm:$0xff] }
0x18c2   :  { %v2698_v39 = vpop.f32.mrf.mxu3 }
0x18c3   :  { %2867 = vst.msk [vmem:[#allocation2 + $0x30] sm:$0xff] %vm93_vm0, %v2851_v48  ;;  %v2804_v40 = vmul.f32 %v2698_v39, %v4852_v51  ;;  %v3349_v51 = vld [vmem:[%s5090_s2 + $0x40] sm:$0xff] }
0x18c4   :  { %v2770_v41 = vpop.f32.mrf.mxu0 }
0x18c5   :  { %v2820_v61 = vadd.f32 %v2804_v40, %v2770_v41 }
0x18c7   :  { %v2836_v53 = vmax.f32 %v2820_v61, 0.0 }
0x18c9   :  { %v2852_v56 = vadd.f32 %v3348_v3, %v2836_v53 }
0x18ca   :  { %v2701_v59 = vpop.f32.mrf.mxu3 }
0x18cb   :  { %2868 = vst.msk [vmem:[#allocation2 + $0x38] sm:$0xff] %vm93_vm0, %v2852_v56  ;;  %v2805_v12 = vmul.f32 %v2701_v59, %v4847_v49  ;;  %v3350_v49 = vld [vmem:[%s5090_s2 + $0x48] sm:$0xff] }
0x18cc   :  { %v2773_v29 = vpop.f32.mrf.mxu0 }
0x18cd   :  { %v2821_v60 = vadd.f32 %v2805_v12, %v2773_v29 }
0x18cf   :  { %v2837_v13 = vmax.f32 %v2821_v60, 0.0 }
0x18d1   :  { %v2853_v0 = vadd.f32 %v3349_v51, %v2837_v13 }
0x18d2   :  { %v2704_v6 = vpop.f32.mrf.mxu3 }
0x18d3   :  { %2869 = vst.msk [vmem:[#allocation2 + $0x40] sm:$0xff] %vm93_vm0, %v2853_v0  ;;  %v2806_v5 = vmul.f32 %v2704_v6, %v4842_v31  ;;  %v3351_v31 = vld [vmem:[%s5090_s2 + $0x50] sm:$0xff] }
0x18d4   :  { %v2776_v18 = vpop.f32.mrf.mxu0 }
0x18d5   :  { %v2822_v1 = vadd.f32 %v2806_v5, %v2776_v18 }
0x18d7   :  { %v2838_v22 = vmax.f32 %v2822_v1, 0.0 }
0x18d9   :  { %v2854_v25 = vadd.f32 %v3350_v49, %v2838_v22 }
0x18da   :  { %v2707_v27 = vpop.f32.mrf.mxu3 }
0x18db   :  { %2870 = vst.msk [vmem:[#allocation2 + $0x48] sm:$0xff] %vm93_vm0, %v2854_v25  ;;  %v2807_v23 = vmul.f32 %v2707_v27, %v4837_v42  ;;  %v3352_v42 = vld [vmem:[%s5090_s2 + $0x58] sm:$0xff] }
0x18dc   :  { %v2779_v26 = vpop.f32.mrf.mxu0 }
0x18dd   :  { %v2823_v4 = vadd.f32 %v2807_v23, %v2779_v26 }
0x18df   :  { %v2839_v43 = vmax.f32 %v2823_v4, 0.0 }
0x18e1   :  { %v2855_v50 = vadd.f32 %v3351_v31, %v2839_v43 }
0x18e2   :  { %v2710_v15 = vpop.f32.mrf.mxu3 }
0x18e3   :  { %2871 = vst.msk [vmem:[#allocation2 + $0x50] sm:$0xff] %vm93_vm0, %v2855_v50  ;;  %v2808_v10 = vmul.f32 %v2710_v15, %v4832_v21  ;;  %v3353_v21 = vld [vmem:[%s5090_s2 + $0x60] sm:$0xff] }
0x18e4   :  { %v2782_v57 = vpop.f32.mrf.mxu0 }
0x18e5   :  { %v2824_v54 = vadd.f32 %v2808_v10, %v2782_v57 }
0x18e7   :  { %v2840_v44 = vmax.f32 %v2824_v54, 0.0 }
0x18e9   :  { %v2856_v45 = vadd.f32 %v3352_v42, %v2840_v44 }
0x18ea   :  { %v2713_v52 = vpop.f32.mrf.mxu3 }
0x18eb   :  { %2872 = vst.msk [vmem:[#allocation2 + $0x58] sm:$0xff] %vm93_vm0, %v2856_v45  ;;  %v2809_v17 = vmul.f32 %v2713_v52, %v4827_v20  ;;  %v3354_v20 = vld [vmem:[%s5090_s2 + $0x68] sm:$0xff] }
0x18ec   :  { %v2785_v8 = vpop.f32.mrf.mxu0 }
0x18ed   :  { %v2825_v11 = vadd.f32 %v2809_v17, %v2785_v8 }
0x18ef   :  { %v2841_v32 = vmax.f32 %v2825_v11, 0.0 }
0x18f1   :  { %v2857_v58 = vadd.f32 %v3353_v21, %v2841_v32 }
0x18f2   :  { %v2716_v16 = vpop.f32.mrf.mxu3 }
0x18f3   :  { %2873 = vst.msk [vmem:[#allocation2 + $0x60] sm:$0xff] %vm93_vm0, %v2857_v58  ;;  %v2810_v55 = vmul.f32 %v2716_v16, %v4822_v30  ;;  %v3355_v30 = vld [vmem:[%s5090_s2 + $0x70] sm:$0xff] }
0x18f4   :  { %v2788_v7 = vpop.f32.mrf.mxu0 }
0x18f5   :  { %v2826_v2 = vadd.f32 %v2810_v55, %v2788_v7 }
0x18f7   :  { %v2842_v28 = vmax.f32 %v2826_v2, 0.0 }
0x18f9   :  { %v2858_v19 = vadd.f32 %v3354_v20, %v2842_v28 }
0x18fa   :  { %v2719_v47 = vpop.f32.mrf.mxu3 }
0x18fb   :  { %2874 = vst.msk [vmem:[#allocation2 + $0x68] sm:$0xff] %vm93_vm0, %v2858_v19  ;;  %v2811_v63 = vmul.f32 %v2719_v47, %v4816_v46 }
0x18fc   :  { %v2791_v34 = vpop.f32.mrf.mxu0 }
0x18fd   :  { %v2827_v9 = vadd.f32 %v2811_v63, %v2791_v34 }
0x18ff   :  { %v2843_v35 = vmax.f32 %v2827_v9, 0.0 }
0x1901   :  { %v2859_v36 = vadd.f32 %v3355_v30, %v2843_v35 }
0x1902   :  { %v2722_v37 = vpop.f32.mrf.mxu3 }
0x1903   :  { %2875 = vst.msk [vmem:[#allocation2 + $0x70] sm:$0xff] %vm93_vm0, %v2859_v36  ;;  %v2812_v38 = vmul.f32 %v2722_v37, %v4819_v14 }
0x1904   :  { %v2794_v33 = vpop.f32.mrf.mxu0 }
0x1905   :  { %v2828_v62 = vadd.f32 %v2812_v38, %v2794_v33 }
0x1907   :  { %v2844_v46 = vmax.f32 %v2828_v62, 0.0 }
0x1909   :  { %v2860_v48 = vadd.f32 %v3356_v24, %v2844_v46 }
0x190b   :  { %2876 = vst.msk [vmem:[#allocation2 + $0x78] sm:$0xff] %vm93_vm0, %v2860_v48 }
0x190c   :  { %2889 = dma.vmem_to_hbm [thread:$0]  %s2882_s21, 2048, %s2884_s28, [#allocation3], %s3385_s22, %s3385_s22, %s3386_s0  }
0x190d   :  { %3381 = dma.done.wait [#allocation3], 2048  }
0x190e   :  { %3382 = vsyncadd [#allocation3], 4294965248 }
0x190f   :  { %2894 = vsyncpa [#allocation3], 1 }

</bundles_post_ra>
